<compile_context>
chip_gen: v5e
topology: v5e:2x2
jax: 0.10.0
libtpu: 0.0.40
codegen_flags: <defaults>
</compile_context>

<pallas_src>
import jax
import jax.numpy as jnp
from jax.experimental import pallas as pl
from jax.experimental.pallas import tpu as pltpu

FILTER = 128                      # hidden width == lane width
NUM_ENC = 6                       # num_encoding_functions
D_IN = 3 + 3 * 2 * NUM_ENC        # 39
D_OUT = 4
N_SQ = 6                          # (128,128) weights: w_in, w1..w3, wp1, wp2
N_SKIP = 2                        # fused (256,128) skip weights
N_B = 8                           # hidden-layer biases
MAX_TM = 4096                     # max rows (points) per grid step
TM_GRAN = 256                     # row-tile granularity


def nerf_kernel(x_ref, wsq_ref, wskip_ref, wout_ref, bsq_ref, bout_ref,
                o_ref, cat_ref):
    # x_ref    : (TM, 39)      f32   encoded points
    # wsq_ref  : (6, 128, 128) bf16  [w_in, w1, w2, w3, wp1, wp2]
    # wskip_ref: (2, 256, 128) bf16  fused cat([h, x]) weights [skip, skip2]
    # wout_ref : (128, 4)      bf16
    # bsq_ref  : (8, 1, 128)   f32   [b_in, b1, b2, b3, b_s, bp1, bp2, b_s2]
    # bout_ref : (1, 4)        f32
    # o_ref    : (TM, 4)       f32
    # cat_ref  : (TM, 256)     bf16  scratch: lanes [0:128)=h, [128:256)=x_pad
    tm = x_ref.shape[0]

    # Stage x (bf16, zero-padded 39 -> 128 lanes) into the second half of the
    # concat scratch; reused by the input layer and both skip layers.
    cat_ref[:, FILTER:] = jnp.zeros((tm, FILTER), jnp.bfloat16)
    cat_ref[:, FILTER:FILTER + D_IN] = x_ref[...].astype(jnp.bfloat16)
    x_pad = cat_ref[:, FILTER:]                               # (TM, 128) bf16

    def dense(h, wi, bi):
        y = jnp.dot(h, wsq_ref[wi], preferred_element_type=jnp.float32)
        return jnp.maximum(y + bsq_ref[bi], 0.0).astype(jnp.bfloat16)

    def skip(h, si, bi):
        cat_ref[:, :FILTER] = h                               # lanes 0..127 = h
        y = jnp.dot(cat_ref[...], wskip_ref[si],              # K = 256 matmul
                    preferred_element_type=jnp.float32)
        return jnp.maximum(y + bsq_ref[bi], 0.0).astype(jnp.bfloat16)

    h = dense(x_pad, 0, 0)        # input_layer + relu
    h = dense(h, 1, 1)            # layers[0]
    h = dense(h, 2, 2)            # layers[1]
    h = dense(h, 3, 3)            # layers[2]
    h = skip(h, 0, 4)             # skip_layer on cat([h, x])
    h = dense(h, 4, 5)            # post_skip_layers[0]
    h = dense(h, 5, 6)            # post_skip_layers[1]
    h = skip(h, 1, 7)             # second_skip_layer on cat([h, x])
    o_ref[...] = (jnp.dot(h, wout_ref[...],                   # output, no relu
                          preferred_element_type=jnp.float32)
                  + bout_ref[...])


def _pack_params(params):
    """Pack the 20 per-layer params into 5 kernel inputs."""
    (w_in, b_in, w1, b1, w2, b2, w3, b3,
     ws_h, ws_x, b_s, wp1, bp1, wp2, bp2,
     ws2_h, ws2_x, b_s2, w_out, b_out) = params

    def pad_rows(w):              # (d, 128) -> (128, 128) with zero rows
        return jnp.pad(w, ((0, FILTER - w.shape[0]), (0, 0)))

    w_sq = jnp.stack([pad_rows(w_in), w1, w2, w3, wp1, wp2]
                     ).astype(jnp.bfloat16)                    # (6, 128, 128)
    w_skip = jnp.stack([
        jnp.concatenate([ws_h, pad_rows(ws_x)], axis=0),       # rows 0..127: h
        jnp.concatenate([ws2_h, pad_rows(ws2_x)], axis=0),     # rows 128..: x
    ]).astype(jnp.bfloat16)                                    # (2, 256, 128)
    w_out_b = w_out.astype(jnp.bfloat16)                       # (128, 4)
    b_sq = jnp.stack([b_in, b1, b2, b3, b_s, bp1, bp2, b_s2]
                     ).astype(jnp.float32)                     # (8, 1, 128)
    b_out_f = b_out.astype(jnp.float32)                        # (1, 4)
    return w_sq, w_skip, w_out_b, b_sq, b_out_f


def _round_up(a, b):
    return (a + b - 1) // b * b


def _pick_tiling(n):
    steps = pl.cdiv(n, MAX_TM)
    if n > 2 * TM_GRAN:
        steps = max(steps, 2)        # >= 2 row-tiles: shard across v7x's 2 TCs
        if steps % 2:
            steps += 1               # balanced split across the two cores
    gran = TM_GRAN if n >= 2 * TM_GRAN else 8
    tm = min(MAX_TM, max(gran, _round_up(pl.cdiv(n, steps), gran)))
    steps = pl.cdiv(n, tm)           # every block covers >= 1 valid row
    return tm, steps


def nerf_forward(x, params):
    n = x.shape[0]
    tm, steps = _pick_tiling(n)
    w_sq, w_skip, w_out, b_sq, b_out = _pack_params(params)

    flops = 2 * n * FILTER * (N_SQ * FILTER + N_SKIP * 2 * FILTER + D_OUT)
    bytes_accessed = (n * D_IN * 4 + n * D_OUT * 4
                      + w_sq.size * 2 + w_skip.size * 2 + w_out.size * 2
                      + b_sq.size * 4 + b_out.size * 4)

    return pl.pallas_call(
        nerf_kernel,
        out_shape=jax.ShapeDtypeStruct((n, D_OUT), jnp.float32),
        grid_spec=pltpu.PrefetchScalarGridSpec(
            num_scalar_prefetch=0,
            grid=(steps,),
            in_specs=[
                pl.BlockSpec((tm, D_IN), lambda i: (i, 0)),
                pl.BlockSpec((N_SQ, FILTER, FILTER), lambda i: (0, 0, 0)),
                pl.BlockSpec((N_SKIP, 2 * FILTER, FILTER), lambda i: (0, 0, 0)),
                pl.BlockSpec((FILTER, D_OUT), lambda i: (0, 0)),
                pl.BlockSpec((N_B, 1, FILTER), lambda i: (0, 0, 0)),
                pl.BlockSpec((1, D_OUT), lambda i: (0, 0)),
            ],
            out_specs=pl.BlockSpec((tm, D_OUT), lambda i: (i, 0)),
            scratch_shapes=[pltpu.VMEM((tm, 2 * FILTER), jnp.bfloat16)],
        ),
        compiler_params=pltpu.CompilerParams(
            dimension_semantics=("parallel",),
            vmem_limit_bytes=48 * 1024 * 1024),
        cost_estimate=pl.CostEstimate(
            flops=int(flops), transcendentals=0,
            bytes_accessed=int(bytes_accessed)),
    )(x.astype(jnp.float32), w_sq, w_skip, w_out, b_sq, b_out)


def init_params(key):
    """Deterministic init mimicking nn.Linear's uniform(-1/sqrt(in), 1/sqrt(in))."""
    def linear(k, d_in, d_out):
        k1, k2 = jax.random.split(k)
        bound = 1.0 / (d_in ** 0.5)
        w = jax.random.uniform(k1, (d_in, d_out), jnp.float32, -bound, bound)
        b = jax.random.uniform(k2, (1, d_out), jnp.float32, -bound, bound)
        return w, b

    keys = jax.random.split(key, 9)
    w_in, b_in = linear(keys[0], D_IN, FILTER)
    w1, b1 = linear(keys[1], FILTER, FILTER)
    w2, b2 = linear(keys[2], FILTER, FILTER)
    w3, b3 = linear(keys[3], FILTER, FILTER)
    ws, b_s = linear(keys[4], FILTER + D_IN, FILTER)
    ws_h, ws_x = ws[:FILTER], ws[FILTER:]          # split cat([h, x]) weight
    wp1, bp1 = linear(keys[5], FILTER, FILTER)
    wp2, bp2 = linear(keys[6], FILTER, FILTER)
    ws2, b_s2 = linear(keys[7], FILTER + D_IN, FILTER)
    ws2_h, ws2_x = ws2[:FILTER], ws2[FILTER:]
    w_out, b_out = linear(keys[8], FILTER, D_OUT)
    return [w_in, b_in, w1, b1, w2, b2, w3, b3,
            ws_h, ws_x, b_s, wp1, bp1, wp2, bp2,
            ws2_h, ws2_x, b_s2, w_out, b_out]


def nerf_ref(x, params):
    """Pure-JAX f32 reference matching the PyTorch forward."""
    (w_in, b_in, w1, b1, w2, b2, w3, b3,
     ws_h, ws_x, b_s, wp1, bp1, wp2, bp2,
     ws2_h, ws2_x, b_s2, w_out, b_out) = params
    relu = lambda v: jnp.maximum(v, 0.0)
    h = relu(x @ w_in + b_in)
    h = relu(h @ w1 + b1)
    h = relu(h @ w2 + b2)
    h = relu(h @ w3 + b3)
    c = jnp.concatenate([h, x], axis=-1)
    h = relu(c @ jnp.concatenate([ws_h, ws_x], axis=0) + b_s)
    h = relu(h @ wp1 + bp1)
    h = relu(h @ wp2 + bp2)
    c = jnp.concatenate([h, x], axis=-1)
    h = relu(c @ jnp.concatenate([ws2_h, ws2_x], axis=0) + b_s2)
    return h @ w_out + b_out


if __name__ == "__main__":
    key = jax.random.PRNGKey(0)
    k_x, k_p = jax.random.split(key)

    N = 1000                                    # encoded sample points
    x = jax.random.uniform(k_x, (N, D_IN), jnp.float32, -1.0, 1.0)
    params = init_params(k_p)

    out = jax.block_until_ready(nerf_forward(x, params))
    ref = nerf_ref(x, params)

    assert out.shape == (N, D_OUT)
    # bf16 matmul operands with f32 accumulation -> loose tolerance vs f32 ref.
    err = float(jnp.max(jnp.abs(out - ref)))
    assert err < 1.5e-1, f"kernel mismatch vs reference: max abs err {err}"

    print("KERNEL_OK")
</pallas_src>

<mosaic_0001>
module attributes {stable_mosaic.version = 11 : i64} {
  func.func @nerf_kernel(%arg0: i32, %arg1: memref<512x39xf32, #tpu.memory_space<vmem>>, %arg2: memref<6x128x128xbf16, #tpu.memory_space<vmem>>, %arg3: memref<2x256x128xbf16, #tpu.memory_space<vmem>>, %arg4: memref<128x4xbf16, #tpu.memory_space<vmem>>, %arg5: memref<8x1x128xf32, #tpu.memory_space<vmem>>, %arg6: memref<1x4xf32, #tpu.memory_space<vmem>>, %arg7: memref<512x4xf32, #tpu.memory_space<vmem>>, %arg8: memref<512x256xbf16, #tpu.memory_space<vmem>>) attributes {dimension_semantics = [#tpu.dimension_semantics<parallel>], iteration_bounds = array<i64: 2>, scalar_prefetch = 0 : i64, scratch_operands = 1 : i64, tpu.core_type = #tpu.core_type<tc>, window_params = [{transform_indices = @transform_0, window_bounds = array<i64: 512, 39>}, {pipeline_mode = #tpu.pipeline_mode<synchronous>, transform_indices = @transform_1, window_bounds = array<i64: 6, 128, 128>}, {pipeline_mode = #tpu.pipeline_mode<synchronous>, transform_indices = @transform_2, window_bounds = array<i64: 2, 256, 128>}, {pipeline_mode = #tpu.pipeline_mode<synchronous>, transform_indices = @transform_3, window_bounds = array<i64: 128, 4>}, {pipeline_mode = #tpu.pipeline_mode<synchronous>, transform_indices = @transform_4, window_bounds = array<i64: 8, 1, 128>}, {pipeline_mode = #tpu.pipeline_mode<synchronous>, transform_indices = @transform_5, window_bounds = array<i64: 1, 4>}, {transform_indices = @transform_6, window_bounds = array<i64: 512, 4>}]} {
    %cst = arith.constant 0.000000e+00 : bf16
    %0 = vector.broadcast %cst : bf16 to vector<512x128xbf16>
    %c0 = arith.constant 0 : index
    %c128 = arith.constant 128 : index
    %1 = vector.load %arg8[%c0, %c128] : memref<512x256xbf16, #tpu.memory_space<vmem>>, vector<512x128xbf16>
    tpu.vector_store %arg8[%c0, %c128], %0 {strides = array<i32>} : memref<512x256xbf16, #tpu.memory_space<vmem>>, vector<512x128xbf16>,
    %c0_0 = arith.constant 0 : index
    %c0_1 = arith.constant 0 : index
    %2 = vector.load %arg1[%c0_0, %c0_1] : memref<512x39xf32, #tpu.memory_space<vmem>>, vector<512x39xf32>
    %3 = arith.truncf %2 : vector<512x39xf32> to vector<512x39xbf16>
    %c0_2 = arith.constant 0 : index
    %c128_3 = arith.constant 128 : index
    %4 = vector.load %arg8[%c0_2, %c128_3] : memref<512x256xbf16, #tpu.memory_space<vmem>>, vector<512x39xbf16>
    tpu.vector_store %arg8[%c0_2, %c128_3], %3 {strides = array<i32>} : memref<512x256xbf16, #tpu.memory_space<vmem>>, vector<512x39xbf16>,
    %c0_4 = arith.constant 0 : index
    %c128_5 = arith.constant 128 : index
    %5 = vector.load %arg8[%c0_4, %c128_5] : memref<512x256xbf16, #tpu.memory_space<vmem>>, vector<512x128xbf16>
    %c0_6 = arith.constant 0 : index
    %c0_7 = arith.constant 0 : index
    %c0_8 = arith.constant 0 : index
    %6 = vector.load %arg2[%c0_6, %c0_7, %c0_8] : memref<6x128x128xbf16, #tpu.memory_space<vmem>>, vector<1x128x128xbf16>
    %7 = vector.shape_cast %6 : vector<1x128x128xbf16> to vector<128x128xbf16>
    %cst_9 = arith.constant dense<0.000000e+00> : vector<512x128xf32>
    %8 = tpu.matmul %5, %7, %cst_9 {dimension_numbers = #tpu.dot_dimension_numbers<[1], [0], [0], [1], [0, 0, 1, 1], [], []>} : vector<512x128xbf16>, vector<128x128xbf16>, vector<512x128xf32> -> vector<512x128xf32>
    %c0_10 = arith.constant 0 : index
    %c0_11 = arith.constant 0 : index
    %c0_12 = arith.constant 0 : index
    %9 = vector.load %arg5[%c0_10, %c0_11, %c0_12] : memref<8x1x128xf32, #tpu.memory_space<vmem>>, vector<1x1x128xf32>
    %10 = vector.shape_cast %9 : vector<1x1x128xf32> to vector<1x128xf32>
    %11 = vector.broadcast %10 : vector<1x128xf32> to vector<512x128xf32>
    %12 = arith.addf %8, %11 : vector<512x128xf32>
    %cst_13 = arith.constant 0.000000e+00 : f32
    %13 = vector.broadcast %cst_13 : f32 to vector<512x128xf32>
    %14 = arith.maximumf %12, %13 : vector<512x128xf32>
    %15 = arith.truncf %14 : vector<512x128xf32> to vector<512x128xbf16>
    %c1 = arith.constant 1 : index
    %c0_14 = arith.constant 0 : index
    %c0_15 = arith.constant 0 : index
    %16 = vector.load %arg2[%c1, %c0_14, %c0_15] : memref<6x128x128xbf16, #tpu.memory_space<vmem>>, vector<1x128x128xbf16>
    %17 = vector.shape_cast %16 : vector<1x128x128xbf16> to vector<128x128xbf16>
    %cst_16 = arith.constant dense<0.000000e+00> : vector<512x128xf32>
    %18 = tpu.matmul %15, %17, %cst_16 {dimension_numbers = #tpu.dot_dimension_numbers<[1], [0], [0], [1], [0, 0, 1, 1], [], []>} : vector<512x128xbf16>, vector<128x128xbf16>, vector<512x128xf32> -> vector<512x128xf32>
    %c1_17 = arith.constant 1 : index
    %c0_18 = arith.constant 0 : index
    %c0_19 = arith.constant 0 : index
    %19 = vector.load %arg5[%c1_17, %c0_18, %c0_19] : memref<8x1x128xf32, #tpu.memory_space<vmem>>, vector<1x1x128xf32>
    %20 = vector.shape_cast %19 : vector<1x1x128xf32> to vector<1x128xf32>
    %21 = vector.broadcast %20 : vector<1x128xf32> to vector<512x128xf32>
    %22 = arith.addf %18, %21 : vector<512x128xf32>
    %cst_20 = arith.constant 0.000000e+00 : f32
    %23 = vector.broadcast %cst_20 : f32 to vector<512x128xf32>
    %24 = arith.maximumf %22, %23 : vector<512x128xf32>
    %25 = arith.truncf %24 : vector<512x128xf32> to vector<512x128xbf16>
    %c2 = arith.constant 2 : index
    %c0_21 = arith.constant 0 : index
    %c0_22 = arith.constant 0 : index
    %26 = vector.load %arg2[%c2, %c0_21, %c0_22] : memref<6x128x128xbf16, #tpu.memory_space<vmem>>, vector<1x128x128xbf16>
    %27 = vector.shape_cast %26 : vector<1x128x128xbf16> to vector<128x128xbf16>
    %cst_23 = arith.constant dense<0.000000e+00> : vector<512x128xf32>
    %28 = tpu.matmul %25, %27, %cst_23 {dimension_numbers = #tpu.dot_dimension_numbers<[1], [0], [0], [1], [0, 0, 1, 1], [], []>} : vector<512x128xbf16>, vector<128x128xbf16>, vector<512x128xf32> -> vector<512x128xf32>
    %c2_24 = arith.constant 2 : index
    %c0_25 = arith.constant 0 : index
    %c0_26 = arith.constant 0 : index
    %29 = vector.load %arg5[%c2_24, %c0_25, %c0_26] : memref<8x1x128xf32, #tpu.memory_space<vmem>>, vector<1x1x128xf32>
    %30 = vector.shape_cast %29 : vector<1x1x128xf32> to vector<1x128xf32>
    %31 = vector.broadcast %30 : vector<1x128xf32> to vector<512x128xf32>
    %32 = arith.addf %28, %31 : vector<512x128xf32>
    %cst_27 = arith.constant 0.000000e+00 : f32
    %33 = vector.broadcast %cst_27 : f32 to vector<512x128xf32>
    %34 = arith.maximumf %32, %33 : vector<512x128xf32>
    %35 = arith.truncf %34 : vector<512x128xf32> to vector<512x128xbf16>
    %c3 = arith.constant 3 : index
    %c0_28 = arith.constant 0 : index
    %c0_29 = arith.constant 0 : index
    %36 = vector.load %arg2[%c3, %c0_28, %c0_29] : memref<6x128x128xbf16, #tpu.memory_space<vmem>>, vector<1x128x128xbf16>
    %37 = vector.shape_cast %36 : vector<1x128x128xbf16> to vector<128x128xbf16>
    %cst_30 = arith.constant dense<0.000000e+00> : vector<512x128xf32>
    %38 = tpu.matmul %35, %37, %cst_30 {dimension_numbers = #tpu.dot_dimension_numbers<[1], [0], [0], [1], [0, 0, 1, 1], [], []>} : vector<512x128xbf16>, vector<128x128xbf16>, vector<512x128xf32> -> vector<512x128xf32>
    %c3_31 = arith.constant 3 : index
    %c0_32 = arith.constant 0 : index
    %c0_33 = arith.constant 0 : index
    %39 = vector.load %arg5[%c3_31, %c0_32, %c0_33] : memref<8x1x128xf32, #tpu.memory_space<vmem>>, vector<1x1x128xf32>
    %40 = vector.shape_cast %39 : vector<1x1x128xf32> to vector<1x128xf32>
    %41 = vector.broadcast %40 : vector<1x128xf32> to vector<512x128xf32>
    %42 = arith.addf %38, %41 : vector<512x128xf32>
    %cst_34 = arith.constant 0.000000e+00 : f32
    %43 = vector.broadcast %cst_34 : f32 to vector<512x128xf32>
    %44 = arith.maximumf %42, %43 : vector<512x128xf32>
    %45 = arith.truncf %44 : vector<512x128xf32> to vector<512x128xbf16>
    %c0_35 = arith.constant 0 : index
    %c0_36 = arith.constant 0 : index
    %46 = vector.load %arg8[%c0_35, %c0_36] : memref<512x256xbf16, #tpu.memory_space<vmem>>, vector<512x128xbf16>
    tpu.vector_store %arg8[%c0_35, %c0_36], %45 {strides = array<i32>} : memref<512x256xbf16, #tpu.memory_space<vmem>>, vector<512x128xbf16>,
    %c0_37 = arith.constant 0 : index
    %c0_38 = arith.constant 0 : index
    %47 = vector.load %arg8[%c0_37, %c0_38] : memref<512x256xbf16, #tpu.memory_space<vmem>>, vector<512x256xbf16>
    %c0_39 = arith.constant 0 : index
    %c0_40 = arith.constant 0 : index
    %c0_41 = arith.constant 0 : index
    %48 = vector.load %arg3[%c0_39, %c0_40, %c0_41] : memref<2x256x128xbf16, #tpu.memory_space<vmem>>, vector<1x256x128xbf16>
    %49 = vector.shape_cast %48 : vector<1x256x128xbf16> to vector<256x128xbf16>
    %cst_42 = arith.constant dense<0.000000e+00> : vector<512x128xf32>
    %50 = tpu.matmul %47, %49, %cst_42 {dimension_numbers = #tpu.dot_dimension_numbers<[1], [0], [0], [1], [0, 0, 1, 1], [], []>} : vector<512x256xbf16>, vector<256x128xbf16>, vector<512x128xf32> -> vector<512x128xf32>
    %c4 = arith.constant 4 : index
    %c0_43 = arith.constant 0 : index
    %c0_44 = arith.constant 0 : index
    %51 = vector.load %arg5[%c4, %c0_43, %c0_44] : memref<8x1x128xf32, #tpu.memory_space<vmem>>, vector<1x1x128xf32>
    %52 = vector.shape_cast %51 : vector<1x1x128xf32> to vector<1x128xf32>
    %53 = vector.broadcast %52 : vector<1x128xf32> to vector<512x128xf32>
    %54 = arith.addf %50, %53 : vector<512x128xf32>
    %cst_45 = arith.constant 0.000000e+00 : f32
    %55 = vector.broadcast %cst_45 : f32 to vector<512x128xf32>
    %56 = arith.maximumf %54, %55 : vector<512x128xf32>
    %57 = arith.truncf %56 : vector<512x128xf32> to vector<512x128xbf16>
    %c4_46 = arith.constant 4 : index
    %c0_47 = arith.constant 0 : index
    %c0_48 = arith.constant 0 : index
    %58 = vector.load %arg2[%c4_46, %c0_47, %c0_48] : memref<6x128x128xbf16, #tpu.memory_space<vmem>>, vector<1x128x128xbf16>
    %59 = vector.shape_cast %58 : vector<1x128x128xbf16> to vector<128x128xbf16>
    %cst_49 = arith.constant dense<0.000000e+00> : vector<512x128xf32>
    %60 = tpu.matmul %57, %59, %cst_49 {dimension_numbers = #tpu.dot_dimension_numbers<[1], [0], [0], [1], [0, 0, 1, 1], [], []>} : vector<512x128xbf16>, vector<128x128xbf16>, vector<512x128xf32> -> vector<512x128xf32>
    %c5 = arith.constant 5 : index
    %c0_50 = arith.constant 0 : index
    %c0_51 = arith.constant 0 : index
    %61 = vector.load %arg5[%c5, %c0_50, %c0_51] : memref<8x1x128xf32, #tpu.memory_space<vmem>>, vector<1x1x128xf32>
    %62 = vector.shape_cast %61 : vector<1x1x128xf32> to vector<1x128xf32>
    %63 = vector.broadcast %62 : vector<1x128xf32> to vector<512x128xf32>
    %64 = arith.addf %60, %63 : vector<512x128xf32>
    %cst_52 = arith.constant 0.000000e+00 : f32
    %65 = vector.broadcast %cst_52 : f32 to vector<512x128xf32>
    %66 = arith.maximumf %64, %65 : vector<512x128xf32>
    %67 = arith.truncf %66 : vector<512x128xf32> to vector<512x128xbf16>
    %c5_53 = arith.constant 5 : index
    %c0_54 = arith.constant 0 : index
    %c0_55 = arith.constant 0 : index
    %68 = vector.load %arg2[%c5_53, %c0_54, %c0_55] : memref<6x128x128xbf16, #tpu.memory_space<vmem>>, vector<1x128x128xbf16>
    %69 = vector.shape_cast %68 : vector<1x128x128xbf16> to vector<128x128xbf16>
    %cst_56 = arith.constant dense<0.000000e+00> : vector<512x128xf32>
    %70 = tpu.matmul %67, %69, %cst_56 {dimension_numbers = #tpu.dot_dimension_numbers<[1], [0], [0], [1], [0, 0, 1, 1], [], []>} : vector<512x128xbf16>, vector<128x128xbf16>, vector<512x128xf32> -> vector<512x128xf32>
    %c6 = arith.constant 6 : index
    %c0_57 = arith.constant 0 : index
    %c0_58 = arith.constant 0 : index
    %71 = vector.load %arg5[%c6, %c0_57, %c0_58] : memref<8x1x128xf32, #tpu.memory_space<vmem>>, vector<1x1x128xf32>
    %72 = vector.shape_cast %71 : vector<1x1x128xf32> to vector<1x128xf32>
    %73 = vector.broadcast %72 : vector<1x128xf32> to vector<512x128xf32>
    %74 = arith.addf %70, %73 : vector<512x128xf32>
    %cst_59 = arith.constant 0.000000e+00 : f32
    %75 = vector.broadcast %cst_59 : f32 to vector<512x128xf32>
    %76 = arith.maximumf %74, %75 : vector<512x128xf32>
    %77 = arith.truncf %76 : vector<512x128xf32> to vector<512x128xbf16>
    %c0_60 = arith.constant 0 : index
    %c0_61 = arith.constant 0 : index
    %78 = vector.load %arg8[%c0_60, %c0_61] : memref<512x256xbf16, #tpu.memory_space<vmem>>, vector<512x128xbf16>
    tpu.vector_store %arg8[%c0_60, %c0_61], %77 {strides = array<i32>} : memref<512x256xbf16, #tpu.memory_space<vmem>>, vector<512x128xbf16>,
    %c0_62 = arith.constant 0 : index
    %c0_63 = arith.constant 0 : index
    %79 = vector.load %arg8[%c0_62, %c0_63] : memref<512x256xbf16, #tpu.memory_space<vmem>>, vector<512x256xbf16>
    %c1_64 = arith.constant 1 : index
    %c0_65 = arith.constant 0 : index
    %c0_66 = arith.constant 0 : index
    %80 = vector.load %arg3[%c1_64, %c0_65, %c0_66] : memref<2x256x128xbf16, #tpu.memory_space<vmem>>, vector<1x256x128xbf16>
    %81 = vector.shape_cast %80 : vector<1x256x128xbf16> to vector<256x128xbf16>
    %cst_67 = arith.constant dense<0.000000e+00> : vector<512x128xf32>
    %82 = tpu.matmul %79, %81, %cst_67 {dimension_numbers = #tpu.dot_dimension_numbers<[1], [0], [0], [1], [0, 0, 1, 1], [], []>} : vector<512x256xbf16>, vector<256x128xbf16>, vector<512x128xf32> -> vector<512x128xf32>
    %c7 = arith.constant 7 : index
    %c0_68 = arith.constant 0 : index
    %c0_69 = arith.constant 0 : index
    %83 = vector.load %arg5[%c7, %c0_68, %c0_69] : memref<8x1x128xf32, #tpu.memory_space<vmem>>, vector<1x1x128xf32>
    %84 = vector.shape_cast %83 : vector<1x1x128xf32> to vector<1x128xf32>
    %85 = vector.broadcast %84 : vector<1x128xf32> to vector<512x128xf32>
    %86 = arith.addf %82, %85 : vector<512x128xf32>
    %cst_70 = arith.constant 0.000000e+00 : f32
    %87 = vector.broadcast %cst_70 : f32 to vector<512x128xf32>
    %88 = arith.maximumf %86, %87 : vector<512x128xf32>
    %89 = arith.truncf %88 : vector<512x128xf32> to vector<512x128xbf16>
    %c0_71 = arith.constant 0 : index
    %c0_72 = arith.constant 0 : index
    %90 = vector.load %arg4[%c0_71, %c0_72] : memref<128x4xbf16, #tpu.memory_space<vmem>>, vector<128x4xbf16>
    %cst_73 = arith.constant dense<0.000000e+00> : vector<512x4xf32>
    %91 = tpu.matmul %89, %90, %cst_73 {dimension_numbers = #tpu.dot_dimension_numbers<[1], [0], [0], [1], [0, 0, 1, 1], [], []>} : vector<512x128xbf16>, vector<128x4xbf16>, vector<512x4xf32> -> vector<512x4xf32>
    %c0_74 = arith.constant 0 : index
    %c0_75 = arith.constant 0 : index
    %92 = vector.load %arg6[%c0_74, %c0_75] : memref<1x4xf32, #tpu.memory_space<vmem>>, vector<1x4xf32>
    %93 = vector.broadcast %92 : vector<1x4xf32> to vector<512x4xf32>
    %94 = arith.addf %91, %93 : vector<512x4xf32>
    %c0_76 = arith.constant 0 : index
    %c0_77 = arith.constant 0 : index
    %95 = vector.load %arg7[%c0_76, %c0_77] : memref<512x4xf32, #tpu.memory_space<vmem>>, vector<512x4xf32>
    tpu.vector_store %arg7[%c0_76, %c0_77], %94 {strides = array<i32>} : memref<512x4xf32, #tpu.memory_space<vmem>>, vector<512x4xf32>,
    return
  }
  func.func @transform_0(%arg0: i32) -> (i32, i32) {
    %c0_i32 = arith.constant 0 : i32
    %c0_i32_0 = arith.constant 0 : i32
    return %arg0, %c0_i32 : i32, i32
  }
  func.func @transform_1(%arg0: i32) -> (i32, i32, i32) {
    %c0_i32 = arith.constant 0 : i32
    %c0_i32_0 = arith.constant 0 : i32
    %c0_i32_1 = arith.constant 0 : i32
    %c0_i32_2 = arith.constant 0 : i32
    return %c0_i32, %c0_i32_0, %c0_i32_1 : i32, i32, i32
  }
  func.func @transform_2(%arg0: i32) -> (i32, i32, i32) {
    %c0_i32 = arith.constant 0 : i32
    %c0_i32_0 = arith.constant 0 : i32
    %c0_i32_1 = arith.constant 0 : i32
    %c0_i32_2 = arith.constant 0 : i32
    return %c0_i32, %c0_i32_0, %c0_i32_1 : i32, i32, i32
  }
  func.func @transform_3(%arg0: i32) -> (i32, i32) {
    %c0_i32 = arith.constant 0 : i32
    %c0_i32_0 = arith.constant 0 : i32
    %c0_i32_1 = arith.constant 0 : i32
    return %c0_i32, %c0_i32_0 : i32, i32
  }
  func.func @transform_4(%arg0: i32) -> (i32, i32, i32) {
    %c0_i32 = arith.constant 0 : i32
    %c0_i32_0 = arith.constant 0 : i32
    %c0_i32_1 = arith.constant 0 : i32
    %c0_i32_2 = arith.constant 0 : i32
    return %c0_i32, %c0_i32_0, %c0_i32_1 : i32, i32, i32
  }
  func.func @transform_5(%arg0: i32) -> (i32, i32) {
    %c0_i32 = arith.constant 0 : i32
    %c0_i32_0 = arith.constant 0 : i32
    %c0_i32_1 = arith.constant 0 : i32
    return %c0_i32, %c0_i32_0 : i32, i32
  }
  func.func @transform_6(%arg0: i32) -> (i32, i32) {
    %c0_i32 = arith.constant 0 : i32
    %c0_i32_0 = arith.constant 0 : i32
    return %arg0, %c0_i32 : i32, i32
  }
}

</mosaic_0001>

<bundles_post_ra>
// kernel: tpu_custom_call.1
= control target key start
LH: loop header
LB: loop body
LE: loop exit
PB: predicated region body
PF: predicated region fallthrough
CT: control target
= control target key end

     0   :  { %s7177_s21 = smov 0   ;;  %s7179_s22 = smov 0   ;;  %s9084_s0 = inlined_call_operand.vmem [shape: f32[1000,39], index: 0, kind: input, shape index: {}]   ;;  %s9085_s1 = inlined_call_operand.vmem [shape: bf16[6,128,128], index: 1, kind: input, shape index: {}]   ;;  %s9086_s2 = inlined_call_operand.vmem [shape: bf16[2,256,128], index: 2, kind: input, shape index: {}]   ;;  %s9087_s3 = inlined_call_operand.vmem [shape: bf16[128,4], index: 3, kind: input, shape index: {}]   ;;  %s9088_s4 = inlined_call_operand.vmem [shape: f32[8,1,128], index: 4, kind: input, shape index: {}]   ;;  %s9089_s5 = inlined_call_operand.vmem [shape: f32[1,4], index: 5, kind: input, shape index: {}]   ;;  %s9090_s6 = inlined_call_operand.vmem [shape: f32[1000,4], index: 6, kind: output, shape index: {}]  }
   0x1   :  { %s7181_s23 = smov 0  }
   0x2 LB: > { %s7190_s24 = sadd.s32 4294967295, %s7107_s23   ;;  %s7192_s25 = sadd.s32 1, %s7107_s23   ;;  %s7107_s23 = sphi %s7181_s23, %s9099_s23   ;;  %s7103_s22 = sphi %s7179_s22, %s9098_s22   ;;  %s7099_s21 = sphi %s7177_s21, %s9097_s21  }
   0x3   : > { %s151_s26 = ssub.s32 %s7107_s23, %s7192_s25  ;;  %s154_s27 = sadd.s32 1, %s7103_s22 }
   0x4   : > { %p152_p0 = scmp.eq.s32.totalorder %s151_s26, 0  ;;  %p164_p1 = scmp.ne.s32.totalorder %s7103_s22, %s7099_s21 }
   0x5   : > { %p165_p2 = scmp.eq.s32.totalorder %s7190_s24, 1  ;;  %p5535_p3 = scmp.ge.s32.totalorder %s7107_s23, 1 }
   0x6   : > { %s7200_s28 = scalar_select %p152_p0, %s7103_s22, %s154_s27  }
   0x7   : > { %p7202_p4 = por %p165_p2, %p164_p1  ;;  %p221_p5 = scmp.lt.s32.totalorder %s7107_s23, 3 }
   0x9   : > { %p222_p6 = pnand %p5535_p3, %p221_p5 }
   0xa   : > { %s7210_s8 = sshll.u32 (!%p222_p6), %s7190_s24, 6  ;;  %s251_s30 = sand.u32 (!%p222_p6), 1, %s7099_s21  }
   0xb   : > { %225 = sbr.rel (%p222_p6) target bundleno = 2027 (0x7eb), region = 44  ;;  %p259_p7 = scmp.lt.s32.totalorder (!%p222_p6), %s7210_s8, 124 }
   0xc   : > { %s5536_s7 = sshll.u32 (!%p222_p6), %s251_s30, 9 }
   0xd   : > { %s8581_s21 = scalar_lea.vmem (!%p222_p6), [#allocation3], %s5536_s7  }
  0x10   : > { %v6706_v0 = vld [vmem:[%s9085_s1 + $0x38] sm:$0xff]  ;;  %v7141_v1 = vmov 0   ;;  %v6705_v2 = vld [vmem:[%s9085_s1 + $0x30] sm:$0xff]  ;;  %s260_s11 = scalar_select %p259_p7, %s7210_s8, 124  ;;  %v6704_v3 = vld [vmem:[%s9085_s1 + $0x28] sm:$0xff]  ;;  %vm466_vm0 = vcmask 314368  }
  0x11   : > { %274 = vst [vmem:[#allocation2 + $0x4] sm:$0xf] %v7141_v1  ;;  %855 = vmatpush.bf16.msra.mxu0 %v6706_v0  ;;  %6918 = vmatpush.bf16.msra.mxu3 %v6706_v0  ;;  %v6703_v8 = vld [vmem:[%s9085_s1 + $0x20] sm:$0xff]  ;;  %v6702_v9 = vld [vmem:[%s9085_s1 + $0x18] sm:$0xff]  ;;  %v6701_v10 = vld [vmem:[%s9085_s1 + $0x10] sm:$0xff]  ;;  %vm5127_vm1 = vcmask 31744  }
  0x12   : > { %275 = vst [vmem:[#allocation2 + $0xc] sm:$0xf] %v7141_v1  ;;  %s5538_s14 = sshll.u32 %s260_s11, 3  ;;  %v6700_v11 = vld [vmem:[%s9085_s1 + $0x8] sm:$0xff]  ;;  %v6699_v12 = vld [vmem:[%s9085_s1] sm:$0xff]  ;;  %v6714_v19 = vld [vmem:[%s9085_s1 + $0x78] sm:$0xff] }
  0x13   : > { %276 = vst [vmem:[#allocation2 + $0x14] sm:$0xf] %v7141_v1  ;;  %s7228_s17 = scalar_lea.vmem %s9084_s0, %s5538_s14  ;;  %1190 = vmatpush.bf16.msra.mxu1 %v6714_v19  ;;  %v6713_v43 = vld [vmem:[%s9085_s1 + $0x70] sm:$0xff]  ;;  %v6712_v58 = vld [vmem:[%s9085_s1 + $0x68] sm:$0xff]  ;;  %s5200_s16 = ssub.s32 (%p7202_p4), 125, %s7210_s8 }
  0x14   : > { %277 = vst [vmem:[#allocation2 + $0x1c] sm:$0xf] %v7141_v1  ;;  %v338_v4 = vld [vmem:[%s7228_s17] sm:$0xff]  ;;  %v339_v5 = vld [vmem:[%s7228_s17 + $0x8] sm:$0xff]  ;;  %v340_v18 = vld [vmem:[%s7228_s17 + $0x10] sm:$0xff]  ;;  %s6915_s18 = sshll.u32 (%p7202_p4), %s7190_s24, 9 }
  0x15   : > { %278 = vst [vmem:[#allocation2 + $0x24] sm:$0xf] %v7141_v1  ;;  %856 = vmatpush.bf16.msra.mxu0 %v6705_v2  ;;  %6919 = vmatpush.bf16.msra.mxu3 %v6705_v2  ;;  %v402_v6 = vpack.c.bf16 %v338_v4, %v338_v4  ;;  %v403_v7 = vpack.c.bf16 %v339_v5, %v339_v5  ;;  %v386_v16 = vld [vmem:[%s7228_s17 + $0x180] sm:$0xff]  ;;  %v387_v17 = vld [vmem:[%s7228_s17 + $0x188] sm:$0xff]  ;;  %v341_v21 = vld [vmem:[%s7228_s17 + $0x18] sm:$0xff]  ;;  %p5201_p8 = scmp.lt.s32.totalorder (%p7202_p4), %s5200_s16, 64  ;;  %s8949_s23 = scalar_lea.vmem (%p7202_p4), %s9090_s6, %s6915_s18  }
  0x16   : > { %279 = vst [vmem:[#allocation2 + $0x2c] sm:$0xf] %v7141_v1  ;;  %v450_v20 = vpack.c.bf16 %v386_v16, %v386_v16  ;;  %v451_v22 = vpack.c.bf16 %v387_v17, %v387_v17  ;;  %v388_v23 = vld [vmem:[%s7228_s17 + $0x190] sm:$0xff]  ;;  %v404_v24 = vpack.c.bf16 %v340_v18, %v340_v18  ;;  %v389_v25 = vld [vmem:[%s7228_s17 + $0x198] sm:$0xff]  ;;  %v405_v26 = vpack.c.bf16 %v341_v21, %v341_v21  ;;  %v342_v27 = vld [vmem:[%s7228_s17 + $0x20] sm:$0xff] }
  0x17   : > { %280 = vst [vmem:[#allocation2 + $0x34] sm:$0xf] %v7141_v1  ;;  %v452_v28 = vpack.c.bf16 %v388_v23, %v388_v23  ;;  %v343_v29 = vld [vmem:[%s7228_s17 + $0x28] sm:$0xff]  ;;  %v453_v30 = vpack.c.bf16 %v389_v25, %v389_v25  ;;  %v390_v31 = vld [vmem:[%s7228_s17 + $0x1a0] sm:$0xff]  ;;  %v406_v32 = vpack.c.bf16 %v342_v27, %v342_v27  ;;  %v344_v44 = vld [vmem:[%s7228_s17 + $0x30] sm:$0xff]  ;;  %1191 = vmatpush.bf16.msra.mxu1 %v6713_v43 }
  0x18   : > { %281 = vst [vmem:[#allocation2 + $0x3c] sm:$0xf] %v7141_v1  ;;  %v391_v33 = vld [vmem:[%s7228_s17 + $0x1a8] sm:$0xff]  ;;  %v407_v34 = vpack.c.bf16 %v343_v29, %v343_v29  ;;  %v454_v35 = vpack.c.bf16 %v390_v31, %v390_v31  ;;  %v345_v45 = vld [vmem:[%s7228_s17 + $0x38] sm:$0xff]  ;;  %v408_v46 = vpack.c.bf16 %v344_v44, %v344_v44  ;;  %v392_v48 = vld [vmem:[%s7228_s17 + $0x1b0] sm:$0xff] }
  0x19   : > { %282 = vst [vmem:[#allocation2 + $0x44] sm:$0xf] %v7141_v1  ;;  %857 = vmatpush.bf16.msra.mxu0 %v6704_v3  ;;  %6920 = vmatpush.bf16.msra.mxu3 %v6704_v3  ;;  %v455_v36 = vpack.c.bf16 %v391_v33, %v391_v33  ;;  %v409_v47 = vpack.c.bf16 %v345_v45, %v345_v45  ;;  %v393_v49 = vld [vmem:[%s7228_s17 + $0x1b8] sm:$0xff]  ;;  %v346_v59 = vld [vmem:[%s7228_s17 + $0x40] sm:$0xff]  ;;  %v347_v60 = vld [vmem:[%s7228_s17 + $0x48] sm:$0xff] }
  0x1a   : > { %467 = vst.msk [vmem:[#allocation2 + $0x4] sm:$0xf] %vm466_vm0, %v402_v6  ;;  %v456_v50 = vpack.c.bf16 %v392_v48, %v392_v48  ;;  %v457_v51 = vpack.c.bf16 %v393_v49, %v393_v49  ;;  %v410_v61 = vpack.c.bf16 %v346_v59, %v346_v59  ;;  %v411_v62 = vpack.c.bf16 %v347_v60, %v347_v60  ;;  %v394_v63 = vld [vmem:[%s7228_s17 + $0x1c0] sm:$0xff]  ;;  %v395_v0 = vld [vmem:[%s7228_s17 + $0x1c8] sm:$0xff]  ;;  %v400_v44 = vld [vmem:[%s7228_s17 + $0x1f0] sm:$0xff] }
  0x1b   : > { %468 = vst.msk [vmem:[#allocation2 + $0xc] sm:$0xf] %vm466_vm0, %v403_v7  ;;  %v459_v2 = vpack.c.bf16 %v395_v0, %v395_v0  ;;  %1192 = vmatpush.bf16.msra.mxu1 %v6712_v58  ;;  %v350_v25 = vld [vmem:[%s7228_s17 + $0x60] sm:$0xff]  ;;  %v401_v45 = vld [vmem:[%s7228_s17 + $0x1f8] sm:$0xff] }
  0x1c   : > { %283 = vst [vmem:[#allocation2 + $0x4c] sm:$0xf] %v7141_v1  ;;  %v414_v27 = vpack.c.bf16 %v350_v25, %v350_v25  ;;  %v398_v29 = vld [vmem:[%s7228_s17 + $0x1e0] sm:$0xff] }
  0x1d   : > { %284 = vst [vmem:[#allocation2 + $0x54] sm:$0xf] %v7141_v1  ;;  %858 = vmatpush.bf16.msra.mxu0 %v6703_v8  ;;  %6921 = vmatpush.bf16.msra.mxu3 %v6703_v8  ;;  %v462_v31 = vpack.c.bf16 %v398_v29, %v398_v29  ;;  %v360_v29 = vld [vmem:[%s7228_s17 + $0xb0] sm:$0xff] }
  0x1e   : > { %285 = vst [vmem:[#allocation2 + $0x5c] sm:$0xf] %v7141_v1 }
  0x1f   : > { %286 = vst [vmem:[#allocation2 + $0x64] sm:$0xf] %v7141_v1 }
  0x20   : > { %287 = vst [vmem:[#allocation2 + $0x6c] sm:$0xf] %v7141_v1 }
  0x21   : > { %288 = vst [vmem:[#allocation2 + $0x74] sm:$0xf] %v7141_v1  ;;  %859 = vmatpush.bf16.msra.mxu0 %v6702_v9  ;;  %6922 = vmatpush.bf16.msra.mxu3 %v6702_v9  ;;  %v5541_v13 = vld [vmem:[#allocation2 + $0x4] sm:$0xf] }
  0x22   : > { %289 = vst [vmem:[#allocation2 + $0x7c] sm:$0xf] %v7141_v1  ;;  %v6667_v14 = vld [vmem:[#allocation2 + $0x8] sm:$0xf0]  ;;  %v6711_v9 = vld [vmem:[%s9085_s1 + $0x60] sm:$0xff] }
  0x23   : > { %290 = vst [vmem:[#allocation2 + $0x84] sm:$0xf] %v7141_v1  ;;  %v5542_v15 = vor.u32 %v6667_v14, %v5541_v13  ;;  %v396_v14 = vld [vmem:[%s7228_s17 + $0x1d0] sm:$0xff]  ;;  %1193 = vmatpush.bf16.msra.mxu1 %v6711_v9 }
  0x24   : > { %291 = vst [vmem:[#allocation2 + $0x8c] sm:$0xf] %v7141_v1  ;;  %v460_v16 = vpack.c.bf16 %v396_v14, %v396_v14 }
  0x25   : > { %292 = vst [vmem:[#allocation2 + $0x94] sm:$0xf] %v7141_v1  ;;  %860 = vmatpush.bf16.msra.mxu0 %v6701_v10  ;;  %6923 = vmatpush.bf16.msra.mxu3 %v6701_v10  ;;  %v348_v10 = vld [vmem:[%s7228_s17 + $0x50] sm:$0xff] }
  0x26   : > { %293 = vst [vmem:[#allocation2 + $0x9c] sm:$0xf] %v7141_v1 }
  0x27   : > { %294 = vst [vmem:[#allocation2 + $0xa4] sm:$0xf] %v7141_v1 }
  0x28   : > { %295 = vst [vmem:[#allocation2 + $0xac] sm:$0xf] %v7141_v1 }
  0x29   : > { %296 = vst [vmem:[#allocation2 + $0xb4] sm:$0xf] %v7141_v1  ;;  %861 = vmatpush.bf16.msra.mxu0 %v6700_v11  ;;  %6924 = vmatpush.bf16.msra.mxu3 %v6700_v11  ;;  %v349_v11 = vld [vmem:[%s7228_s17 + $0x58] sm:$0xff] }
  0x2a   : > { %297 = vst [vmem:[#allocation2 + $0xbc] sm:$0xf] %v7141_v1  ;;  %v413_v13 = vpack.c.bf16 %v349_v11, %v349_v11 }
  0x2b   : > { %298 = vst [vmem:[#allocation2 + $0xc4] sm:$0xf] %v7141_v1 }
  0x2c   : > { %299 = vst [vmem:[#allocation2 + $0xcc] sm:$0xf] %v7141_v1 }
  0x2d   : > { %300 = vst [vmem:[#allocation2 + $0xd4] sm:$0xf] %v7141_v1  ;;  %862 = vmatpush.bf16.msra.mxu0 %v6699_v12  ;;  %6925 = vmatpush.bf16.msra.mxu3 %v6699_v12  ;;  %v412_v12 = vpack.c.bf16 %v348_v10, %v348_v10  ;;  %v6707_v10 = vld [vmem:[%s9085_s1 + $0x40] sm:$0xff] }
  0x2e   : > { %301 = vst [vmem:[#allocation2 + $0xdc] sm:$0xf] %v7141_v1 }
  0x2f   : > { %302 = vst [vmem:[#allocation2 + $0xe4] sm:$0xf] %v7141_v1 }
  0x30   : > { %303 = vst [vmem:[#allocation2 + $0xec] sm:$0xf] %v7141_v1  ;;  %863 = vmatmul.bf16.vlgmr.msra.gmra.mxu0 %v5542_v15  ;;  %v397_v15 = vld [vmem:[%s7228_s17 + $0x1d8] sm:$0xff] }
  0x31   : > { %304 = vst [vmem:[#allocation2 + $0xf4] sm:$0xf] %v7141_v1  ;;  %6926 = vmatpush.bf16.msrb.mxu3 %v6714_v19  ;;  %v461_v17 = vpack.c.bf16 %v397_v15, %v397_v15 }
  0x32   : > { %305 = vst [vmem:[#allocation2 + $0xfc] sm:$0xf] %v7141_v1 }
  0x33   : > { %306 = vst [vmem:[#allocation2 + $0x104] sm:$0xf] %v7141_v1 }
  0x34   : > { %307 = vst [vmem:[#allocation2 + $0x10c] sm:$0xf] %v7141_v1 }
  0x35   : > { %308 = vst [vmem:[#allocation2 + $0x114] sm:$0xf] %v7141_v1  ;;  %6927 = vmatpush.bf16.msrb.mxu3 %v6713_v43 }
  0x36   : > { %309 = vst [vmem:[#allocation2 + $0x11c] sm:$0xf] %v7141_v1 }
  0x37   : > { %310 = vst [vmem:[#allocation2 + $0x124] sm:$0xf] %v7141_v1 }
  0x38   : > { %311 = vst [vmem:[#allocation2 + $0x12c] sm:$0xf] %v7141_v1 }
  0x39   : > { %312 = vst [vmem:[#allocation2 + $0x134] sm:$0xf] %v7141_v1  ;;  %6928 = vmatpush.bf16.msrb.mxu3 %v6712_v58 }
  0x3a   : > { %313 = vst [vmem:[#allocation2 + $0x13c] sm:$0xf] %v7141_v1 }
  0x3b   : > { %314 = vst [vmem:[#allocation2 + $0x144] sm:$0xf] %v7141_v1 }
  0x3c   : > { %315 = vst [vmem:[#allocation2 + $0x14c] sm:$0xf] %v7141_v1 }
  0x3d   : > { %316 = vst [vmem:[#allocation2 + $0x154] sm:$0xf] %v7141_v1  ;;  %6929 = vmatpush.bf16.msrb.mxu3 %v6711_v9 }
  0x3e   : > { %317 = vst [vmem:[#allocation2 + $0x15c] sm:$0xf] %v7141_v1 }
  0x3f   : > { %318 = vst [vmem:[#allocation2 + $0x164] sm:$0xf] %v7141_v1 }
  0x40   : > { %319 = vst [vmem:[#allocation2 + $0x16c] sm:$0xf] %v7141_v1 }
  0x41   : > { %320 = vst [vmem:[#allocation2 + $0x174] sm:$0xf] %v7141_v1 }
  0x42   : > { %321 = vst [vmem:[#allocation2 + $0x17c] sm:$0xf] %v7141_v1 }
  0x43   : > { %322 = vst [vmem:[#allocation2 + $0x184] sm:$0xf] %v7141_v1 }
  0x44   : > { %323 = vst [vmem:[#allocation2 + $0x18c] sm:$0xf] %v7141_v1 }
  0x45   : > { %324 = vst [vmem:[#allocation2 + $0x194] sm:$0xf] %v7141_v1 }
  0x46   : > { %325 = vst [vmem:[#allocation2 + $0x19c] sm:$0xf] %v7141_v1 }
  0x47   : > { %326 = vst [vmem:[#allocation2 + $0x1a4] sm:$0xf] %v7141_v1 }
  0x48   : > { %327 = vst [vmem:[#allocation2 + $0x1ac] sm:$0xf] %v7141_v1 }
  0x49   : > { %328 = vst [vmem:[#allocation2 + $0x1b4] sm:$0xf] %v7141_v1 }
  0x4a   : > { %329 = vst [vmem:[#allocation2 + $0x1bc] sm:$0xf] %v7141_v1 }
  0x4b   : > { %330 = vst [vmem:[#allocation2 + $0x1c4] sm:$0xf] %v7141_v1 }
  0x4c   : > { %331 = vst [vmem:[#allocation2 + $0x1cc] sm:$0xf] %v7141_v1 }
  0x4d   : > { %332 = vst [vmem:[#allocation2 + $0x1d4] sm:$0xf] %v7141_v1 }
  0x4e   : > { %333 = vst [vmem:[#allocation2 + $0x1dc] sm:$0xf] %v7141_v1 }
  0x4f   : > { %334 = vst [vmem:[#allocation2 + $0x1e4] sm:$0xf] %v7141_v1 }
  0x50   : > { %335 = vst [vmem:[#allocation2 + $0x1ec] sm:$0xf] %v7141_v1 }
  0x51   : > { %336 = vst [vmem:[#allocation2 + $0x1f4] sm:$0xf] %v7141_v1 }
  0x52   : > { %337 = vst [vmem:[#allocation2 + $0x1fc] sm:$0xf] %v7141_v1  ;;  %v458_v1 = vpack.c.bf16 %v394_v63, %v394_v63 }
  0x53   : > { %515 = vst.msk [vmem:[#allocation2 + $0x184] sm:$0xf] %vm466_vm0, %v450_v20 }
  0x54   : > { %516 = vst.msk [vmem:[#allocation2 + $0x18c] sm:$0xf] %vm466_vm0, %v451_v22 }
  0x55   : > { %469 = vst.msk [vmem:[#allocation2 + $0x14] sm:$0xf] %vm466_vm0, %v404_v24  ;;  %v6710_v24 = vld [vmem:[%s9085_s1 + $0x58] sm:$0xff] }
  0x56   : > { %470 = vst.msk [vmem:[#allocation2 + $0x1c] sm:$0xf] %vm466_vm0, %v405_v26  ;;  %v351_v26 = vld [vmem:[%s7228_s17 + $0x68] sm:$0xff]  ;;  %6930 = vmatpush.bf16.msrb.mxu3 %v6710_v24  ;;  %1194 = vmatpush.bf16.msra.mxu1 %v6710_v24 }
  0x57   : > { %517 = vst.msk [vmem:[#allocation2 + $0x194] sm:$0xf] %vm466_vm0, %v452_v28  ;;  %v415_v28 = vpack.c.bf16 %v351_v26, %v351_v26 }
  0x58   : > { %518 = vst.msk [vmem:[#allocation2 + $0x19c] sm:$0xf] %vm466_vm0, %v453_v30  ;;  %v399_v30 = vld [vmem:[%s7228_s17 + $0x1e8] sm:$0xff] }
  0x59   : > { %471 = vst.msk [vmem:[#allocation2 + $0x24] sm:$0xf] %vm466_vm0, %v406_v32  ;;  %v463_v32 = vpack.c.bf16 %v399_v30, %v399_v30  ;;  %v361_v30 = vld [vmem:[%s7228_s17 + $0xb8] sm:$0xff] }
  0x5a   : > { %v5637_v37 = vld [vmem:[#allocation2 + $0x184] sm:$0xf]  ;;  %472 = vst.msk [vmem:[#allocation2 + $0x2c] sm:$0xf] %vm466_vm0, %v407_v34 }
  0x5b   : > { %v6691_v38 = vld [vmem:[#allocation2 + $0x188] sm:$0xf0]  ;;  %519 = vst.msk [vmem:[#allocation2 + $0x1a4] sm:$0xf] %vm466_vm0, %v454_v35 }
  0x5c   : > { %v5638_v39 = vor.u32 %v6691_v38, %v5637_v37  ;;  %v5545_v40 = vld [vmem:[#allocation2 + $0x14] sm:$0xf]  ;;  %520 = vst.msk [vmem:[#allocation2 + $0x1ac] sm:$0xf] %vm466_vm0, %v455_v36 }
  0x5d   : > { %v6668_v41 = vld [vmem:[#allocation2 + $0x18] sm:$0xf0]  ;;  %473 = vst.msk [vmem:[#allocation2 + $0x34] sm:$0xf] %vm466_vm0, %v408_v46  ;;  %v464_v46 = vpack.c.bf16 %v400_v44, %v400_v44 }
  0x5e   : > { %983 = vmatmul.bf16.vlgmr.msra.gmra.mxu3 %v5638_v39  ;;  %v5546_v42 = vor.u32 %v6668_v41, %v5545_v40  ;;  %474 = vst.msk [vmem:[#allocation2 + $0x3c] sm:$0xf] %vm466_vm0, %v409_v47  ;;  %v5641_v52 = vld [vmem:[#allocation2 + $0x194] sm:$0xf]  ;;  %v353_v41 = vld [vmem:[%s7228_s17 + $0x78] sm:$0xff]  ;;  %v465_v47 = vpack.c.bf16 %v401_v45, %v401_v45 }
  0x5f   : > { %521 = vst.msk [vmem:[#allocation2 + $0x1b4] sm:$0xf] %vm466_vm0, %v456_v50  ;;  %v6692_v53 = vld [vmem:[#allocation2 + $0x198] sm:$0xf0]  ;;  %v6709_v39 = vld [vmem:[%s9085_s1 + $0x50] sm:$0xff]  ;;  %v417_v43 = vpack.c.bf16 %v353_v41, %v353_v41 }
  0x60   : > { %868 = vmatmul.bf16.gmra.mxu0 %v5546_v42  ;;  %522 = vst.msk [vmem:[#allocation2 + $0x1bc] sm:$0xf] %vm466_vm0, %v457_v51  ;;  %v5549_v54 = vld [vmem:[#allocation2 + $0x24] sm:$0xf]  ;;  %v5642_v56 = vor.u32 %v6692_v53, %v5641_v52  ;;  %v352_v40 = vld [vmem:[%s7228_s17 + $0x70] sm:$0xff]  ;;  %6931 = vmatpush.bf16.msrb.mxu3 %v6709_v39 }
  0x61   : > { %v6669_v55 = vld [vmem:[#allocation2 + $0x28] sm:$0xf0]  ;;  %475 = vst.msk [vmem:[#allocation2 + $0x44] sm:$0xf] %vm466_vm0, %v410_v61  ;;  %v416_v42 = vpack.c.bf16 %v352_v40, %v352_v40  ;;  %1195 = vmatpush.bf16.msra.mxu1 %v6709_v39 }
  0x62   : > { %v5550_v57 = vor.u32 %v6669_v55, %v5549_v54  ;;  %476 = vst.msk [vmem:[#allocation2 + $0x4c] sm:$0xf] %vm466_vm0, %v411_v62  ;;  %v5645_v3 = vld [vmem:[#allocation2 + $0x1a4] sm:$0xf]  ;;  %v6708_v54 = vld [vmem:[%s9085_s1 + $0x48] sm:$0xff] }
  0x63   : > { %523 = vst.msk [vmem:[#allocation2 + $0x1c4] sm:$0xf] %vm466_vm0, %v458_v1  ;;  %v6693_v4 = vld [vmem:[#allocation2 + $0x1a8] sm:$0xf0]  ;;  %v354_v55 = vld [vmem:[%s7228_s17 + $0x80] sm:$0xff] }
  0x64   : > { %524 = vst.msk [vmem:[#allocation2 + $0x1cc] sm:$0xf] %vm466_vm0, %v459_v2  ;;  %v5553_v5 = vld [vmem:[#allocation2 + $0x34] sm:$0xf]  ;;  %v5646_v7 = vor.u32 %v6693_v4, %v5645_v3  ;;  %6932 = vmatpush.bf16.msrb.mxu3 %v6708_v54  ;;  %v7396_v2 = vld [vmem:[%s9088_s4] ss:$0 sm:$0xff] }
  0x65   : > { %v6670_v6 = vld [vmem:[#allocation2 + $0x38] sm:$0xf0]  ;;  %477 = vst.msk [vmem:[#allocation2 + $0x54] sm:$0xf] %vm466_vm0, %v412_v12  ;;  %1196 = vmatpush.bf16.msra.mxu1 %v6708_v54  ;;  %v356_v3 = vld [vmem:[%s7228_s17 + $0x90] sm:$0xff] }
  0x66   : > { %v5554_v8 = vor.u32 %v6670_v6, %v5553_v5  ;;  %478 = vst.msk [vmem:[#allocation2 + $0x5c] sm:$0xf] %vm466_vm0, %v413_v13  ;;  %v5649_v18 = vld [vmem:[#allocation2 + $0x1b4] sm:$0xf]  ;;  %v357_v4 = vld [vmem:[%s7228_s17 + $0x98] sm:$0xff]  ;;  %v420_v6 = vpack.c.bf16 %v356_v3, %v356_v3 }
  0x67   : > { %525 = vst.msk [vmem:[#allocation2 + $0x1d4] sm:$0xf] %vm466_vm0, %v460_v16  ;;  %v6694_v19 = vld [vmem:[#allocation2 + $0x1b8] sm:$0xf0] }
  0x68   : > { %526 = vst.msk [vmem:[#allocation2 + $0x1dc] sm:$0xf] %vm466_vm0, %v461_v17  ;;  %v5557_v20 = vld [vmem:[#allocation2 + $0x44] sm:$0xf]  ;;  %v5650_v22 = vor.u32 %v6694_v19, %v5649_v18  ;;  %6933 = vmatpush.bf16.msrb.mxu3 %v6707_v10 }
  0x69   : > { %v6671_v21 = vld [vmem:[#allocation2 + $0x48] sm:$0xf0]  ;;  %479 = vst.msk [vmem:[#allocation2 + $0x64] sm:$0xf] %vm466_vm0, %v414_v27  ;;  %1197 = vmatpush.bf16.msra.mxu1 %v6707_v10  ;;  %v364_v10 = vld [vmem:[%s7228_s17 + $0xd0] sm:$0xff] }
  0x6a   : > { %v5558_v23 = vor.u32 %v6671_v21, %v5557_v20  ;;  %480 = vst.msk [vmem:[#allocation2 + $0x6c] sm:$0xf] %vm466_vm0, %v415_v28  ;;  %v5653_v33 = vld [vmem:[#allocation2 + $0x1c4] sm:$0xf]  ;;  %v359_v21 = vld [vmem:[%s7228_s17 + $0xa8] sm:$0xff] }
  0x6b   : > { %527 = vst.msk [vmem:[#allocation2 + $0x1e4] sm:$0xf] %vm466_vm0, %v462_v31  ;;  %v6695_v34 = vld [vmem:[#allocation2 + $0x1c8] sm:$0xf0]  ;;  %v358_v20 = vld [vmem:[%s7228_s17 + $0xa0] sm:$0xff]  ;;  %v424_v31 = vpack.c.bf16 %v360_v29, %v360_v29 }
  0x6c   : > { %528 = vst.msk [vmem:[#allocation2 + $0x1ec] sm:$0xf] %vm466_vm0, %v463_v32  ;;  %v5561_v35 = vld [vmem:[#allocation2 + $0x54] sm:$0xf]  ;;  %v5654_v37 = vor.u32 %v6695_v34, %v5653_v33  ;;  %v425_v32 = vpack.c.bf16 %v361_v30, %v361_v30  ;;  %v6722_v34 = vld [vmem:[%s9085_s1 + $0xb8] sm:$0xff] }
  0x6d   : > { %v6672_v36 = vld [vmem:[#allocation2 + $0x58] sm:$0xf0]  ;;  %481 = vst.msk [vmem:[#allocation2 + $0x74] sm:$0xf] %vm466_vm0, %v416_v42  ;;  %6934 = vmatpush.bf16.msra.mxu3 %v6722_v34  ;;  %1525 = vmatpush.bf16.msra.mxu2 %v6722_v34  ;;  %v366_v34 = vld [vmem:[%s7228_s17 + $0xe0] sm:$0xff] }
  0x6e   : > { %988 = vmatmul.bf16.gmra.mxu3 %v5642_v56  ;;  %v5562_v38 = vor.u32 %v6672_v36, %v5561_v35  ;;  %482 = vst.msk [vmem:[#allocation2 + $0x7c] sm:$0xf] %vm466_vm0, %v417_v43  ;;  %v5657_v48 = vld [vmem:[#allocation2 + $0x1d4] sm:$0xf]  ;;  %v355_v56 = vld [vmem:[%s7228_s17 + $0x88] sm:$0xff] }
  0x6f   : > { %529 = vst.msk [vmem:[#allocation2 + $0x1f4] sm:$0xf] %vm466_vm0, %v464_v46  ;;  %v6696_v49 = vld [vmem:[#allocation2 + $0x1d8] sm:$0xf0]  ;;  %v419_v58 = vpack.c.bf16 %v355_v56, %v355_v56  ;;  %v6721_v56 = vld [vmem:[%s9085_s1 + $0xb0] sm:$0xff] }
  0x70   : > { %873 = vmatmul.bf16.gmra.mxu0 %v5550_v57  ;;  %530 = vst.msk [vmem:[#allocation2 + $0x1fc] sm:$0xf] %vm466_vm0, %v465_v47  ;;  %v5565_v50 = vld [vmem:[#allocation2 + $0x64] sm:$0xf]  ;;  %v5658_v52 = vor.u32 %v6696_v49, %v5657_v48  ;;  %v418_v57 = vpack.c.bf16 %v354_v55, %v354_v55 }
  0x71   : > { %v6673_v51 = vld [vmem:[#allocation2 + $0x68] sm:$0xf0]  ;;  %484 = vst.msk [vmem:[#allocation2 + $0x8c] sm:$0xf] %vm466_vm0, %v419_v58  ;;  %6935 = vmatpush.bf16.msra.mxu3 %v6721_v56  ;;  %1526 = vmatpush.bf16.msra.mxu2 %v6721_v56  ;;  %v368_v56 = vld [vmem:[%s7228_s17 + $0xf0] sm:$0xff] }
  0x72   : > { %v5566_v53 = vor.u32 %v6673_v51, %v5565_v50  ;;  %483 = vst.msk [vmem:[#allocation2 + $0x84] sm:$0xf] %vm466_vm0, %v418_v57  ;;  %v5661_v59 = vld [vmem:[#allocation2 + $0x1e4] sm:$0xf] }
  0x73   : > { %v6697_v60 = vld [vmem:[#allocation2 + $0x1e8] sm:$0xf0]  ;;  %485 = vst.msk [vmem:[#allocation2 + $0x94] sm:$0xf] %vm466_vm0, %v420_v6  ;;  %v362_v51 = vld [vmem:[%s7228_s17 + $0xc0] sm:$0xff] }
  0x74   : > { %v5569_v61 = vld [vmem:[#allocation2 + $0x74] sm:$0xf]  ;;  %v5662_v0 = vor.u32 %v6697_v60, %v5661_v59  ;;  %489 = vst.msk [vmem:[#allocation2 + $0xb4] sm:$0xf] %vm466_vm0, %v424_v31 }
  0x75   : > { %v6674_v62 = vld [vmem:[#allocation2 + $0x78] sm:$0xf0]  ;;  %490 = vst.msk [vmem:[#allocation2 + $0xbc] sm:$0xf] %vm466_vm0, %v425_v32 }
  0x76   : > { %v5570_v1 = vor.u32 %v6674_v62, %v5569_v61  ;;  %v5665_v13 = vld [vmem:[#allocation2 + $0x1f4] sm:$0xf] }
  0x77   : > { %v6698_v14 = vld [vmem:[#allocation2 + $0x1f8] sm:$0xf0] }
  0x78   : > { %v6675_v17 = vld [vmem:[#allocation2 + $0x88] sm:$0xf0]  ;;  %v5666_v18 = vor.u32 %v6698_v14, %v5665_v13 }
  0x79   : > { %v5573_v16 = vld [vmem:[#allocation2 + $0x84] sm:$0xf] }
  0x7a   : > { %v5574_v19 = vor.u32 %v6675_v17, %v5573_v16  ;;  %v5577_v24 = vld [vmem:[#allocation2 + $0x94] sm:$0xf]  ;;  %v6810_v16 = vld [vmem:[%s9086_s2 + $0x78] sm:$0xff]  ;;  %v6720_v17 = vld [vmem:[%s9085_s1 + $0xa8] sm:$0xff] }
  0x7b   : > { %2907 = vmatpush.bf16.msrb.mxu1 %v6810_v16  ;;  %6936 = vmatpush.bf16.msra.mxu3 %v6720_v17  ;;  %v371_v16 = vld [vmem:[%s7228_s17 + $0x108] sm:$0xff] }
  0x7c   : > { %1527 = vmatpush.bf16.msra.mxu2 %v6720_v17 }
  0x7e   : > { %993 = vmatmul.bf16.gmra.mxu3 %v5646_v7  ;;  %v421_v7 = vpack.c.bf16 %v357_v4, %v357_v4 }
  0x80   : > { %878 = vmatmul.bf16.gmra.mxu0 %v5554_v8  ;;  %486 = vst.msk [vmem:[#allocation2 + $0x9c] sm:$0xf] %vm466_vm0, %v421_v7 }
  0x87   : > { %v6676_v25 = vld [vmem:[#allocation2 + $0x98] sm:$0xf0] }
  0x88   : > { %v5578_v26 = vor.u32 %v6676_v25, %v5577_v24 }
  0x8e   : > { %998 = vmatmul.bf16.gmra.mxu3 %v5650_v22  ;;  %v422_v22 = vpack.c.bf16 %v358_v20, %v358_v20 }
  0x90   : > { %883 = vmatmul.bf16.gmra.mxu0 %v5558_v23  ;;  %v423_v23 = vpack.c.bf16 %v359_v21, %v359_v21  ;;  %487 = vst.msk [vmem:[#allocation2 + $0xa4] sm:$0xf] %vm466_vm0, %v422_v22 }
  0x92   : > { %488 = vst.msk [vmem:[#allocation2 + $0xac] sm:$0xf] %vm466_vm0, %v423_v23 }
  0x97   : > { %v5581_v41 = vld [vmem:[#allocation2 + $0xa4] sm:$0xf] }
  0x99   : > { %v6677_v42 = vld [vmem:[#allocation2 + $0xa8] sm:$0xf0] }
  0x9a   : > { %v5582_v47 = vor.u32 %v6677_v42, %v5581_v41 }
  0x9e   : > { %1003 = vmatmul.bf16.gmra.mxu3 %v5654_v37 }
  0xa0   : > { %888 = vmatmul.bf16.gmra.mxu0 %v5562_v38 }
  0xad   : > { %v864_v63 = vpop.f32.mrf.mxu0 }
  0xae   : > { %1008 = vmatmul.bf16.gmra.mxu3 %v5658_v52  ;;  %v865_v5 = vadd.f32 %v7396_v2, %v864_v63  ;;  %v363_v52 = vld [vmem:[%s7228_s17 + $0xc8] sm:$0xff]  ;;  %v5585_v63 = vld [vmem:[#allocation2 + $0xb4] sm:$0xf] }
  0xaf   : > { %v427_v54 = vpack.c.bf16 %v363_v52, %v363_v52 }
  0xb0   : > { %893 = vmatmul.bf16.gmra.mxu0 %v5566_v53  ;;  %v1024_v11 = vmax.f32 %v865_v5, 0.0  ;;  %v426_v53 = vpack.c.bf16 %v362_v51, %v362_v51 }
  0xb1   : > { %492 = vst.msk [vmem:[#allocation2 + $0xcc] sm:$0xf] %vm466_vm0, %v427_v54 }
  0xb2   : > { %491 = vst.msk [vmem:[#allocation2 + $0xc4] sm:$0xf] %vm466_vm0, %v426_v53 }
  0xb5   : > { %v866_v8 = vpop.f32.mrf.mxu0 }
  0xb6   : > { %v867_v9 = vadd.f32 %v7396_v2, %v866_v8 }
  0xb8   : > { %v1025_v12 = vmax.f32 %v867_v9, 0.0  ;;  %v6679_v25 = vld [vmem:[#allocation2 + $0xc8] sm:$0xf0] }
  0xb9   : > { %v5589_v24 = vld [vmem:[#allocation2 + $0xc4] sm:$0xf] }
  0xba   : > { %v1088_v15 = vpack.c.bf16 %v1025_v12, %v1024_v11  ;;  %v365_v11 = vld [vmem:[%s7228_s17 + $0xd8] sm:$0xff]  ;;  %v428_v12 = vpack.c.bf16 %v364_v10, %v364_v10  ;;  %v5590_v30 = vor.u32 %v6679_v25, %v5589_v24 }
  0xbb   : > { %v429_v13 = vpack.c.bf16 %v365_v11, %v365_v11 }
  0xbc   : > { %1198 = vmatmul.bf16.vlgmr.msra.gmra.mxu1 %v1088_v15  ;;  %v6802_v15 = vld [vmem:[%s9086_s2 + $0x38] sm:$0xff]  ;;  %493 = vst.msk [vmem:[#allocation2 + $0xd4] sm:$0xf] %vm466_vm0, %v428_v12 }
  0xbd   : > { %494 = vst.msk [vmem:[#allocation2 + $0xdc] sm:$0xf] %vm466_vm0, %v429_v13  ;;  %2738 = vmatpush.bf16.msrb.mxu0 %v6802_v15  ;;  %v370_v15 = vld [vmem:[%s7228_s17 + $0x100] sm:$0xff] }
  0xbe   : > { %1013 = vmatmul.bf16.gmra.mxu3 %v5662_v0  ;;  %v6678_v0 = vld [vmem:[#allocation2 + $0xb8] sm:$0xf0]  ;;  %v434_v17 = vpack.c.bf16 %v370_v15, %v370_v15 }
  0xbf   : > { %v5586_v6 = vor.u32 %v6678_v0, %v5585_v63 }
  0xc0   : > { %898 = vmatmul.bf16.gmra.mxu0 %v5570_v1  ;;  %499 = vst.msk [vmem:[#allocation2 + $0x104] sm:$0xf] %vm466_vm0, %v434_v17 }
  0xce   : > { %1018 = vmatmul.bf16.gmra.mxu3 %v5666_v18 }
  0xd0   : > { %903 = vmatmul.bf16.gmra.mxu0 %v5574_v19 }
  0xdd   : > { %v869_v27 = vpop.f32.mrf.mxu0 }
  0xde   : > { %v870_v33 = vadd.f32 %v7396_v2, %v869_v27 }
  0xe0   : > { %908 = vmatmul.bf16.gmra.mxu0 %v5578_v26  ;;  %v1026_v38 = vmax.f32 %v870_v33, 0.0 }
  0xe1   : > { %v984_v28 = vpop.f32.mrf.mxu3 }
  0xe2   : > { %v985_v37 = vadd.f32 %v7396_v2, %v984_v28 }
  0xe4   : > { %v1072_v45 = vmax.f32 %v985_v37, 0.0 }
  0xe5   : > { %v871_v35 = vpop.f32.mrf.mxu0 }
  0xe6   : > { %v872_v36 = vadd.f32 %v7396_v2, %v871_v35  ;;  %v367_v35 = vld [vmem:[%s7228_s17 + $0xe8] sm:$0xff] }
  0xe7   : > { %v431_v37 = vpack.c.bf16 %v367_v35, %v367_v35 }
  0xe8   : > { %v1027_v39 = vmax.f32 %v872_v36, 0.0  ;;  %v430_v36 = vpack.c.bf16 %v366_v34, %v366_v34 }
  0xe9   : > { %v986_v40 = vpop.f32.mrf.mxu3  ;;  %496 = vst.msk [vmem:[#allocation2 + $0xec] sm:$0xf] %vm466_vm0, %v431_v37 }
  0xea   : > { %v987_v43 = vadd.f32 %v7396_v2, %v986_v40  ;;  %v1089_v44 = vpack.c.bf16 %v1027_v39, %v1026_v38  ;;  %v6719_v39 = vld [vmem:[%s9085_s1 + $0xa0] sm:$0xff]  ;;  %495 = vst.msk [vmem:[#allocation2 + $0xe4] sm:$0xf] %vm466_vm0, %v430_v36 }
  0xeb   : > { %6937 = vmatpush.bf16.msra.mxu3 %v6719_v39  ;;  %1528 = vmatpush.bf16.msra.mxu2 %v6719_v39  ;;  %v372_v39 = vld [vmem:[%s7228_s17 + $0x110] sm:$0xff] }
  0xec   : > { %v1073_v46 = vmax.f32 %v987_v43, 0.0  ;;  %1203 = vmatmul.bf16.gmra.mxu1 %v1089_v44 }
  0xed   : > { %v874_v48 = vpop.f32.mrf.mxu0 }
  0xee   : > { %v1112_v49 = vpack.c.bf16 %v1073_v46, %v1072_v45  ;;  %v875_v55 = vadd.f32 %v7396_v2, %v874_v48  ;;  %v5593_v46 = vld [vmem:[#allocation2 + $0xd4] sm:$0xf] }
  0xf0   : > { %1318 = vmatmul.bf16.vlgmr.msrb.gmra.mxu3 %v1112_v49  ;;  %913 = vmatmul.bf16.gmra.mxu0 %v5582_v47  ;;  %v1028_v60 = vmax.f32 %v875_v55, 0.0  ;;  %v6680_v47 = vld [vmem:[#allocation2 + $0xd8] sm:$0xf0] }
  0xf1   : > { %v989_v50 = vpop.f32.mrf.mxu3  ;;  %v5594_v52 = vor.u32 %v6680_v47, %v5593_v46 }
  0xf2   : > { %v990_v59 = vadd.f32 %v7396_v2, %v989_v50 }
  0xf4   : > { %v1074_v4 = vmax.f32 %v990_v59, 0.0 }
  0xf5   : > { %v876_v57 = vpop.f32.mrf.mxu0 }
  0xf6   : > { %v877_v58 = vadd.f32 %v7396_v2, %v876_v57  ;;  %v369_v57 = vld [vmem:[%s7228_s17 + $0xf8] sm:$0xff] }
  0xf7   : > { %v433_v59 = vpack.c.bf16 %v369_v57, %v369_v57 }
  0xf8   : > { %v1029_v61 = vmax.f32 %v877_v58, 0.0  ;;  %v432_v58 = vpack.c.bf16 %v368_v56, %v368_v56  ;;  %v7503_v56 = vld [vmem:[%s9088_s4 + $0x1] ss:$0 sm:$0xff] }
  0xf9   : > { %v991_v62 = vpop.f32.mrf.mxu3  ;;  %498 = vst.msk [vmem:[#allocation2 + $0xfc] sm:$0xf] %vm466_vm0, %v433_v59 }
  0xfa   : > { %v992_v1 = vadd.f32 %v7396_v2, %v991_v62  ;;  %v1090_v3 = vpack.c.bf16 %v1029_v61, %v1028_v60  ;;  %v6718_v61 = vld [vmem:[%s9085_s1 + $0x98] sm:$0xff]  ;;  %497 = vst.msk [vmem:[#allocation2 + $0xf4] sm:$0xf] %vm466_vm0, %v432_v58 }
  0xfb   : > { %6938 = vmatpush.bf16.msra.mxu3 %v6718_v61  ;;  %1529 = vmatpush.bf16.msra.mxu2 %v6718_v61 }
  0xfc   : > { %v1075_v5 = vmax.f32 %v992_v1, 0.0  ;;  %1208 = vmatmul.bf16.gmra.mxu1 %v1090_v3 }
  0xfd   : > { %v879_v7 = vpop.f32.mrf.mxu0 }
  0xfe   : > { %v1113_v8 = vpack.c.bf16 %v1075_v5, %v1074_v4  ;;  %v880_v14 = vadd.f32 %v7396_v2, %v879_v7  ;;  %v5597_v5 = vld [vmem:[#allocation2 + $0xe4] sm:$0xf] }
 0x100   : > { %1323 = vmatmul.bf16.gmra.mxu3 %v1113_v8  ;;  %918 = vmatmul.bf16.gmra.mxu0 %v5586_v6  ;;  %v1030_v21 = vmax.f32 %v880_v14, 0.0  ;;  %v6681_v6 = vld [vmem:[#allocation2 + $0xe8] sm:$0xf0] }
 0x101   : > { %v994_v9 = vpop.f32.mrf.mxu3  ;;  %v5598_v11 = vor.u32 %v6681_v6, %v5597_v5  ;;  %v375_v5 = vld [vmem:[%s7228_s17 + $0x128] sm:$0xff] }
 0x102   : > { %v995_v20 = vadd.f32 %v7396_v2, %v994_v9 }
 0x104   : > { %v1076_v28 = vmax.f32 %v995_v20, 0.0  ;;  %v6801_v20 = vld [vmem:[%s9086_s2 + $0x30] sm:$0xff] }
 0x105   : > { %v881_v18 = vpop.f32.mrf.mxu0  ;;  %2739 = vmatpush.bf16.msrb.mxu0 %v6801_v20 }
 0x106   : > { %v882_v19 = vadd.f32 %v7396_v2, %v881_v18  ;;  %v435_v18 = vpack.c.bf16 %v371_v16, %v371_v16 }
 0x108   : > { %v1031_v22 = vmax.f32 %v882_v19, 0.0  ;;  %500 = vst.msk [vmem:[#allocation2 + $0x10c] sm:$0xf] %vm466_vm0, %v435_v18 }
 0x109   : > { %v996_v23 = vpop.f32.mrf.mxu3 }
 0x10a   : > { %v997_v26 = vadd.f32 %v7396_v2, %v996_v23  ;;  %v1091_v27 = vpack.c.bf16 %v1031_v22, %v1030_v21  ;;  %v6809_v21 = vld [vmem:[%s9086_s2 + $0x70] sm:$0xff] }
 0x10b   : > { %v6717_v22 = vld [vmem:[%s9085_s1 + $0x90] sm:$0xff]  ;;  %2908 = vmatpush.bf16.msrb.mxu1 %v6809_v21 }
 0x10c   : > { %v1077_v29 = vmax.f32 %v997_v26, 0.0  ;;  %1213 = vmatmul.bf16.gmra.mxu1 %v1091_v27  ;;  %6939 = vmatpush.bf16.msra.mxu3 %v6717_v22 }
 0x10d   : > { %v884_v31 = vpop.f32.mrf.mxu0  ;;  %1530 = vmatpush.bf16.msra.mxu2 %v6717_v22 }
 0x10e   : > { %v1114_v32 = vpack.c.bf16 %v1077_v29, %v1076_v28  ;;  %v885_v38 = vadd.f32 %v7396_v2, %v884_v31  ;;  %v5601_v29 = vld [vmem:[#allocation2 + $0xf4] sm:$0xf] }
 0x110   : > { %1328 = vmatmul.bf16.gmra.mxu3 %v1114_v32  ;;  %923 = vmatmul.bf16.gmra.mxu0 %v5590_v30  ;;  %v1032_v43 = vmax.f32 %v885_v38, 0.0  ;;  %v6682_v30 = vld [vmem:[#allocation2 + $0xf8] sm:$0xf0]  ;;  %v6716_v38 = vld [vmem:[%s9085_s1 + $0x88] sm:$0xff] }
 0x111   : > { %v999_v33 = vpop.f32.mrf.mxu3  ;;  %v5602_v35 = vor.u32 %v6682_v30, %v5601_v29  ;;  %6940 = vmatpush.bf16.msra.mxu3 %v6716_v38  ;;  %1531 = vmatpush.bf16.msra.mxu2 %v6716_v38 }
 0x112   : > { %v1000_v42 = vadd.f32 %v7396_v2, %v999_v33 }
 0x114   : > { %v1078_v50 = vmax.f32 %v1000_v42, 0.0  ;;  %v436_v42 = vpack.c.bf16 %v372_v39, %v372_v39 }
 0x115   : > { %v886_v40 = vpop.f32.mrf.mxu0 }
 0x116   : > { %v887_v41 = vadd.f32 %v7396_v2, %v886_v40  ;;  %501 = vst.msk [vmem:[#allocation2 + $0x114] sm:$0xf] %vm466_vm0, %v436_v42 }
 0x118   : > { %v1033_v44 = vmax.f32 %v887_v41, 0.0  ;;  %v373_v41 = vld [vmem:[%s7228_s17 + $0x118] sm:$0xff] }
 0x119   : > { %v1001_v45 = vpop.f32.mrf.mxu3 }
 0x11a   : > { %v1002_v48 = vadd.f32 %v7396_v2, %v1001_v45  ;;  %v1092_v49 = vpack.c.bf16 %v1033_v44, %v1032_v43  ;;  %v437_v43 = vpack.c.bf16 %v373_v41, %v373_v41 }
 0x11c   : > { %v1079_v51 = vmax.f32 %v1002_v48, 0.0  ;;  %1218 = vmatmul.bf16.gmra.mxu1 %v1092_v49  ;;  %502 = vst.msk [vmem:[#allocation2 + $0x11c] sm:$0xf] %vm466_vm0, %v437_v43 }
 0x11d   : > { %v889_v53 = vpop.f32.mrf.mxu0  ;;  %v5609_v18 = vld [vmem:[#allocation2 + $0x114] sm:$0xf] }
 0x11e   : > { %v1115_v54 = vpack.c.bf16 %v1079_v51, %v1078_v50  ;;  %v890_v60 = vadd.f32 %v7396_v2, %v889_v53  ;;  %v6683_v53 = vld [vmem:[#allocation2 + $0x108] sm:$0xf0] }
 0x120   : > { %1333 = vmatmul.bf16.gmra.mxu3 %v1115_v54  ;;  %928 = vmatmul.bf16.gmra.mxu0 %v5594_v52  ;;  %v1034_v1 = vmax.f32 %v890_v60, 0.0  ;;  %v5605_v52 = vld [vmem:[#allocation2 + $0x104] sm:$0xf] }
 0x121   : > { %v1004_v55 = vpop.f32.mrf.mxu3  ;;  %v5606_v59 = vor.u32 %v6683_v53, %v5605_v52 }
 0x122   : > { %v1005_v0 = vadd.f32 %v7396_v2, %v1004_v55 }
 0x124   : > { %v1080_v9 = vmax.f32 %v1005_v0, 0.0 }
 0x125   : > { %v891_v62 = vpop.f32.mrf.mxu0 }
 0x126   : > { %v892_v63 = vadd.f32 %v7396_v2, %v891_v62 }
 0x128   : > { %v1035_v3 = vmax.f32 %v892_v63, 0.0 }
 0x129   : > { %v1006_v4 = vpop.f32.mrf.mxu3 }
 0x12a   : > { %v1007_v7 = vadd.f32 %v7396_v2, %v1006_v4  ;;  %v1093_v8 = vpack.c.bf16 %v1035_v3, %v1034_v1  ;;  %v6715_v3 = vld [vmem:[%s9085_s1 + $0x80] sm:$0xff] }
 0x12b   : > { %v374_v4 = vld [vmem:[%s7228_s17 + $0x120] sm:$0xff]  ;;  %1532 = vmatpush.bf16.msra.mxu2 %v6715_v3  ;;  %6941 = vmatpush.bf16.msra.mxu3 %v6715_v3 }
 0x12c   : > { %v1081_v10 = vmax.f32 %v1007_v7, 0.0  ;;  %1223 = vmatmul.bf16.gmra.mxu1 %v1093_v8  ;;  %v438_v8 = vpack.c.bf16 %v374_v4, %v374_v4 }
 0x12d   : > { %v894_v12 = vpop.f32.mrf.mxu0 }
 0x12e   : > { %v1116_v13 = vpack.c.bf16 %v1081_v10, %v1080_v9  ;;  %v895_v19 = vadd.f32 %v7396_v2, %v894_v12  ;;  %v439_v9 = vpack.c.bf16 %v375_v5, %v375_v5  ;;  %503 = vst.msk [vmem:[#allocation2 + $0x124] sm:$0xf] %vm466_vm0, %v438_v8 }
 0x130   : > { %1338 = vmatmul.bf16.gmra.mxu3 %v1116_v13  ;;  %933 = vmatmul.bf16.gmra.mxu0 %v5598_v11  ;;  %v1036_v26 = vmax.f32 %v895_v19, 0.0  ;;  %504 = vst.msk [vmem:[#allocation2 + $0x12c] sm:$0xf] %vm466_vm0, %v439_v9  ;;  %v6684_v19 = vld [vmem:[#allocation2 + $0x118] sm:$0xf0] }
 0x131   : > { %v1009_v14 = vpop.f32.mrf.mxu3 }
 0x132   : > { %v1010_v25 = vadd.f32 %v7396_v2, %v1009_v14 }
 0x134   : > { %v1082_v33 = vmax.f32 %v1010_v25, 0.0 }
 0x135   : > { %v896_v23 = vpop.f32.mrf.mxu0 }
 0x136   : > { %v897_v24 = vadd.f32 %v7396_v2, %v896_v23 }
 0x137   : > { %v6685_v41 = vld [vmem:[#allocation2 + $0x128] sm:$0xf0] }
 0x138   : > { %v1037_v27 = vmax.f32 %v897_v24, 0.0  ;;  %v5610_v24 = vor.u32 %v6684_v19, %v5609_v18 }
 0x139   : > { %v1011_v28 = vpop.f32.mrf.mxu3  ;;  %v1199_v47 = vpop.f32.mrf.mxu1 }
 0x13a   : > { %v1012_v31 = vadd.f32 %v7396_v2, %v1011_v28  ;;  %v1094_v32 = vpack.c.bf16 %v1037_v27, %v1036_v26  ;;  %v1200_v62 = vadd.f32 %v7503_v56, %v1199_v47  ;;  %v376_v27 = vld [vmem:[%s7228_s17 + $0x130] sm:$0xff]  ;;  %v377_v28 = vld [vmem:[%s7228_s17 + $0x138] sm:$0xff]  ;;  %v378_v47 = vld [vmem:[%s7228_s17 + $0x140] sm:$0xff] }
 0x13b   : > { %v440_v29 = vpack.c.bf16 %v376_v27, %v376_v27  ;;  %v441_v30 = vpack.c.bf16 %v377_v28, %v377_v28 }
 0x13c   : > { %v1083_v34 = vmax.f32 %v1012_v31, 0.0  ;;  %1228 = vmatmul.bf16.gmra.mxu1 %v1094_v32  ;;  %v1359_v6 = vmax.f32 %v1200_v62, 0.0 }
 0x13d   : > { %v899_v36 = vpop.f32.mrf.mxu0  ;;  %505 = vst.msk [vmem:[#allocation2 + $0x134] sm:$0xf] %vm466_vm0, %v440_v29 }
 0x13e   : > { %v1117_v37 = vpack.c.bf16 %v1083_v34, %v1082_v33  ;;  %v900_v44 = vadd.f32 %v7396_v2, %v899_v36  ;;  %506 = vst.msk [vmem:[#allocation2 + $0x13c] sm:$0xf] %vm466_vm0, %v441_v30  ;;  %v6800_v34 = vld [vmem:[%s9086_s2 + $0x28] sm:$0xff]  ;;  %v6730_v36 = vld [vmem:[%s9085_s1 + $0xf8] sm:$0xff] }
 0x13f   : > { %2740 = vmatpush.bf16.msrb.mxu0 %v6800_v34  ;;  %1860 = vmatpush.bf16.msrb.mxu3 %v6730_v36 }
 0x140   : > { %1343 = vmatmul.bf16.gmra.mxu3 %v1117_v37  ;;  %938 = vmatmul.bf16.gmra.mxu0 %v5602_v35  ;;  %v1038_v49 = vmax.f32 %v900_v44, 0.0  ;;  %v6808_v35 = vld [vmem:[%s9086_s2 + $0x68] sm:$0xff] }
 0x141   : > { %v1014_v40 = vpop.f32.mrf.mxu3  ;;  %v1201_v63 = vpop.f32.mrf.mxu1  ;;  %2909 = vmatpush.bf16.msrb.mxu1 %v6808_v35 }
 0x142   : > { %v1015_v48 = vadd.f32 %v7396_v2, %v1014_v40  ;;  %v1202_v0 = vadd.f32 %v7503_v56, %v1201_v63  ;;  %v5613_v40 = vld [vmem:[#allocation2 + $0x124] sm:$0xf] }
 0x143   : > { %v5614_v43 = vor.u32 %v6685_v41, %v5613_v40 }
 0x144   : > { %v1084_v57 = vmax.f32 %v1015_v48, 0.0  ;;  %v1360_v7 = vmax.f32 %v1202_v0, 0.0  ;;  %v379_v48 = vld [vmem:[%s7228_s17 + $0x148] sm:$0xff]  ;;  %v5617_v0 = vld [vmem:[#allocation2 + $0x134] sm:$0xf] }
 0x145   : > { %v901_v45 = vpop.f32.mrf.mxu0 }
 0x146   : > { %v902_v46 = vadd.f32 %v7396_v2, %v901_v45  ;;  %v1423_v11 = vpack.c.bf16 %v1360_v7, %v1359_v6 }
 0x148   : > { %v1039_v50 = vmax.f32 %v902_v46, 0.0  ;;  %1533 = vmatmul.bf16.vlgmr.msra.gmra.mxu2 %v1423_v11 }
 0x149   : > { %v1016_v51 = vpop.f32.mrf.mxu3 }
 0x14a   : > { %v1017_v54 = vadd.f32 %v7396_v2, %v1016_v51  ;;  %v1095_v55 = vpack.c.bf16 %v1039_v50, %v1038_v49  ;;  %v442_v50 = vpack.c.bf16 %v378_v47, %v378_v47  ;;  %v443_v51 = vpack.c.bf16 %v379_v48, %v379_v48 }
 0x14c   : > { %v1085_v58 = vmax.f32 %v1017_v54, 0.0  ;;  %1233 = vmatmul.bf16.gmra.mxu1 %v1095_v55  ;;  %507 = vst.msk [vmem:[#allocation2 + $0x144] sm:$0xf] %vm466_vm0, %v442_v50 }
 0x14d   : > { %v904_v60 = vpop.f32.mrf.mxu0  ;;  %508 = vst.msk [vmem:[#allocation2 + $0x14c] sm:$0xf] %vm466_vm0, %v443_v51 }
 0x14e   : > { %v1118_v61 = vpack.c.bf16 %v1085_v58, %v1084_v57  ;;  %v905_v10 = vadd.f32 %v7396_v2, %v904_v60  ;;  %v6729_v60 = vld [vmem:[%s9085_s1 + $0xf0] sm:$0xff] }
 0x14f   : > { %1861 = vmatpush.bf16.msrb.mxu3 %v6729_v60 }
 0x150   : > { %1348 = vmatmul.bf16.gmra.mxu3 %v1118_v61  ;;  %943 = vmatmul.bf16.gmra.mxu0 %v5606_v59  ;;  %v1040_v15 = vmax.f32 %v905_v10, 0.0 }
 0x151   : > { %v1019_v1 = vpop.f32.mrf.mxu3 }
 0x152   : > { %v1020_v14 = vadd.f32 %v7396_v2, %v1019_v1  ;;  %v6686_v1 = vld [vmem:[#allocation2 + $0x138] sm:$0xf0] }
 0x153   : > { %v5618_v7 = vor.u32 %v6686_v1, %v5617_v0  ;;  %v5621_v30 = vld [vmem:[#allocation2 + $0x144] sm:$0xf] }
 0x154   : > { %v1086_v22 = vmax.f32 %v1020_v14, 0.0  ;;  %v380_v14 = vld [vmem:[%s7228_s17 + $0x150] sm:$0xff] }
 0x155   : > { %v906_v12 = vpop.f32.mrf.mxu0 }
 0x156   : > { %v907_v13 = vadd.f32 %v7396_v2, %v906_v12 }
 0x158   : > { %v1041_v16 = vmax.f32 %v907_v13, 0.0 }
 0x159   : > { %v1021_v17 = vpop.f32.mrf.mxu3 }
 0x15a   : > { %v1022_v20 = vadd.f32 %v7396_v2, %v1021_v17  ;;  %v1096_v21 = vpack.c.bf16 %v1041_v16, %v1040_v15  ;;  %v381_v15 = vld [vmem:[%s7228_s17 + $0x158] sm:$0xff]  ;;  %v444_v17 = vpack.c.bf16 %v380_v14, %v380_v14 }
 0x15b   : > { %v445_v18 = vpack.c.bf16 %v381_v15, %v381_v15  ;;  %v385_v14 = vld [vmem:[%s7228_s17 + $0x178] sm:$0xff] }
 0x15c   : > { %v1087_v23 = vmax.f32 %v1022_v20, 0.0  ;;  %1238 = vmatmul.bf16.gmra.mxu1 %v1096_v21  ;;  %509 = vst.msk [vmem:[#allocation2 + $0x154] sm:$0xf] %vm466_vm0, %v444_v17  ;;  %v449_v17 = vpack.c.bf16 %v385_v14, %v385_v14  ;;  %v6798_v14 = vld [vmem:[%s9086_s2 + $0x18] sm:$0xff] }
 0x15d   : > { %v909_v25 = vpop.f32.mrf.mxu0  ;;  %510 = vst.msk [vmem:[#allocation2 + $0x15c] sm:$0xf] %vm466_vm0, %v445_v18 }
 0x15e   : > { %v1119_v26 = vpack.c.bf16 %v1087_v23, %v1086_v22  ;;  %v910_v31 = vadd.f32 %v7396_v2, %v909_v25  ;;  %514 = vst.msk [vmem:[#allocation2 + $0x17c] sm:$0xf] %vm466_vm0, %v449_v17 }
 0x160   : > { %1353 = vmatmul.bf16.gmra.mxu3 %v1119_v26  ;;  %948 = vmatmul.bf16.gmra.mxu0 %v5610_v24  ;;  %v1042_v37 = vmax.f32 %v910_v31, 0.0  ;;  %v6728_v26 = vld [vmem:[%s9085_s1 + $0xe8] sm:$0xff] }
 0x161   : > { %1862 = vmatpush.bf16.msrb.mxu3 %v6728_v26  ;;  %v6687_v31 = vld [vmem:[#allocation2 + $0x148] sm:$0xf0] }
 0x162   : > { %v5622_v36 = vor.u32 %v6687_v31, %v5621_v30 }
 0x164   : > { %v6688_v0 = vld [vmem:[#allocation2 + $0x158] sm:$0xf0] }
 0x165   : > { %v911_v32 = vpop.f32.mrf.mxu0 }
 0x166   : > { %v912_v33 = vadd.f32 %v7396_v2, %v911_v32 }
 0x168   : > { %v1043_v38 = vmax.f32 %v912_v33, 0.0 }
 0x169   : > { %v1204_v39 = vpop.f32.mrf.mxu1 }
 0x16a   : > { %v1097_v42 = vpack.c.bf16 %v1043_v38, %v1042_v37  ;;  %v1205_v45 = vadd.f32 %v7503_v56, %v1204_v39 }
 0x16c   : > { %1243 = vmatmul.bf16.gmra.mxu1 %v1097_v42  ;;  %v1361_v53 = vmax.f32 %v1205_v45, 0.0 }
 0x16d   : > { %v914_v44 = vpop.f32.mrf.mxu0 }
 0x16e   : > { %v915_v54 = vadd.f32 %v7396_v2, %v914_v44  ;;  %v383_v44 = vld [vmem:[%s7228_s17 + $0x168] sm:$0xff] }
 0x16f   : > { %v447_v48 = vpack.c.bf16 %v383_v44, %v383_v44 }
 0x170   : > { %953 = vmatmul.bf16.gmra.mxu0 %v5614_v43  ;;  %v1044_v61 = vmax.f32 %v915_v54, 0.0  ;;  %v382_v43 = vld [vmem:[%s7228_s17 + $0x160] sm:$0xff] }
 0x171   : > { %v1206_v46 = vpop.f32.mrf.mxu1  ;;  %v446_v47 = vpack.c.bf16 %v382_v43, %v382_v43  ;;  %512 = vst.msk [vmem:[#allocation2 + $0x16c] sm:$0xf] %vm466_vm0, %v447_v48 }
 0x172   : > { %v1207_v49 = vadd.f32 %v7503_v56, %v1206_v46  ;;  %v6818_v46 = vld [vmem:[%s9085_s1 + $0x138] sm:$0xff] }
 0x173   : > { %v1319_v52 = vpop.f32.mrf.mxu3  ;;  %3242 = vmatpush.bf16.msrb.mxu2 %v6818_v46  ;;  %511 = vst.msk [vmem:[#allocation2 + $0x164] sm:$0xf] %vm466_vm0, %v446_v47 }
 0x174   : > { %v1362_v55 = vmax.f32 %v1207_v49, 0.0  ;;  %v1320_v3 = vadd.f32 %v7503_v56, %v1319_v52 }
 0x175   : > { %v916_v57 = vpop.f32.mrf.mxu0 }
 0x176   : > { %v917_v58 = vadd.f32 %v7396_v2, %v916_v57  ;;  %v1424_v59 = vpack.c.bf16 %v1362_v55, %v1361_v53  ;;  %v1407_v9 = vmax.f32 %v1320_v3, 0.0  ;;  %v6799_v57 = vld [vmem:[%s9086_s2 + $0x20] sm:$0xff] }
 0x177   : > { %2741 = vmatpush.bf16.msrb.mxu0 %v6799_v57 }
 0x178   : > { %v1045_v62 = vmax.f32 %v917_v58, 0.0  ;;  %1538 = vmatmul.bf16.gmra.mxu2 %v1424_v59  ;;  %v6807_v58 = vld [vmem:[%s9086_s2 + $0x60] sm:$0xff]  ;;  %v6689_v30 = vld [vmem:[#allocation2 + $0x168] sm:$0xf0] }
 0x179   : > { %v1209_v63 = vpop.f32.mrf.mxu1  ;;  %v6727_v59 = vld [vmem:[%s9085_s1 + $0xe0] sm:$0xff]  ;;  %2910 = vmatpush.bf16.msrb.mxu1 %v6807_v58 }
 0x17a   : > { %v1098_v4 = vpack.c.bf16 %v1045_v62, %v1044_v61  ;;  %v1210_v12 = vadd.f32 %v7503_v56, %v1209_v63  ;;  %v5625_v63 = vld [vmem:[#allocation2 + $0x154] sm:$0xf]  ;;  %1863 = vmatpush.bf16.msrb.mxu3 %v6727_v59 }
 0x17b   : > { %v1321_v5 = vpop.f32.mrf.mxu3  ;;  %2742 = vmatpush.bf16.msrb.mxu0 %v6798_v14 }
 0x17c   : > { %v1322_v6 = vadd.f32 %v7503_v56, %v1321_v5  ;;  %1248 = vmatmul.bf16.gmra.mxu1 %v1098_v4  ;;  %v1363_v20 = vmax.f32 %v1210_v12, 0.0 }
 0x17d   : > { %v919_v8 = vpop.f32.mrf.mxu0 }
 0x17e   : > { %v1408_v10 = vmax.f32 %v1322_v6, 0.0  ;;  %v920_v21 = vadd.f32 %v7396_v2, %v919_v8  ;;  %v5626_v6 = vor.u32 %v6688_v0, %v5625_v63 }
 0x180   : > { %v1447_v11 = vpack.c.bf16 %v1408_v10, %v1407_v9  ;;  %958 = vmatmul.bf16.gmra.mxu0 %v5618_v7  ;;  %v1046_v27 = vmax.f32 %v920_v21, 0.0 }
 0x181   : > { %v1211_v13 = vpop.f32.mrf.mxu1 }
 0x182   : > { %1653 = vmatmul.bf16.vlgmr.msra.gmra.mxu3 %v1447_v11  ;;  %v1212_v16 = vadd.f32 %v7503_v56, %v1211_v13  ;;  %v384_v13 = vld [vmem:[%s7228_s17 + $0x170] sm:$0xff] }
 0x183   : > { %v1324_v19 = vpop.f32.mrf.mxu3 }
 0x184   : > { %v1364_v22 = vmax.f32 %v1212_v16, 0.0  ;;  %v1325_v32 = vadd.f32 %v7503_v56, %v1324_v19  ;;  %v448_v16 = vpack.c.bf16 %v384_v13, %v384_v13 }
 0x185   : > { %v921_v23 = vpop.f32.mrf.mxu0 }
 0x186   : > { %v922_v24 = vadd.f32 %v7396_v2, %v921_v23  ;;  %v1425_v25 = vpack.c.bf16 %v1364_v22, %v1363_v20  ;;  %v1409_v38 = vmax.f32 %v1325_v32, 0.0  ;;  %513 = vst.msk [vmem:[#allocation2 + $0x174] sm:$0xf] %vm466_vm0, %v448_v16  ;;  %v6724_v16 = vld [vmem:[%s9085_s1 + $0xc8] sm:$0xff] }
 0x188   : > { %v1047_v28 = vmax.f32 %v922_v24, 0.0  ;;  %1543 = vmatmul.bf16.gmra.mxu2 %v1425_v25  ;;  %v6726_v25 = vld [vmem:[%s9085_s1 + $0xd8] sm:$0xff] }
 0x189   : > { %v1214_v29 = vpop.f32.mrf.mxu1  ;;  %1864 = vmatpush.bf16.msrb.mxu3 %v6726_v25 }
 0x18a   : > { %v1099_v33 = vpack.c.bf16 %v1047_v28, %v1046_v27  ;;  %v1215_v41 = vadd.f32 %v7503_v56, %v1214_v29  ;;  %v5629_v29 = vld [vmem:[#allocation2 + $0x164] sm:$0xf] }
 0x18b   : > { %v1326_v34 = vpop.f32.mrf.mxu3 }
 0x18c   : > { %v1327_v35 = vadd.f32 %v7503_v56, %v1326_v34  ;;  %1253 = vmatmul.bf16.gmra.mxu1 %v1099_v33  ;;  %v1365_v50 = vmax.f32 %v1215_v41, 0.0 }
 0x18d   : > { %v924_v37 = vpop.f32.mrf.mxu0 }
 0x18e   : > { %v1410_v39 = vmax.f32 %v1327_v35, 0.0  ;;  %v925_v51 = vadd.f32 %v7396_v2, %v924_v37  ;;  %v5630_v35 = vor.u32 %v6689_v30, %v5629_v29  ;;  %v6723_v30 = vld [vmem:[%s9085_s1 + $0xc0] sm:$0xff] }
 0x190   : > { %v1448_v40 = vpack.c.bf16 %v1410_v39, %v1409_v38  ;;  %963 = vmatmul.bf16.gmra.mxu0 %v5622_v36  ;;  %v1048_v60 = vmax.f32 %v925_v51, 0.0 }
 0x191   : > { %v1216_v42 = vpop.f32.mrf.mxu1 }
 0x192   : > { %1658 = vmatmul.bf16.gmra.mxu3 %v1448_v40  ;;  %v1217_v45 = vadd.f32 %v7503_v56, %v1216_v42 }
 0x193   : > { %v1329_v49 = vpop.f32.mrf.mxu3 }
 0x194   : > { %v1366_v52 = vmax.f32 %v1217_v45, 0.0  ;;  %v1330_v1 = vadd.f32 %v7503_v56, %v1329_v49 }
 0x195   : > { %v926_v53 = vpop.f32.mrf.mxu0 }
 0x196   : > { %v927_v54 = vadd.f32 %v7396_v2, %v926_v53  ;;  %v1426_v55 = vpack.c.bf16 %v1366_v52, %v1365_v50  ;;  %v1411_v8 = vmax.f32 %v1330_v1, 0.0  ;;  %v6725_v50 = vld [vmem:[%s9085_s1 + $0xd0] sm:$0xff] }
 0x197   : > { %1865 = vmatpush.bf16.msrb.mxu3 %v6725_v50 }
 0x198   : > { %v1049_v61 = vmax.f32 %v927_v54, 0.0  ;;  %1548 = vmatmul.bf16.gmra.mxu2 %v1426_v55  ;;  %v5633_v54 = vld [vmem:[#allocation2 + $0x174] sm:$0xf]  ;;  %v6690_v55 = vld [vmem:[#allocation2 + $0x178] sm:$0xf0] }
 0x199   : > { %v1219_v62 = vpop.f32.mrf.mxu1 }
 0x19a   : > { %v1100_v3 = vpack.c.bf16 %v1049_v61, %v1048_v60  ;;  %v1220_v11 = vadd.f32 %v7503_v56, %v1219_v62  ;;  %v5634_v61 = vor.u32 %v6690_v55, %v5633_v54 }
 0x19b   : > { %v1331_v4 = vpop.f32.mrf.mxu3  ;;  %1866 = vmatpush.bf16.msrb.mxu3 %v6724_v16 }
 0x19c   : > { %v1332_v5 = vadd.f32 %v7503_v56, %v1331_v4  ;;  %1258 = vmatmul.bf16.gmra.mxu1 %v1100_v3  ;;  %v1367_v19 = vmax.f32 %v1220_v11, 0.0 }
 0x19d   : > { %v929_v7 = vpop.f32.mrf.mxu0 }
 0x19e   : > { %v1412_v9 = vmax.f32 %v1332_v5, 0.0  ;;  %v930_v20 = vadd.f32 %v7396_v2, %v929_v7 }
 0x19f   : > { %1867 = vmatpush.bf16.msrb.mxu3 %v6723_v30 }
 0x1a0   : > { %v1449_v10 = vpack.c.bf16 %v1412_v9, %v1411_v8  ;;  %968 = vmatmul.bf16.gmra.mxu0 %v5626_v6  ;;  %v1050_v26 = vmax.f32 %v930_v20, 0.0  ;;  %v6817_v6 = vld [vmem:[%s9085_s1 + $0x130] sm:$0xff] }
 0x1a1   : > { %v1221_v12 = vpop.f32.mrf.mxu1  ;;  %3243 = vmatpush.bf16.msrb.mxu2 %v6817_v6 }
 0x1a2   : > { %1663 = vmatmul.bf16.gmra.mxu3 %v1449_v10  ;;  %v1222_v15 = vadd.f32 %v7503_v56, %v1221_v12 }
 0x1a3   : > { %v1334_v18 = vpop.f32.mrf.mxu3 }
 0x1a4   : > { %v1368_v21 = vmax.f32 %v1222_v15, 0.0  ;;  %v1335_v31 = vadd.f32 %v7503_v56, %v1334_v18  ;;  %v6806_v15 = vld [vmem:[%s9086_s2 + $0x58] sm:$0xff] }
 0x1a5   : > { %v931_v22 = vpop.f32.mrf.mxu0  ;;  %2911 = vmatpush.bf16.msrb.mxu1 %v6806_v15 }
 0x1a6   : > { %v932_v23 = vadd.f32 %v7396_v2, %v931_v22  ;;  %v1427_v24 = vpack.c.bf16 %v1368_v21, %v1367_v19  ;;  %v1413_v37 = vmax.f32 %v1335_v31, 0.0 }
 0x1a8   : > { %v1051_v27 = vmax.f32 %v932_v23, 0.0  ;;  %1553 = vmatmul.bf16.gmra.mxu2 %v1427_v24 }
 0x1a9   : > { %v1224_v28 = vpop.f32.mrf.mxu1 }
 0x1aa   : > { %v1101_v32 = vpack.c.bf16 %v1051_v27, %v1050_v26  ;;  %v1225_v40 = vadd.f32 %v7503_v56, %v1224_v28 }
 0x1ab   : > { %v1336_v33 = vpop.f32.mrf.mxu3 }
 0x1ac   : > { %v1337_v34 = vadd.f32 %v7503_v56, %v1336_v33  ;;  %1263 = vmatmul.bf16.gmra.mxu1 %v1101_v32  ;;  %v1369_v44 = vmax.f32 %v1225_v40, 0.0  ;;  %v7629_v33 = vld [vmem:[%s9088_s4] ss:$0 sm:$0xff] }
 0x1ad   : > { %v934_v36 = vpop.f32.mrf.mxu0 }
 0x1ae   : > { %v1414_v38 = vmax.f32 %v1337_v34, 0.0  ;;  %v935_v45 = vadd.f32 %v7396_v2, %v934_v36 }
 0x1b0   : > { %v1450_v39 = vpack.c.bf16 %v1414_v38, %v1413_v37  ;;  %973 = vmatmul.bf16.gmra.mxu0 %v5630_v35  ;;  %v1052_v51 = vmax.f32 %v935_v45, 0.0 }
 0x1b1   : > { %v1226_v41 = vpop.f32.mrf.mxu1 }
 0x1b2   : > { %1668 = vmatmul.bf16.gmra.mxu3 %v1450_v39  ;;  %v1227_v42 = vadd.f32 %v7503_v56, %v1226_v41 }
 0x1b3   : > { %v1339_v43 = vpop.f32.mrf.mxu3 }
 0x1b4   : > { %v1370_v46 = vmax.f32 %v1227_v42, 0.0  ;;  %v1340_v57 = vadd.f32 %v7503_v56, %v1339_v43 }
 0x1b5   : > { %v936_v47 = vpop.f32.mrf.mxu0 }
 0x1b6   : > { %v937_v48 = vadd.f32 %v7396_v2, %v936_v47  ;;  %v1428_v49 = vpack.c.bf16 %v1370_v46, %v1369_v44  ;;  %v1415_v63 = vmax.f32 %v1340_v57, 0.0 }
 0x1b8   : > { %v1053_v52 = vmax.f32 %v937_v48, 0.0  ;;  %1558 = vmatmul.bf16.gmra.mxu2 %v1428_v49 }
 0x1b9   : > { %v1229_v53 = vpop.f32.mrf.mxu1 }
 0x1ba   : > { %v1102_v58 = vpack.c.bf16 %v1053_v52, %v1052_v51  ;;  %v1230_v3 = vadd.f32 %v7503_v56, %v1229_v53 }
 0x1bb   : > { %v1341_v59 = vpop.f32.mrf.mxu3 }
 0x1bc   : > { %v1342_v60 = vadd.f32 %v7503_v56, %v1341_v59  ;;  %1268 = vmatmul.bf16.gmra.mxu1 %v1102_v58  ;;  %v1371_v8 = vmax.f32 %v1230_v3, 0.0 }
 0x1bd   : > { %v939_v62 = vpop.f32.mrf.mxu0 }
 0x1be   : > { %v1416_v0 = vmax.f32 %v1342_v60, 0.0  ;;  %v940_v9 = vadd.f32 %v7396_v2, %v939_v62 }
 0x1c0   : > { %v1451_v1 = vpack.c.bf16 %v1416_v0, %v1415_v63  ;;  %978 = vmatmul.bf16.gmra.mxu0 %v5634_v61  ;;  %v1054_v17 = vmax.f32 %v940_v9, 0.0  ;;  %v6826_v0 = vld [vmem:[%s9085_s1 + $0x178] sm:$0xff] }
 0x1c1   : > { %v1231_v4 = vpop.f32.mrf.mxu1  ;;  %3577 = vmatpush.bf16.msra.mxu3 %v6826_v0 }
 0x1c2   : > { %1673 = vmatmul.bf16.gmra.mxu3 %v1451_v1  ;;  %v1232_v5 = vadd.f32 %v7503_v56, %v1231_v4 }
 0x1c3   : > { %v1344_v7 = vpop.f32.mrf.mxu3 }
 0x1c4   : > { %v1372_v10 = vmax.f32 %v1232_v5, 0.0 }
 0x1c5   : > { %v941_v11 = vpop.f32.mrf.mxu0 }
 0x1c6   : > { %v942_v12 = vadd.f32 %v7396_v2, %v941_v11  ;;  %v1429_v13 = vpack.c.bf16 %v1372_v10, %v1371_v8  ;;  %v1345_v2 = vadd.f32 %v7503_v56, %v1344_v7 }
 0x1c8   : > { %v1055_v18 = vmax.f32 %v942_v12, 0.0  ;;  %1563 = vmatmul.bf16.gmra.mxu2 %v1429_v13  ;;  %v1417_v24 = vmax.f32 %v1345_v2, 0.0  ;;  %v6816_v12 = vld [vmem:[%s9085_s1 + $0x128] sm:$0xff]  ;;  %v6797_v13 = vld [vmem:[%s9086_s2 + $0x10] sm:$0xff] }
 0x1c9   : > { %v1234_v19 = vpop.f32.mrf.mxu1  ;;  %3244 = vmatpush.bf16.msrb.mxu2 %v6816_v12  ;;  %2743 = vmatpush.bf16.msrb.mxu0 %v6797_v13 }
 0x1ca   : > { %v1103_v20 = vpack.c.bf16 %v1055_v18, %v1054_v17  ;;  %v1235_v27 = vadd.f32 %v7503_v56, %v1234_v19  ;;  %v7655_v18 = vld [vmem:[%s9088_s4 + $0x2] ss:$0 sm:$0xff] }
 0x1cb   : > { %v1346_v21 = vpop.f32.mrf.mxu3  ;;  %v1534_v61 = vpop.f32.mrf.mxu2 }
 0x1cc   : > { %v1347_v22 = vadd.f32 %v7503_v56, %v1346_v21  ;;  %1273 = vmatmul.bf16.gmra.mxu1 %v1103_v20  ;;  %v1373_v32 = vmax.f32 %v1235_v27, 0.0  ;;  %v6805_v27 = vld [vmem:[%s9086_s2 + $0x50] sm:$0xff] }
 0x1cd   : > { %v944_v23 = vpop.f32.mrf.mxu0  ;;  %2912 = vmatpush.bf16.msrb.mxu1 %v6805_v27 }
 0x1ce   : > { %v1418_v25 = vmax.f32 %v1347_v22, 0.0  ;;  %v945_v34 = vadd.f32 %v7629_v33, %v944_v23 }
 0x1d0   : > { %v1452_v26 = vpack.c.bf16 %v1418_v25, %v1417_v24  ;;  %v1056_v39 = vmax.f32 %v945_v34, 0.0  ;;  %v1535_v24 = vadd.f32 %v7655_v18, %v1534_v61 }
 0x1d1   : > { %v1236_v28 = vpop.f32.mrf.mxu1 }
 0x1d2   : > { %1678 = vmatmul.bf16.gmra.mxu3 %v1452_v26  ;;  %v1237_v29 = vadd.f32 %v7503_v56, %v1236_v28 }
 0x1d3   : > { %v1349_v31 = vpop.f32.mrf.mxu3  ;;  %v1536_v15 = vpop.f32.mrf.mxu2 }
 0x1d4   : > { %v1374_v35 = vmax.f32 %v1237_v29, 0.0  ;;  %v1350_v42 = vadd.f32 %v7503_v56, %v1349_v31  ;;  %v1537_v21 = vadd.f32 %v7655_v18, %v1536_v15 }
 0x1d5   : > { %v946_v36 = vpop.f32.mrf.mxu0 }
 0x1d6   : > { %v947_v37 = vadd.f32 %v7629_v33, %v946_v36  ;;  %v1430_v38 = vpack.c.bf16 %v1374_v35, %v1373_v32  ;;  %v1419_v47 = vmax.f32 %v1350_v42, 0.0  ;;  %v1695_v29 = vmax.f32 %v1537_v21, 0.0 }
 0x1d7   : > { %v1694_v32 = vmax.f32 %v1535_v24, 0.0 }
 0x1d8   : > { %v1057_v40 = vmax.f32 %v947_v37, 0.0  ;;  %1568 = vmatmul.bf16.gmra.mxu2 %v1430_v38 }
 0x1d9   : > { %v1239_v41 = vpop.f32.mrf.mxu1  ;;  %v1758_v35 = vpack.c.bf16 %v1695_v29, %v1694_v32 }
 0x1da   : > { %v1104_v43 = vpack.c.bf16 %v1057_v40, %v1056_v39  ;;  %v1240_v50 = vadd.f32 %v7503_v56, %v1239_v41 }
 0x1db   : > { %v1351_v44 = vpop.f32.mrf.mxu3 }
 0x1dc   : > { %v1352_v45 = vadd.f32 %v7503_v56, %v1351_v44  ;;  %1278 = vmatmul.bf16.gmra.mxu1 %v1104_v43  ;;  %v1375_v54 = vmax.f32 %v1240_v50, 0.0 }
 0x1dd   : > { %v949_v46 = vpop.f32.mrf.mxu0 }
 0x1de   : > { %v1420_v48 = vmax.f32 %v1352_v45, 0.0  ;;  %v950_v55 = vadd.f32 %v7629_v33, %v949_v46 }
 0x1e0   : > { %v1453_v49 = vpack.c.bf16 %v1420_v48, %v1419_v47  ;;  %v1058_v62 = vmax.f32 %v950_v55, 0.0 }
 0x1e1   : > { %v1241_v51 = vpop.f32.mrf.mxu1 }
 0x1e2   : > { %1683 = vmatmul.bf16.gmra.mxu3 %v1453_v49  ;;  %v1242_v52 = vadd.f32 %v7503_v56, %v1241_v51 }
 0x1e3   : > { %v1354_v53 = vpop.f32.mrf.mxu3 }
 0x1e4   : > { %v1376_v57 = vmax.f32 %v1242_v52, 0.0  ;;  %v1355_v3 = vadd.f32 %v7503_v56, %v1354_v53 }
 0x1e5   : > { %v951_v58 = vpop.f32.mrf.mxu0 }
 0x1e6   : > { %v952_v59 = vadd.f32 %v7629_v33, %v951_v58  ;;  %v1431_v60 = vpack.c.bf16 %v1376_v57, %v1375_v54  ;;  %v1421_v8 = vmax.f32 %v1355_v3, 0.0 }
 0x1e8   : > { %v1059_v63 = vmax.f32 %v952_v59, 0.0  ;;  %1573 = vmatmul.bf16.gmra.mxu2 %v1431_v60 }
 0x1e9   : > { %v1244_v1 = vpop.f32.mrf.mxu1 }
 0x1ea   : > { %v1105_v4 = vpack.c.bf16 %v1059_v63, %v1058_v62  ;;  %v1245_v11 = vadd.f32 %v7503_v56, %v1244_v1 }
 0x1eb   : > { %v1356_v5 = vpop.f32.mrf.mxu3 }
 0x1ec   : > { %v1357_v6 = vadd.f32 %v7503_v56, %v1356_v5  ;;  %1283 = vmatmul.bf16.gmra.mxu1 %v1105_v4  ;;  %v1377_v17 = vmax.f32 %v1245_v11, 0.0 }
 0x1ed   : > { %v954_v7 = vpop.f32.mrf.mxu0 }
 0x1ee   : > { %v1422_v9 = vmax.f32 %v1357_v6, 0.0  ;;  %v955_v19 = vadd.f32 %v7629_v33, %v954_v7 }
 0x1f0   : > { %v1454_v10 = vpack.c.bf16 %v1422_v9, %v1421_v8  ;;  %v1060_v25 = vmax.f32 %v955_v19, 0.0 }
 0x1f1   : > { %v1246_v14 = vpop.f32.mrf.mxu1 }
 0x1f2   : > { %1688 = vmatmul.bf16.gmra.mxu3 %v1454_v10  ;;  %v1247_v16 = vadd.f32 %v7503_v56, %v1246_v14 }
 0x1f4   : > { %v1378_v2 = vmax.f32 %v1247_v16, 0.0 }
 0x1f5   : > { %v956_v20 = vpop.f32.mrf.mxu0 }
 0x1f6   : > { %v957_v22 = vadd.f32 %v7629_v33, %v956_v20  ;;  %v1432_v23 = vpack.c.bf16 %v1378_v2, %v1377_v17 }
 0x1f8   : > { %v1061_v26 = vmax.f32 %v957_v22, 0.0  ;;  %1578 = vmatmul.bf16.gmra.mxu2 %v1432_v23 }
 0x1f9   : > { %v1249_v28 = vpop.f32.mrf.mxu1 }
 0x1fa   : > { %v1106_v30 = vpack.c.bf16 %v1061_v26, %v1060_v25  ;;  %v1250_v36 = vadd.f32 %v7503_v56, %v1249_v28 }
 0x1fb   : > { %v1539_v31 = vpop.f32.mrf.mxu2 }
 0x1fc   : > { %1288 = vmatmul.bf16.gmra.mxu1 %v1106_v30  ;;  %v1379_v40 = vmax.f32 %v1250_v36, 0.0  ;;  %v1540_v48 = vadd.f32 %v7655_v18, %v1539_v31  ;;  %v6815_v30 = vld [vmem:[%s9085_s1 + $0x120] sm:$0xff]  ;;  %v6796_v31 = vld [vmem:[%s9086_s2 + $0x8] sm:$0xff] }
 0x1fd   : > { %v959_v34 = vpop.f32.mrf.mxu0  ;;  %3245 = vmatpush.bf16.msrb.mxu2 %v6815_v30  ;;  %2744 = vmatpush.bf16.msrb.mxu0 %v6796_v31 }
 0x1fe   : > { %v960_v41 = vadd.f32 %v7629_v33, %v959_v34  ;;  %v1696_v57 = vmax.f32 %v1540_v48, 0.0  ;;  %v6804_v48 = vld [vmem:[%s9086_s2 + $0x48] sm:$0xff] }
 0x1ff   : > { %2913 = vmatpush.bf16.msrb.mxu1 %v6804_v48 }
 0x200   : > { %v1062_v49 = vmax.f32 %v960_v41, 0.0 }
 0x201   : > { %v1251_v37 = vpop.f32.mrf.mxu1 }
 0x202   : > { %1868 = vmatmul.bf16.vlgmr.msrb.gmra.mxu3 %v1758_v35  ;;  %v1252_v38 = vadd.f32 %v7503_v56, %v1251_v37 }
 0x203   : > { %v1541_v39 = vpop.f32.mrf.mxu2 }
 0x204   : > { %v1380_v42 = vmax.f32 %v1252_v38, 0.0  ;;  %v1542_v45 = vadd.f32 %v7655_v18, %v1541_v39 }
 0x205   : > { %v1654_v43 = vpop.f32.mrf.mxu3  ;;  %v961_v44 = vpop.f32.mrf.mxu0 }
 0x206   : > { %v962_v46 = vadd.f32 %v7629_v33, %v961_v44  ;;  %v1433_v47 = vpack.c.bf16 %v1380_v42, %v1379_v40  ;;  %v1697_v52 = vmax.f32 %v1542_v45, 0.0  ;;  %v1655_v55 = vadd.f32 %v7655_v18, %v1654_v43 }
 0x208   : > { %v1063_v50 = vmax.f32 %v962_v46, 0.0  ;;  %1583 = vmatmul.bf16.gmra.mxu2 %v1433_v47  ;;  %v1759_v61 = vpack.c.bf16 %v1697_v52, %v1696_v57  ;;  %v1742_v62 = vmax.f32 %v1655_v55, 0.0 }
 0x209   : > { %v1254_v51 = vpop.f32.mrf.mxu1 }
 0x20a   : > { %v1107_v53 = vpack.c.bf16 %v1063_v50, %v1062_v49  ;;  %v1255_v0 = vadd.f32 %v7503_v56, %v1254_v51  ;;  %v6825_v49 = vld [vmem:[%s9085_s1 + $0x170] sm:$0xff] }
 0x20b   : > { %v1544_v54 = vpop.f32.mrf.mxu2  ;;  %3578 = vmatpush.bf16.msra.mxu3 %v6825_v49 }
 0x20c   : > { %1293 = vmatmul.bf16.gmra.mxu1 %v1107_v53  ;;  %v1381_v6 = vmax.f32 %v1255_v0, 0.0  ;;  %v1545_v14 = vadd.f32 %v7655_v18, %v1544_v54 }
 0x20d   : > { %v1656_v58 = vpop.f32.mrf.mxu3  ;;  %v964_v59 = vpop.f32.mrf.mxu0 }
 0x20e   : > { %v1657_v60 = vadd.f32 %v7655_v18, %v1656_v58  ;;  %v965_v7 = vadd.f32 %v7629_v33, %v964_v59  ;;  %v1698_v22 = vmax.f32 %v1545_v14, 0.0 }
 0x210   : > { %v1743_v63 = vmax.f32 %v1657_v60, 0.0  ;;  %v1064_v15 = vmax.f32 %v965_v7, 0.0 }
 0x211   : > { %v1256_v1 = vpop.f32.mrf.mxu1 }
 0x212   : > { %1873 = vmatmul.bf16.gmra.mxu3 %v1759_v61  ;;  %v1257_v3 = vadd.f32 %v7503_v56, %v1256_v1  ;;  %v7674_v4 = vpack.c.bf16 %v1743_v63, %v1742_v62 }
 0x213   : > { %v1546_v5 = vpop.f32.mrf.mxu2 }
 0x214   : > { %v1382_v8 = vmax.f32 %v1257_v3, 0.0  ;;  %v1547_v11 = vadd.f32 %v7655_v18, %v1546_v5 }
 0x215   : > { %v1659_v9 = vpop.f32.mrf.mxu3  ;;  %v966_v10 = vpop.f32.mrf.mxu0 }
 0x216   : > { %v967_v12 = vadd.f32 %v7629_v33, %v966_v10  ;;  %v1434_v13 = vpack.c.bf16 %v1382_v8, %v1381_v6  ;;  %v1699_v19 = vmax.f32 %v1547_v11, 0.0  ;;  %v1660_v21 = vadd.f32 %v7655_v18, %v1659_v9 }
 0x218   : > { %v1065_v16 = vmax.f32 %v967_v12, 0.0  ;;  %1588 = vmatmul.bf16.gmra.mxu2 %v1434_v13  ;;  %v1760_v26 = vpack.c.bf16 %v1699_v19, %v1698_v22  ;;  %v1744_v27 = vmax.f32 %v1660_v21, 0.0 }
 0x219   : > { %v1259_v17 = vpop.f32.mrf.mxu1 }
 0x21a   : > { %v1108_v2 = vpack.c.bf16 %v1065_v16, %v1064_v15  ;;  %v1260_v29 = vadd.f32 %v7503_v56, %v1259_v17 }
 0x21b   : > { %v1549_v20 = vpop.f32.mrf.mxu2 }
 0x21c   : > { %1298 = vmatmul.bf16.gmra.mxu1 %v1108_v2  ;;  %v1383_v37 = vmax.f32 %v1260_v29, 0.0  ;;  %v1550_v45 = vadd.f32 %v7655_v18, %v1549_v20 }
 0x21d   : > { %v1661_v23 = vpop.f32.mrf.mxu3  ;;  %v969_v24 = vpop.f32.mrf.mxu0 }
 0x21e   : > { %v1662_v25 = vadd.f32 %v7655_v18, %v1661_v23  ;;  %v970_v38 = vadd.f32 %v7629_v33, %v969_v24  ;;  %v1700_v55 = vmax.f32 %v1550_v45, 0.0 }
 0x220   : > { %v1745_v28 = vmax.f32 %v1662_v25, 0.0  ;;  %v1066_v46 = vmax.f32 %v970_v38, 0.0 }
 0x221   : > { %v1261_v32 = vpop.f32.mrf.mxu1 }
 0x222   : > { %1878 = vmatmul.bf16.gmra.mxu3 %v1760_v26  ;;  %v1262_v34 = vadd.f32 %v7503_v56, %v1261_v32  ;;  %v7690_v35 = vpack.c.bf16 %v1745_v28, %v1744_v27 }
 0x223   : > { %v1551_v36 = vpop.f32.mrf.mxu2 }
 0x224   : > { %v1384_v39 = vmax.f32 %v1262_v34, 0.0  ;;  %v1552_v42 = vadd.f32 %v7655_v18, %v1551_v36 }
 0x225   : > { %v1664_v40 = vpop.f32.mrf.mxu3  ;;  %v971_v41 = vpop.f32.mrf.mxu0 }
 0x226   : > { %v972_v43 = vadd.f32 %v7629_v33, %v971_v41  ;;  %v1435_v44 = vpack.c.bf16 %v1384_v39, %v1383_v37  ;;  %v1701_v51 = vmax.f32 %v1552_v42, 0.0  ;;  %v1665_v54 = vadd.f32 %v7655_v18, %v1664_v40 }
 0x228   : > { %v1067_v47 = vmax.f32 %v972_v43, 0.0  ;;  %1593 = vmatmul.bf16.gmra.mxu2 %v1435_v44  ;;  %v1761_v60 = vpack.c.bf16 %v1701_v51, %v1700_v55  ;;  %v1746_v61 = vmax.f32 %v1665_v54, 0.0 }
 0x229   : > { %v1264_v50 = vpop.f32.mrf.mxu1 }
 0x22a   : > { %v1109_v52 = vpack.c.bf16 %v1067_v47, %v1066_v46  ;;  %v1265_v63 = vadd.f32 %v7503_v56, %v1264_v50 }
 0x22b   : > { %v1554_v53 = vpop.f32.mrf.mxu2 }
 0x22c   : > { %1303 = vmatmul.bf16.gmra.mxu1 %v1109_v52  ;;  %v1385_v6 = vmax.f32 %v1265_v63, 0.0  ;;  %v1555_v14 = vadd.f32 %v7655_v18, %v1554_v53 }
 0x22d   : > { %v1666_v57 = vpop.f32.mrf.mxu3  ;;  %v974_v58 = vpop.f32.mrf.mxu0 }
 0x22e   : > { %v1667_v59 = vadd.f32 %v7655_v18, %v1666_v57  ;;  %v975_v7 = vadd.f32 %v7629_v33, %v974_v58  ;;  %v1702_v22 = vmax.f32 %v1555_v14, 0.0  ;;  %v7727_v57 = vld [vmem:[%s9088_s4 + $0x1] ss:$0 sm:$0xff] }
 0x230   : > { %v1747_v62 = vmax.f32 %v1667_v59, 0.0  ;;  %v1068_v15 = vmax.f32 %v975_v7, 0.0  ;;  %v6814_v59 = vld [vmem:[%s9085_s1 + $0x118] sm:$0xff] }
 0x231   : > { %v1266_v0 = vpop.f32.mrf.mxu1  ;;  %3246 = vmatpush.bf16.msrb.mxu2 %v6814_v59 }
 0x232   : > { %1883 = vmatmul.bf16.gmra.mxu3 %v1761_v60  ;;  %v1267_v1 = vadd.f32 %v7503_v56, %v1266_v0  ;;  %v7706_v3 = vpack.c.bf16 %v1747_v62, %v1746_v61  ;;  %v6795_v60 = vld [vmem:[%s9086_s2] sm:$0xff] }
 0x233   : > { %v1556_v5 = vpop.f32.mrf.mxu2  ;;  %2745 = vmatpush.bf16.msrb.mxu0 %v6795_v60  ;;  %v6731_v60 = vld [vmem:[#allocation2 + $0x4] sm:$0xf] }
 0x234   : > { %v1386_v8 = vmax.f32 %v1267_v1, 0.0  ;;  %v1557_v11 = vadd.f32 %v7655_v18, %v1556_v5 }
 0x235   : > { %v1669_v9 = vpop.f32.mrf.mxu3  ;;  %v976_v10 = vpop.f32.mrf.mxu0 }
 0x236   : > { %v977_v12 = vadd.f32 %v7629_v33, %v976_v10  ;;  %v1436_v13 = vpack.c.bf16 %v1386_v8, %v1385_v6  ;;  %v1703_v19 = vmax.f32 %v1557_v11, 0.0  ;;  %v1670_v21 = vadd.f32 %v7655_v18, %v1669_v9  ;;  %v6803_v10 = vld [vmem:[%s9086_s2 + $0x40] sm:$0xff] }
 0x237   : > { %2914 = vmatpush.bf16.msrb.mxu1 %v6803_v10 }
 0x238   : > { %v1069_v16 = vmax.f32 %v977_v12, 0.0  ;;  %1598 = vmatmul.bf16.gmra.mxu2 %v1436_v13  ;;  %v1762_v26 = vpack.c.bf16 %v1703_v19, %v1702_v22  ;;  %v1748_v27 = vmax.f32 %v1670_v21, 0.0 }
 0x239   : > { %v1269_v17 = vpop.f32.mrf.mxu1 }
 0x23a   : > { %v1110_v2 = vpack.c.bf16 %v1069_v16, %v1068_v15  ;;  %v1270_v29 = vadd.f32 %v7503_v56, %v1269_v17 }
 0x23b   : > { %v1559_v20 = vpop.f32.mrf.mxu2 }
 0x23c   : > { %1308 = vmatmul.bf16.gmra.mxu1 %v1110_v2  ;;  %v1387_v36 = vmax.f32 %v1270_v29, 0.0  ;;  %v1560_v44 = vadd.f32 %v7655_v18, %v1559_v20 }
 0x23d   : > { %v1671_v23 = vpop.f32.mrf.mxu3  ;;  %v979_v24 = vpop.f32.mrf.mxu0 }
 0x23e   : > { %v1672_v25 = vadd.f32 %v7655_v18, %v1671_v23  ;;  %v980_v37 = vadd.f32 %v7629_v33, %v979_v24  ;;  %v1704_v51 = vmax.f32 %v1560_v44, 0.0  ;;  %v6824_v24 = vld [vmem:[%s9085_s1 + $0x168] sm:$0xff] }
 0x23f   : > { %3579 = vmatpush.bf16.msra.mxu3 %v6824_v24 }
 0x240   : > { %v1749_v28 = vmax.f32 %v1672_v25, 0.0  ;;  %v1070_v45 = vmax.f32 %v980_v37, 0.0 }
 0x241   : > { %v1271_v30 = vpop.f32.mrf.mxu1 }
 0x242   : > { %1888 = vmatmul.bf16.gmra.mxu3 %v1762_v26  ;;  %v1272_v31 = vadd.f32 %v7503_v56, %v1271_v30  ;;  %v7716_v32 = vpack.c.bf16 %v1749_v28, %v1748_v27 }
 0x243   : > { %v1561_v34 = vpop.f32.mrf.mxu2 }
 0x244   : > { %v1388_v38 = vmax.f32 %v1272_v31, 0.0  ;;  %v1562_v41 = vadd.f32 %v7655_v18, %v1561_v34 }
 0x245   : > { %v1674_v39 = vpop.f32.mrf.mxu3  ;;  %v981_v40 = vpop.f32.mrf.mxu0 }
 0x246   : > { %v982_v42 = vadd.f32 %v7629_v33, %v981_v40  ;;  %v1437_v43 = vpack.c.bf16 %v1388_v38, %v1387_v36  ;;  %v1705_v47 = vmax.f32 %v1562_v41, 0.0  ;;  %v1675_v50 = vadd.f32 %v7655_v18, %v1674_v39 }
 0x248   : > { %v1071_v46 = vmax.f32 %v982_v42, 0.0  ;;  %1603 = vmatmul.bf16.gmra.mxu2 %v1437_v43  ;;  %v1763_v54 = vpack.c.bf16 %v1705_v47, %v1704_v51  ;;  %v1750_v55 = vmax.f32 %v1675_v50, 0.0 }
 0x249   : > { %v1274_v56 = vpop.f32.mrf.mxu1 }
 0x24a   : > { %v1111_v48 = vpack.c.bf16 %v1071_v46, %v1070_v45  ;;  %v1275_v58 = vadd.f32 %v7727_v57, %v1274_v56 }
 0x24b   : > { %v1564_v49 = vpop.f32.mrf.mxu2 }
 0x24c   : > { %1313 = vmatmul.bf16.gmra.mxu1 %v1111_v48  ;;  %v1389_v1 = vmax.f32 %v1275_v58, 0.0  ;;  %v1565_v9 = vadd.f32 %v7655_v18, %v1564_v49 }
 0x24d   : > { %v1676_v52 = vpop.f32.mrf.mxu3 }
 0x24e   : > { %v1677_v53 = vadd.f32 %v7655_v18, %v1676_v52  ;;  %v1706_v15 = vmax.f32 %v1565_v9, 0.0 }
 0x250   : > { %v1751_v33 = vmax.f32 %v1677_v53, 0.0 }
 0x251   : > { %v1276_v61 = vpop.f32.mrf.mxu1 }
 0x252   : > { %1893 = vmatmul.bf16.gmra.mxu3 %v1763_v54  ;;  %v1277_v62 = vadd.f32 %v7727_v57, %v1276_v61  ;;  %v7737_v63 = vpack.c.bf16 %v1751_v33, %v1750_v55  ;;  %v5851_v61 = vld [vmem:[#allocation2 + $0x8] sm:$0xf0] }
 0x253   : > { %v1566_v0 = vpop.f32.mrf.mxu2 }
 0x254   : > { %v1390_v5 = vmax.f32 %v1277_v62, 0.0  ;;  %v1567_v7 = vadd.f32 %v7655_v18, %v1566_v0 }
 0x255   : > { %v1679_v6 = vpop.f32.mrf.mxu3 }
 0x256   : > { %v1438_v8 = vpack.c.bf16 %v1390_v5, %v1389_v1  ;;  %v1707_v12 = vmax.f32 %v1567_v7, 0.0  ;;  %v1680_v14 = vadd.f32 %v7655_v18, %v1679_v6  ;;  %v5854_v1 = vor.u32 %v6731_v60, %v5851_v61  ;;  %v6813_v5 = vld [vmem:[%s9085_s1 + $0x110] sm:$0xff] }
 0x257   : > { %3247 = vmatpush.bf16.msrb.mxu2 %v6813_v5 }
 0x258   : > { %1608 = vmatmul.bf16.gmra.mxu2 %v1438_v8  ;;  %v1764_v19 = vpack.c.bf16 %v1707_v12, %v1706_v15  ;;  %v1752_v2 = vmax.f32 %v1680_v14, 0.0 }
 0x259   : > { %v1279_v11 = vpop.f32.mrf.mxu1 }
 0x25a   : > { %v1280_v21 = vadd.f32 %v7727_v57, %v1279_v11 }
 0x25b   : > { %v1569_v13 = vpop.f32.mrf.mxu2 }
 0x25c   : > { %v1391_v27 = vmax.f32 %v1280_v21, 0.0  ;;  %v1570_v34 = vadd.f32 %v7655_v18, %v1569_v13  ;;  %2915 = vmatmul.bf16.vlgmr.msrb.gmra.mxu1 %v5854_v1  ;;  %v7772_v13 = vld [vmem:[%s9088_s4 + $0x3] ss:$0 sm:$0xff]  ;;  %v5867_v1 = vld [vmem:[#allocation2 + $0x28] sm:$0xf0] }
 0x25d   : > { %v1681_v16 = vpop.f32.mrf.mxu3 }
 0x25e   : > { %v1682_v17 = vadd.f32 %v7655_v18, %v1681_v16  ;;  %v1708_v40 = vmax.f32 %v1570_v34, 0.0  ;;  %v6733_v34 = vld [vmem:[#allocation2 + $0x14] sm:$0xf] }
 0x260   : > { %v1753_v20 = vmax.f32 %v1682_v17, 0.0 }
 0x261   : > { %v1281_v22 = vpop.f32.mrf.mxu1 }
 0x262   : > { %1898 = vmatmul.bf16.gmra.mxu3 %v1764_v19  ;;  %v1282_v23 = vadd.f32 %v7727_v57, %v1281_v22  ;;  %v7751_v25 = vpack.c.bf16 %v1753_v20, %v1752_v2  ;;  %v6898_v2 = vld [vmem:[%s9086_s2 + $0xb8] sm:$0xff] }
 0x263   : > { %v1571_v26 = vpop.f32.mrf.mxu2  ;;  %v6906_v20 = vld [vmem:[%s9086_s2 + $0xf8] sm:$0xff]  ;;  %4456 = vmatpush.bf16.msra.mxu0 %v6898_v2 }
 0x264   : > { %v1392_v28 = vmax.f32 %v1282_v23, 0.0  ;;  %v1572_v30 = vadd.f32 %v7655_v18, %v1571_v26  ;;  %4625 = vmatpush.bf16.msra.mxu1 %v6906_v20 }
 0x265   : > { %v1684_v29 = vpop.f32.mrf.mxu3 }
 0x266   : > { %v1439_v31 = vpack.c.bf16 %v1392_v28, %v1391_v27  ;;  %v1709_v37 = vmax.f32 %v1572_v30, 0.0  ;;  %v1685_v39 = vadd.f32 %v7655_v18, %v1684_v29 }
 0x268   : > { %1613 = vmatmul.bf16.gmra.mxu2 %v1439_v31  ;;  %v1765_v43 = vpack.c.bf16 %v1709_v37, %v1708_v40  ;;  %v1754_v44 = vmax.f32 %v1685_v39, 0.0 }
 0x269   : > { %v1284_v36 = vpop.f32.mrf.mxu1 }
 0x26a   : > { %v1285_v46 = vadd.f32 %v7727_v57, %v1284_v36  ;;  %v5859_v36 = vld [vmem:[#allocation2 + $0x18] sm:$0xf0] }
 0x26b   : > { %v1574_v38 = vpop.f32.mrf.mxu2 }
 0x26c   : > { %v1393_v50 = vmax.f32 %v1285_v46, 0.0  ;;  %v1575_v55 = vadd.f32 %v7655_v18, %v1574_v38  ;;  %v5862_v38 = vor.u32 %v6733_v34, %v5859_v36 }
 0x26d   : > { %v1686_v41 = vpop.f32.mrf.mxu3 }
 0x26e   : > { %v1687_v42 = vadd.f32 %v7655_v18, %v1686_v41  ;;  %v1710_v0 = vmax.f32 %v1575_v55, 0.0  ;;  %2920 = vmatmul.bf16.gmra.mxu1 %v5862_v38  ;;  %v6737_v38 = vld [vmem:[#allocation2 + $0x34] sm:$0xf] }
 0x270   : > { %v1755_v45 = vmax.f32 %v1687_v42, 0.0 }
 0x271   : > { %v1286_v56 = vpop.f32.mrf.mxu1 }
 0x272   : > { %1903 = vmatmul.bf16.gmra.mxu3 %v1765_v43  ;;  %v1287_v47 = vadd.f32 %v7727_v57, %v1286_v56  ;;  %v7759_v48 = vpack.c.bf16 %v1755_v45, %v1754_v44 }
 0x273   : > { %v1576_v49 = vpop.f32.mrf.mxu2 }
 0x274   : > { %v1394_v51 = vmax.f32 %v1287_v47, 0.0  ;;  %v1577_v53 = vadd.f32 %v7655_v18, %v1576_v49 }
 0x275   : > { %v1689_v52 = vpop.f32.mrf.mxu3 }
 0x276   : > { %v1440_v54 = vpack.c.bf16 %v1394_v51, %v1393_v50  ;;  %v1711_v58 = vmax.f32 %v1577_v53, 0.0  ;;  %v1690_v62 = vadd.f32 %v7655_v18, %v1689_v52 }
 0x278   : > { %1618 = vmatmul.bf16.gmra.mxu2 %v1440_v54  ;;  %v1766_v8 = vpack.c.bf16 %v1711_v58, %v1710_v0  ;;  %v1756_v9 = vmax.f32 %v1690_v62, 0.0  ;;  %v6735_v0 = vld [vmem:[#allocation2 + $0x24] sm:$0xf] }
 0x279   : > { %v1289_v33 = vpop.f32.mrf.mxu1 }
 0x27a   : > { %v1290_v11 = vadd.f32 %v7727_v57, %v1289_v33 }
 0x27b   : > { %v1579_v59 = vpop.f32.mrf.mxu2 }
 0x27c   : > { %v1395_v17 = vmax.f32 %v1290_v11, 0.0  ;;  %v1580_v26 = vadd.f32 %v7655_v18, %v1579_v59 }
 0x27d   : > { %v1691_v6 = vpop.f32.mrf.mxu3 }
 0x27e   : > { %v1692_v7 = vadd.f32 %v7655_v18, %v1691_v6  ;;  %v1712_v37 = vmax.f32 %v1580_v26, 0.0 }
 0x280   : > { %v1757_v10 = vmax.f32 %v1692_v7, 0.0  ;;  %v5870_v7 = vor.u32 %v6735_v0, %v5867_v1 }
 0x281   : > { %v1291_v12 = vpop.f32.mrf.mxu1 }
 0x282   : > { %1908 = vmatmul.bf16.gmra.mxu3 %v1766_v8  ;;  %v1292_v14 = vadd.f32 %v7727_v57, %v1291_v12  ;;  %v7775_v15 = vpack.c.bf16 %v1757_v10, %v1756_v9  ;;  %2925 = vmatmul.bf16.gmra.mxu1 %v5870_v7 }
 0x283   : > { %v1581_v16 = vpop.f32.mrf.mxu2 }
 0x284   : > { %v1396_v19 = vmax.f32 %v1292_v14, 0.0  ;;  %v1582_v23 = vadd.f32 %v7655_v18, %v1581_v16 }
 0x285   : > { %v1869_v21 = vpop.f32.mrf.mxu3 }
 0x286   : > { %v1870_v22 = vadd.f32 %v7772_v13, %v1869_v21  ;;  %v1441_v24 = vpack.c.bf16 %v1396_v19, %v1395_v17  ;;  %v1713_v30 = vmax.f32 %v1582_v23, 0.0  ;;  %v6823_v21 = vld [vmem:[%s9085_s1 + $0x160] sm:$0xff] }
 0x287   : > { %3580 = vmatpush.bf16.msra.mxu3 %v6823_v21 }
 0x288   : > { %v2029_v27 = vmax.f32 %v1870_v22, 0.0  ;;  %1623 = vmatmul.bf16.gmra.mxu2 %v1441_v24  ;;  %v1767_v41 = vpack.c.bf16 %v1713_v30, %v1712_v37 }
 0x289   : > { %v1294_v28 = vpop.f32.mrf.mxu1 }
 0x28a   : > { %v2093_v29 = vpack.c.bf16 %v2029_v27, %v2029_v27  ;;  %v1295_v43 = vadd.f32 %v7727_v57, %v1294_v28 }
 0x28b   : > { %v1584_v31 = vpop.f32.mrf.mxu2 }
 0x28c   : > { %2157 = vst [vmem:[#allocation2] sm:$0xf] %v2093_v29  ;;  %v1397_v47 = vmax.f32 %v1295_v43, 0.0  ;;  %v1585_v54 = vadd.f32 %v7655_v18, %v1584_v31  ;;  %v6812_v43 = vld [vmem:[%s9085_s1 + $0x108] sm:$0xff] }
 0x28d   : > { %v1871_v39 = vpop.f32.mrf.mxu3  ;;  %3248 = vmatpush.bf16.msrb.mxu2 %v6812_v43 }
 0x28e   : > { %v1872_v40 = vadd.f32 %v7772_v13, %v1871_v39  ;;  %v1714_v5 = vmax.f32 %v1585_v54, 0.0  ;;  %v5875_v39 = vld [vmem:[#allocation2 + $0x38] sm:$0xf0] }
 0x290   : > { %v2030_v42 = vmax.f32 %v1872_v40, 0.0 }
 0x291   : > { %v1296_v44 = vpop.f32.mrf.mxu1 }
 0x292   : > { %v2094_v45 = vpack.c.bf16 %v2030_v42, %v2030_v42  ;;  %1913 = vmatmul.bf16.gmra.mxu3 %v1767_v41  ;;  %v1297_v46 = vadd.f32 %v7727_v57, %v1296_v44  ;;  %v5878_v42 = vor.u32 %v6737_v38, %v5875_v39 }
 0x293   : > { %v1586_v56 = vpop.f32.mrf.mxu2  ;;  %v5849_v60 = vld [vmem:[#allocation2] sm:$0xf] }
 0x294   : > { %2158 = vst [vmem:[#allocation2 + $0x8] sm:$0xf] %v2094_v45  ;;  %v1398_v49 = vmax.f32 %v1297_v46, 0.0  ;;  %v1587_v52 = vadd.f32 %v7655_v18, %v1586_v56  ;;  %2930 = vmatmul.bf16.gmra.mxu1 %v5878_v42 }
 0x295   : > { %v1874_v50 = vpop.f32.mrf.mxu3 }
 0x296   : > { %v1875_v51 = vadd.f32 %v7772_v13, %v1874_v50  ;;  %v1442_v53 = vpack.c.bf16 %v1398_v49, %v1397_v47  ;;  %v1715_v59 = vmax.f32 %v1587_v52, 0.0 }
 0x298   : > { %v2031_v55 = vmax.f32 %v1875_v51, 0.0  ;;  %1628 = vmatmul.bf16.gmra.mxu2 %v1442_v53  ;;  %v1768_v10 = vpack.c.bf16 %v1715_v59, %v1714_v5 }
 0x299   : > { %v1299_v33 = vpop.f32.mrf.mxu1 }
 0x29a   : > { %v2095_v58 = vpack.c.bf16 %v2031_v55, %v2031_v55  ;;  %v1300_v12 = vadd.f32 %v7727_v57, %v1299_v33 }
 0x29b   : > { %v6732_v61 = vld [vmem:[#allocation2 + $0x4] sm:$0xf0]  ;;  %v1589_v62 = vpop.f32.mrf.mxu2 }
 0x29c   : > { %2159 = vst [vmem:[#allocation2 + $0x10] sm:$0xf] %v2095_v58  ;;  %v5850_v6 = vor.u32 %v6732_v61, %v5849_v60  ;;  %v1399_v2 = vmax.f32 %v1300_v12, 0.0  ;;  %v1590_v27 = vadd.f32 %v7655_v18, %v1589_v62 }
 0x29d   : > { %v1876_v8 = vpop.f32.mrf.mxu3 }
 0x29e   : > { %v1877_v9 = vadd.f32 %v7772_v13, %v1876_v8  ;;  %2746 = vmatmul.bf16.vlgmr.msrb.gmra.mxu0 %v5850_v6  ;;  %v1716_v40 = vmax.f32 %v1590_v27, 0.0  ;;  %v6739_v8 = vld [vmem:[#allocation2 + $0x44] sm:$0xf]  ;;  %v6897_v27 = vld [vmem:[%s9086_s2 + $0xb0] sm:$0xff] }
 0x29f   : > { %4457 = vmatpush.bf16.msra.mxu0 %v6897_v27 }
 0x2a0   : > { %v2032_v11 = vmax.f32 %v1877_v9, 0.0  ;;  %v5883_v9 = vld [vmem:[#allocation2 + $0x48] sm:$0xf0] }
 0x2a1   : > { %v1301_v14 = vpop.f32.mrf.mxu1  ;;  %v5886_v12 = vor.u32 %v6739_v8, %v5883_v9 }
 0x2a2   : > { %v2096_v16 = vpack.c.bf16 %v2032_v11, %v2032_v11  ;;  %1918 = vmatmul.bf16.gmra.mxu3 %v1768_v10  ;;  %v1302_v17 = vadd.f32 %v7727_v57, %v1301_v14 }
 0x2a3   : > { %v1591_v19 = vpop.f32.mrf.mxu2  ;;  %v5857_v34 = vld [vmem:[#allocation2 + $0x10] sm:$0xf] }
 0x2a4   : > { %2160 = vst [vmem:[#allocation2 + $0x18] sm:$0xf] %v2096_v16  ;;  %v1400_v20 = vmax.f32 %v1302_v17, 0.0  ;;  %v1592_v24 = vadd.f32 %v7655_v18, %v1591_v19  ;;  %2935 = vmatmul.bf16.gmra.mxu1 %v5886_v12  ;;  %v5899_v12 = vld [vmem:[#allocation2 + $0x68] sm:$0xf0] }
 0x2a5   : > { %v1879_v22 = vpop.f32.mrf.mxu3 }
 0x2a6   : > { %v1880_v23 = vadd.f32 %v7772_v13, %v1879_v22  ;;  %v1443_v26 = vpack.c.bf16 %v1400_v20, %v1399_v2  ;;  %v1717_v31 = vmax.f32 %v1592_v24, 0.0 }
 0x2a8   : > { %v2033_v28 = vmax.f32 %v1880_v23, 0.0  ;;  %1633 = vmatmul.bf16.gmra.mxu2 %v1443_v26  ;;  %v1769_v46 = vpack.c.bf16 %v1717_v31, %v1716_v40 }
 0x2a9   : > { %v1304_v29 = vpop.f32.mrf.mxu1 }
 0x2aa   : > { %v2097_v30 = vpack.c.bf16 %v2033_v28, %v2033_v28  ;;  %v1305_v47 = vadd.f32 %v7727_v57, %v1304_v29  ;;  %v6905_v28 = vld [vmem:[%s9086_s2 + $0xf0] sm:$0xff] }
 0x2ab   : > { %v6734_v36 = vld [vmem:[#allocation2 + $0x14] sm:$0xf0]  ;;  %v1594_v37 = vpop.f32.mrf.mxu2  ;;  %4626 = vmatpush.bf16.msra.mxu1 %v6905_v28 }
 0x2ac   : > { %2161 = vst [vmem:[#allocation2 + $0x20] sm:$0xf] %v2097_v30  ;;  %v5858_v41 = vor.u32 %v6734_v36, %v5857_v34  ;;  %v1401_v53 = vmax.f32 %v1305_v47, 0.0  ;;  %v1595_v60 = vadd.f32 %v7655_v18, %v1594_v37 }
 0x2ad   : > { %v1881_v44 = vpop.f32.mrf.mxu3 }
 0x2ae   : > { %v1882_v45 = vadd.f32 %v7772_v13, %v1881_v44  ;;  %2751 = vmatmul.bf16.gmra.mxu0 %v5858_v41  ;;  %v1718_v10 = vmax.f32 %v1595_v60, 0.0  ;;  %v6741_v44 = vld [vmem:[#allocation2 + $0x54] sm:$0xf] }
 0x2b0   : > { %v2034_v56 = vmax.f32 %v1882_v45, 0.0  ;;  %v5891_v45 = vld [vmem:[#allocation2 + $0x58] sm:$0xf0] }
 0x2b1   : > { %v1306_v49 = vpop.f32.mrf.mxu1  ;;  %v5894_v47 = vor.u32 %v6741_v44, %v5891_v45 }
 0x2b2   : > { %v2098_v50 = vpack.c.bf16 %v2034_v56, %v2034_v56  ;;  %1923 = vmatmul.bf16.gmra.mxu3 %v1769_v46  ;;  %v1307_v51 = vadd.f32 %v7727_v57, %v1306_v49 }
 0x2b3   : > { %v1596_v52 = vpop.f32.mrf.mxu2  ;;  %v5865_v5 = vld [vmem:[#allocation2 + $0x20] sm:$0xf] }
 0x2b4   : > { %2162 = vst [vmem:[#allocation2 + $0x28] sm:$0xf] %v2098_v50  ;;  %v1402_v54 = vmax.f32 %v1307_v51, 0.0  ;;  %v1597_v58 = vadd.f32 %v7655_v18, %v1596_v52  ;;  %2940 = vmatmul.bf16.gmra.mxu1 %v5894_v47 }
 0x2b5   : > { %v1884_v55 = vpop.f32.mrf.mxu3 }
 0x2b6   : > { %v1885_v33 = vadd.f32 %v7772_v13, %v1884_v55  ;;  %v1444_v59 = vpack.c.bf16 %v1402_v54, %v1401_v53  ;;  %v1719_v1 = vmax.f32 %v1597_v58, 0.0 }
 0x2b8   : > { %v2035_v61 = vmax.f32 %v1885_v33, 0.0  ;;  %1638 = vmatmul.bf16.gmra.mxu2 %v1444_v59  ;;  %v1770_v17 = vpack.c.bf16 %v1719_v1, %v1718_v10 }
 0x2b9   : > { %v1309_v62 = vpop.f32.mrf.mxu1 }
 0x2ba   : > { %v2099_v0 = vpack.c.bf16 %v2035_v61, %v2035_v61  ;;  %v1310_v2 = vadd.f32 %v7727_v57, %v1309_v62 }
 0x2bb   : > { %v6736_v6 = vld [vmem:[#allocation2 + $0x24] sm:$0xf0]  ;;  %v1599_v7 = vpop.f32.mrf.mxu2 }
 0x2bc   : > { %2163 = vst [vmem:[#allocation2 + $0x30] sm:$0xf] %v2099_v0  ;;  %v5866_v11 = vor.u32 %v6736_v6, %v5865_v5  ;;  %v1403_v24 = vmax.f32 %v1310_v2, 0.0  ;;  %v1600_v36 = vadd.f32 %v7655_v18, %v1599_v7 }
 0x2bd   : > { %v1886_v14 = vpop.f32.mrf.mxu3 }
 0x2be   : > { %v1887_v16 = vadd.f32 %v7772_v13, %v1886_v14  ;;  %2756 = vmatmul.bf16.gmra.mxu0 %v5866_v11  ;;  %v1720_v46 = vmax.f32 %v1600_v36, 0.0 }
 0x2c0   : > { %v2036_v19 = vmax.f32 %v1887_v16, 0.0 }
 0x2c1   : > { %v1311_v20 = vpop.f32.mrf.mxu1 }
 0x2c2   : > { %v2100_v21 = vpack.c.bf16 %v2036_v19, %v2036_v19  ;;  %1928 = vmatmul.bf16.gmra.mxu3 %v1770_v17  ;;  %v1312_v22 = vadd.f32 %v7727_v57, %v1311_v20  ;;  %v6811_v19 = vld [vmem:[%s9085_s1 + $0x100] sm:$0xff] }
 0x2c3   : > { %v1601_v23 = vpop.f32.mrf.mxu2  ;;  %v5873_v41 = vld [vmem:[#allocation2 + $0x30] sm:$0xf]  ;;  %3249 = vmatpush.bf16.msrb.mxu2 %v6811_v19 }
 0x2c4   : > { %2164 = vst [vmem:[#allocation2 + $0x38] sm:$0xf] %v2100_v21  ;;  %v1404_v26 = vmax.f32 %v1312_v22, 0.0  ;;  %v1602_v31 = vadd.f32 %v7655_v18, %v1601_v23 }
 0x2c5   : > { %v1889_v29 = vpop.f32.mrf.mxu3 }
 0x2c6   : > { %v1890_v30 = vadd.f32 %v7772_v13, %v1889_v29  ;;  %v1445_v34 = vpack.c.bf16 %v1404_v26, %v1403_v24  ;;  %v1721_v40 = vmax.f32 %v1602_v31, 0.0  ;;  %v6822_v26 = vld [vmem:[%s9085_s1 + $0x158] sm:$0xff] }
 0x2c7   : > { %3581 = vmatpush.bf16.msra.mxu3 %v6822_v26 }
 0x2c8   : > { %v2037_v37 = vmax.f32 %v1890_v30, 0.0  ;;  %1643 = vmatmul.bf16.gmra.mxu2 %v1445_v34  ;;  %v1771_v51 = vpack.c.bf16 %v1721_v40, %v1720_v46  ;;  %v6745_v40 = vld [vmem:[#allocation2 + $0x74] sm:$0xf] }
 0x2c9   : > { %v1314_v38 = vpop.f32.mrf.mxu1 }
 0x2ca   : > { %v2101_v39 = vpack.c.bf16 %v2037_v37, %v2037_v37  ;;  %v1315_v53 = vadd.f32 %v7727_v57, %v1314_v38 }
 0x2cb   : > { %v6738_v42 = vld [vmem:[#allocation2 + $0x34] sm:$0xf0]  ;;  %v1604_v43 = vpop.f32.mrf.mxu2 }
 0x2cc   : > { %2165 = vst [vmem:[#allocation2 + $0x40] sm:$0xf] %v2101_v39  ;;  %v5874_v56 = vor.u32 %v6738_v42, %v5873_v41  ;;  %v1405_v59 = vmax.f32 %v1315_v53, 0.0  ;;  %v1605_v5 = vadd.f32 %v7655_v18, %v1604_v43  ;;  %v5907_v41 = vld [vmem:[#allocation2 + $0x78] sm:$0xf0] }
 0x2cd   : > { %v1891_v49 = vpop.f32.mrf.mxu3  ;;  %v5910_v44 = vor.u32 %v6745_v40, %v5907_v41 }
 0x2ce   : > { %v1892_v50 = vadd.f32 %v7772_v13, %v1891_v49  ;;  %2761 = vmatmul.bf16.gmra.mxu0 %v5874_v56  ;;  %v1722_v14 = vmax.f32 %v1605_v5, 0.0 }
 0x2d0   : > { %v2038_v52 = vmax.f32 %v1892_v50, 0.0 }
 0x2d1   : > { %v1316_v54 = vpop.f32.mrf.mxu1 }
 0x2d2   : > { %v2102_v55 = vpack.c.bf16 %v2038_v52, %v2038_v52  ;;  %1933 = vmatmul.bf16.gmra.mxu3 %v1771_v51  ;;  %v1317_v33 = vadd.f32 %v7727_v57, %v1316_v54  ;;  %v6743_v57 = vld [vmem:[#allocation2 + $0x64] sm:$0xf]  ;;  %v7843_v52 = vld [vmem:[%s9088_s4 + $0x2] ss:$0 sm:$0xff] }
 0x2d3   : > { %v1606_v58 = vpop.f32.mrf.mxu2  ;;  %v5881_v9 = vld [vmem:[#allocation2 + $0x40] sm:$0xf]  ;;  %v5902_v17 = vor.u32 %v6743_v57, %v5899_v12 }
 0x2d4   : > { %2166 = vst [vmem:[#allocation2 + $0x48] sm:$0xf] %v2102_v55  ;;  %v1406_v60 = vmax.f32 %v1317_v33, 0.0  ;;  %v1607_v0 = vadd.f32 %v7655_v18, %v1606_v58 }
 0x2d5   : > { %v1894_v61 = vpop.f32.mrf.mxu3  ;;  %2945 = vmatmul.bf16.gmra.mxu1 %v5902_v17  ;;  %v6904_v17 = vld [vmem:[%s9086_s2 + $0xe8] sm:$0xff] }
 0x2d6   : > { %v1895_v62 = vadd.f32 %v7772_v13, %v1894_v61  ;;  %v1446_v1 = vpack.c.bf16 %v1406_v60, %v1405_v59  ;;  %v1723_v8 = vmax.f32 %v1607_v0, 0.0  ;;  %v6747_v0 = vld [vmem:[#allocation2 + $0x84] sm:$0xf]  ;;  %4627 = vmatpush.bf16.msra.mxu1 %v6904_v17 }
 0x2d8   : > { %v2039_v6 = vmax.f32 %v1895_v62, 0.0  ;;  %1648 = vmatmul.bf16.gmra.mxu2 %v1446_v1  ;;  %v1772_v21 = vpack.c.bf16 %v1723_v8, %v1722_v14  ;;  %v5915_v1 = vld [vmem:[#allocation2 + $0x88] sm:$0xf0] }
 0x2d9   : > { %v7847_v62 = vpop.f32.mrf.mxu1 }
 0x2da   : > { %v2103_v7 = vpack.c.bf16 %v2039_v6, %v2039_v6 }
 0x2db   : > { %v6740_v10 = vld [vmem:[#allocation2 + $0x44] sm:$0xf0]  ;;  %v1609_v11 = vpop.f32.mrf.mxu2 }
 0x2dc   : > { %2167 = vst [vmem:[#allocation2 + $0x50] sm:$0xf] %v2103_v7  ;;  %v5882_v16 = vor.u32 %v6740_v10, %v5881_v9  ;;  %v1610_v30 = vadd.f32 %v7655_v18, %v1609_v11  ;;  %v5918_v7 = vor.u32 %v6747_v0, %v5915_v1 }
 0x2dd   : > { %v1896_v2 = vpop.f32.mrf.mxu3 }
 0x2de   : > { %v1897_v20 = vadd.f32 %v7772_v13, %v1896_v2  ;;  %2766 = vmatmul.bf16.gmra.mxu0 %v5882_v16  ;;  %v1724_v42 = vmax.f32 %v1610_v30, 0.0  ;;  %v6896_v16 = vld [vmem:[%s9086_s2 + $0xa8] sm:$0xff]  ;;  %v6749_v30 = vld [vmem:[#allocation2 + $0x94] sm:$0xf] }
 0x2df   : > { %4458 = vmatpush.bf16.msra.mxu0 %v6896_v16 }
 0x2e0   : > { %v2040_v22 = vmax.f32 %v1897_v20, 0.0 }
 0x2e1   : > { %v7850_v14 = vpop.f32.mrf.mxu1 }
 0x2e2   : > { %v2104_v23 = vpack.c.bf16 %v2040_v22, %v2040_v22  ;;  %1938 = vmatmul.bf16.gmra.mxu3 %v1772_v21 }
 0x2e3   : > { %v1611_v24 = vpop.f32.mrf.mxu2  ;;  %v5889_v37 = vld [vmem:[#allocation2 + $0x50] sm:$0xf] }
 0x2e4   : > { %2168 = vst [vmem:[#allocation2 + $0x58] sm:$0xf] %v2104_v23  ;;  %v1612_v29 = vadd.f32 %v7655_v18, %v1611_v24 }
 0x2e5   : > { %v1899_v27 = vpop.f32.mrf.mxu3  ;;  %2950 = vmatmul.bf16.gmra.mxu1 %v5910_v44 }
 0x2e6   : > { %v1900_v28 = vadd.f32 %v7772_v13, %v1899_v27  ;;  %v1725_v36 = vmax.f32 %v1612_v29, 0.0 }
 0x2e8   : > { %v2041_v31 = vmax.f32 %v1900_v28, 0.0  ;;  %v1773_v56 = vpack.c.bf16 %v1725_v36, %v1724_v42  ;;  %v6914_v42 = vld [vmem:[%s9087_s3 + $0x38] sm:$0xff] }
 0x2e9   : > { %4958 = vmatpush.bf16.msra.mxu2 %v6914_v42 }
 0x2ea   : > { %v2105_v34 = vpack.c.bf16 %v2041_v31, %v2041_v31  ;;  %v5923_v31 = vld [vmem:[#allocation2 + $0x98] sm:$0xf0] }
 0x2eb   : > { %v6742_v38 = vld [vmem:[#allocation2 + $0x54] sm:$0xf0]  ;;  %v1614_v39 = vpop.f32.mrf.mxu2  ;;  %v7861_v29 = vpop.f32.mrf.mxu1 }
 0x2ec   : > { %2169 = vst [vmem:[#allocation2 + $0x60] sm:$0xf] %v2105_v34  ;;  %v5890_v43 = vor.u32 %v6742_v38, %v5889_v37  ;;  %v1615_v54 = vadd.f32 %v7843_v52, %v1614_v39  ;;  %v5926_v37 = vor.u32 %v6749_v30, %v5923_v31 }
 0x2ed   : > { %v1901_v45 = vpop.f32.mrf.mxu3 }
 0x2ee   : > { %v1902_v46 = vadd.f32 %v7772_v13, %v1901_v45  ;;  %2771 = vmatmul.bf16.gmra.mxu0 %v5890_v43  ;;  %v1726_v5 = vmax.f32 %v1615_v54, 0.0 }
 0x2f0   : > { %v2042_v47 = vmax.f32 %v1902_v46, 0.0 }
 0x2f2   : > { %v2106_v18 = vpack.c.bf16 %v2042_v47, %v2042_v47  ;;  %1943 = vmatmul.bf16.gmra.mxu3 %v1773_v56 }
 0x2f3   : > { %v1616_v49 = vpop.f32.mrf.mxu2  ;;  %v5897_v59 = vld [vmem:[#allocation2 + $0x60] sm:$0xf]  ;;  %v7867_v45 = vpop.f32.mrf.mxu1 }
 0x2f4   : > { %2170 = vst [vmem:[#allocation2 + $0x68] sm:$0xf] %v2106_v18  ;;  %v1617_v53 = vadd.f32 %v7843_v52, %v1616_v49 }
 0x2f5   : > { %v1904_v50 = vpop.f32.mrf.mxu3  ;;  %2955 = vmatmul.bf16.gmra.mxu1 %v5918_v7 }
 0x2f6   : > { %v1905_v51 = vadd.f32 %v7772_v13, %v1904_v50  ;;  %v1727_v58 = vmax.f32 %v1617_v53, 0.0 }
 0x2f8   : > { %v2043_v55 = vmax.f32 %v1905_v51, 0.0  ;;  %v1774_v10 = vpack.c.bf16 %v1727_v58, %v1726_v5  ;;  %v6751_v58 = vld [vmem:[#allocation2 + $0xa4] sm:$0xf] }
 0x2fa   : > { %v2107_v33 = vpack.c.bf16 %v2043_v55, %v2043_v55 }
 0x2fb   : > { %v6744_v60 = vld [vmem:[#allocation2 + $0x64] sm:$0xf0]  ;;  %v1619_v61 = vpop.f32.mrf.mxu2 }
 0x2fc   : > { %2171 = vst [vmem:[#allocation2 + $0x70] sm:$0xf] %v2107_v33  ;;  %v5898_v6 = vor.u32 %v6744_v60, %v5897_v59  ;;  %v1620_v21 = vadd.f32 %v7843_v52, %v1619_v61  ;;  %v5931_v59 = vld [vmem:[#allocation2 + $0xa8] sm:$0xf0]  ;;  %v7875_v61 = vld [vmem:[%s9088_s4 + $0x4] ss:$0 sm:$0xff] }
 0x2fd   : > { %v1906_v8 = vpop.f32.mrf.mxu3  ;;  %v5934_v5 = vor.u32 %v6751_v58, %v5931_v59 }
 0x2fe   : > { %v1907_v9 = vadd.f32 %v7772_v13, %v1906_v8  ;;  %2776 = vmatmul.bf16.gmra.mxu0 %v5898_v6  ;;  %v1728_v34 = vmax.f32 %v1620_v21, 0.0 }
 0x2ff   : > { %v7877_v1 = vpop.f32.mrf.mxu1 }
 0x300   : > { %v2044_v11 = vmax.f32 %v1907_v9, 0.0 }
 0x302   : > { %v2108_v57 = vpack.c.bf16 %v2044_v11, %v2044_v11  ;;  %1948 = vmatmul.bf16.gmra.mxu3 %v1774_v10 }
 0x303   : > { %v1621_v12 = vpop.f32.mrf.mxu2  ;;  %v5905_v26 = vld [vmem:[#allocation2 + $0x70] sm:$0xf] }
 0x304   : > { %2172 = vst [vmem:[#allocation2 + $0x78] sm:$0xf] %v2108_v57  ;;  %v1622_v20 = vadd.f32 %v7843_v52, %v1621_v12 }
 0x305   : > { %v1909_v19 = vpop.f32.mrf.mxu3  ;;  %2960 = vmatmul.bf16.gmra.mxu1 %v5926_v37 }
 0x306   : > { %v1910_v2 = vadd.f32 %v7772_v13, %v1909_v19  ;;  %v1729_v24 = vmax.f32 %v1622_v20, 0.0 }
 0x307   : > { %v7883_v19 = vpop.f32.mrf.mxu1 }
 0x308   : > { %v2045_v22 = vmax.f32 %v1910_v2, 0.0  ;;  %v1775_v40 = vpack.c.bf16 %v1729_v24, %v1728_v34  ;;  %v6821_v2 = vld [vmem:[%s9085_s1 + $0x150] sm:$0xff] }
 0x309   : > { %3582 = vmatpush.bf16.msra.mxu3 %v6821_v2 }
 0x30a   : > { %v2109_v23 = vpack.c.bf16 %v2045_v22, %v2045_v22 }
 0x30b   : > { %v6746_v27 = vld [vmem:[#allocation2 + $0x74] sm:$0xf0]  ;;  %v1624_v28 = vpop.f32.mrf.mxu2 }
 0x30c   : > { %2173 = vst [vmem:[#allocation2 + $0x80] sm:$0xf] %v2109_v23  ;;  %v5906_v36 = vor.u32 %v6746_v27, %v5905_v26  ;;  %v1625_v18 = vadd.f32 %v7843_v52, %v1624_v28 }
 0x30d   : > { %v1911_v38 = vpop.f32.mrf.mxu3 }
 0x30e   : > { %v1912_v39 = vadd.f32 %v7772_v13, %v1911_v38  ;;  %2781 = vmatmul.bf16.gmra.mxu0 %v5906_v36  ;;  %v1730_v60 = vmax.f32 %v1625_v18, 0.0 }
 0x310   : > { %v2046_v41 = vmax.f32 %v1912_v39, 0.0  ;;  %v6753_v39 = vld [vmem:[#allocation2 + $0xb4] sm:$0xf] }
 0x311   : > { %v7892_v42 = vpop.f32.mrf.mxu1 }
 0x312   : > { %v2110_v43 = vpack.c.bf16 %v2046_v41, %v2046_v41  ;;  %1953 = vmatmul.bf16.gmra.mxu3 %v1775_v40  ;;  %v5939_v40 = vld [vmem:[#allocation2 + $0xb8] sm:$0xf0] }
 0x313   : > { %v1626_v44 = vpop.f32.mrf.mxu2  ;;  %v5913_v53 = vld [vmem:[#allocation2 + $0x80] sm:$0xf] }
 0x314   : > { %2174 = vst [vmem:[#allocation2 + $0x88] sm:$0xf] %v2110_v43  ;;  %v1627_v47 = vadd.f32 %v7843_v52, %v1626_v44  ;;  %v5942_v44 = vor.u32 %v6753_v39, %v5939_v40 }
 0x315   : > { %v1914_v46 = vpop.f32.mrf.mxu3  ;;  %2965 = vmatmul.bf16.gmra.mxu1 %v5934_v5 }
 0x316   : > { %v1915_v56 = vadd.f32 %v7772_v13, %v1914_v46  ;;  %v1731_v51 = vmax.f32 %v1627_v47, 0.0 }
 0x318   : > { %v2047_v49 = vmax.f32 %v1915_v56, 0.0  ;;  %v1776_v8 = vpack.c.bf16 %v1731_v51, %v1730_v60 }
 0x31a   : > { %v2111_v50 = vpack.c.bf16 %v2047_v49, %v2047_v49 }
 0x31b   : > { %v2747_v54 = vpop.f32.mrf.mxu0  ;;  %v6748_v55 = vld [vmem:[#allocation2 + $0x84] sm:$0xf0]  ;;  %v1629_v33 = vpop.f32.mrf.mxu2 }
 0x31c   : > { %2175 = vst [vmem:[#allocation2 + $0x90] sm:$0xf] %v2111_v50  ;;  %v5914_v0 = vor.u32 %v6748_v55, %v5913_v53  ;;  %v2748_v9 = vadd.f32 %v7875_v61, %v2747_v54  ;;  %v7898_v55 = vpop.f32.mrf.mxu1 }
 0x31d   : > { %v1916_v6 = vpop.f32.mrf.mxu3 }
 0x31e   : > { %v1917_v7 = vadd.f32 %v7772_v13, %v1916_v6  ;;  %2786 = vmatmul.bf16.gmra.mxu0 %v5914_v0  ;;  %v2917_v16 = vadd.f32 %v7847_v62, %v2748_v9  ;;  %v1630_v62 = vadd.f32 %v7843_v52, %v1629_v33 }
 0x320   : > { %v2048_v10 = vmax.f32 %v1917_v7, 0.0  ;;  %v3076_v24 = vmax.f32 %v2917_v16, 0.0  ;;  %v6755_v16 = vld [vmem:[#allocation2 + $0xc4] sm:$0xf] }
 0x322   : > { %v2112_v11 = vpack.c.bf16 %v2048_v10, %v2048_v10  ;;  %1958 = vmatmul.bf16.gmra.mxu3 %v1776_v8 }
 0x323   : > { %v2749_v57 = vpop.f32.mrf.mxu0  ;;  %v1631_v12 = vpop.f32.mrf.mxu2  ;;  %v5921_v34 = vld [vmem:[#allocation2 + $0x90] sm:$0xf] }
 0x324   : > { %2176 = vst [vmem:[#allocation2 + $0x98] sm:$0xf] %v2112_v11  ;;  %v2750_v17 = vadd.f32 %v7875_v61, %v2749_v57  ;;  %v1632_v23 = vadd.f32 %v7843_v52, %v1631_v12 }
 0x325   : > { %v1919_v20 = vpop.f32.mrf.mxu3  ;;  %2970 = vmatmul.bf16.gmra.mxu1 %v5942_v44 }
 0x326   : > { %v2919_v21 = vadd.f32 %v7850_v14, %v2750_v17  ;;  %v1920_v22 = vadd.f32 %v7772_v13, %v1919_v20  ;;  %v1733_v31 = vmax.f32 %v1632_v23, 0.0  ;;  %v1732_v14 = vmax.f32 %v1630_v62, 0.0  ;;  %v5947_v17 = vld [vmem:[#allocation2 + $0xc8] sm:$0xf0]  ;;  %v7904_v20 = vpop.f32.mrf.mxu1 }
 0x328   : > { %v3077_v26 = vmax.f32 %v2919_v21, 0.0  ;;  %v2049_v27 = vmax.f32 %v1920_v22, 0.0  ;;  %v1777_v56 = vpack.c.bf16 %v1733_v31, %v1732_v14  ;;  %v5950_v22 = vor.u32 %v6755_v16, %v5947_v17 }
 0x32a   : > { %v3140_v28 = vpack.c.bf16 %v3077_v26, %v3076_v24  ;;  %v2113_v30 = vpack.c.bf16 %v2049_v27, %v2049_v27 }
 0x32b   : > { %v2752_v36 = vpop.f32.mrf.mxu0  ;;  %v6750_v37 = vld [vmem:[#allocation2 + $0x94] sm:$0xf0]  ;;  %v1634_v38 = vpop.f32.mrf.mxu2 }
 0x32c   : > { %2177 = vst [vmem:[#allocation2 + $0xa0] sm:$0xf] %v2113_v30  ;;  %3250 = vmatmul.bf16.vlgmr.msrb.gmra.mxu2 %v3140_v28  ;;  %v5922_v41 = vor.u32 %v6750_v37, %v5921_v34  ;;  %v2753_v47 = vadd.f32 %v7875_v61, %v2752_v36  ;;  %v1635_v5 = vadd.f32 %v7843_v52, %v1634_v38  ;;  %v6895_v37 = vld [vmem:[%s9086_s2 + $0xa0] sm:$0xff] }
 0x32d   : > { %v1921_v43 = vpop.f32.mrf.mxu3  ;;  %v6903_v38 = vld [vmem:[%s9086_s2 + $0xe0] sm:$0xff]  ;;  %4459 = vmatpush.bf16.msra.mxu0 %v6895_v37 }
 0x32e   : > { %v1922_v46 = vadd.f32 %v7772_v13, %v1921_v43  ;;  %2791 = vmatmul.bf16.gmra.mxu0 %v5922_v41  ;;  %v2922_v53 = vadd.f32 %v7861_v29, %v2753_v47  ;;  %v1734_v2 = vmax.f32 %v1635_v5, 0.0  ;;  %v7910_v36 = vpop.f32.mrf.mxu1  ;;  %4628 = vmatpush.bf16.msra.mxu1 %v6903_v38  ;;  %v6759_v37 = vld [vmem:[#allocation2 + $0xe4] sm:$0xf]  ;;  %v5963_v38 = vld [vmem:[#allocation2 + $0xe8] sm:$0xf0] }
 0x330   : > { %v2050_v18 = vmax.f32 %v1922_v46, 0.0  ;;  %v3078_v0 = vmax.f32 %v2922_v53, 0.0 }
 0x332   : > { %v2114_v49 = vpack.c.bf16 %v2050_v18, %v2050_v18  ;;  %1963 = vmatmul.bf16.gmra.mxu3 %v1777_v56 }
 0x333   : > { %v2754_v50 = vpop.f32.mrf.mxu0  ;;  %v1636_v51 = vpop.f32.mrf.mxu2  ;;  %v5929_v10 = vld [vmem:[#allocation2 + $0xa0] sm:$0xf] }
 0x334   : > { %2178 = vst [vmem:[#allocation2 + $0xa8] sm:$0xf] %v2114_v49  ;;  %v2755_v54 = vadd.f32 %v7875_v61, %v2754_v50  ;;  %v1637_v60 = vadd.f32 %v7843_v52, %v1636_v51 }
 0x335   : > { %v1924_v33 = vpop.f32.mrf.mxu3  ;;  %2975 = vmatmul.bf16.gmra.mxu1 %v5950_v22 }
 0x336   : > { %v2924_v58 = vadd.f32 %v7867_v45, %v2755_v54  ;;  %v1925_v59 = vadd.f32 %v7772_v13, %v1924_v33  ;;  %v1735_v9 = vmax.f32 %v1637_v60, 0.0  ;;  %v6757_v54 = vld [vmem:[#allocation2 + $0xd4] sm:$0xf] }
 0x338   : > { %v3079_v6 = vmax.f32 %v2924_v58, 0.0  ;;  %v2051_v7 = vmax.f32 %v1925_v59, 0.0  ;;  %v1778_v24 = vpack.c.bf16 %v1735_v9, %v1734_v2  ;;  %v7922_v59 = vpop.f32.mrf.mxu1  ;;  %v6913_v9 = vld [vmem:[%s9087_s3 + $0x30] sm:$0xff] }
 0x339   : > { %4959 = vmatpush.bf16.msra.mxu2 %v6913_v9 }
 0x33a   : > { %v2115_v8 = vpack.c.bf16 %v2051_v7, %v2051_v7  ;;  %v3141_v29 = vpack.c.bf16 %v3079_v6, %v3078_v0 }
 0x33b   : > { %v2757_v11 = vpop.f32.mrf.mxu0  ;;  %v6752_v57 = vld [vmem:[#allocation2 + $0xa4] sm:$0xf0]  ;;  %v1639_v12 = vpop.f32.mrf.mxu2 }
 0x33c   : > { %2179 = vst [vmem:[#allocation2 + $0xb0] sm:$0xf] %v2115_v8  ;;  %3255 = vmatmul.bf16.gmra.mxu2 %v3141_v29  ;;  %v5930_v45 = vor.u32 %v6752_v57, %v5929_v10  ;;  %v2758_v62 = vadd.f32 %v7875_v61, %v2757_v11  ;;  %v1640_v43 = vadd.f32 %v7843_v52, %v1639_v12 }
 0x33d   : > { %v1926_v21 = vpop.f32.mrf.mxu3 }
 0x33e   : > { %v1927_v23 = vadd.f32 %v7772_v13, %v1926_v21  ;;  %2796 = vmatmul.bf16.gmra.mxu0 %v5930_v45  ;;  %v2927_v31 = vadd.f32 %v7877_v1, %v2758_v62  ;;  %v1736_v33 = vmax.f32 %v1640_v43, 0.0 }
 0x340   : > { %v2052_v26 = vmax.f32 %v1927_v23, 0.0  ;;  %v3080_v41 = vmax.f32 %v2927_v31, 0.0  ;;  %v7931_v16 = vpop.f32.mrf.mxu1 }
 0x342   : > { %v2116_v27 = vpack.c.bf16 %v2052_v26, %v2052_v26  ;;  %1968 = vmatmul.bf16.gmra.mxu3 %v1778_v24 }
 0x343   : > { %v2759_v28 = vpop.f32.mrf.mxu0  ;;  %v1641_v30 = vpop.f32.mrf.mxu2  ;;  %v5937_v49 = vld [vmem:[#allocation2 + $0xb0] sm:$0xf] }
 0x344   : > { %2180 = vst [vmem:[#allocation2 + $0xb8] sm:$0xf] %v2116_v27  ;;  %v2760_v34 = vadd.f32 %v7875_v61, %v2759_v28  ;;  %v1642_v1 = vadd.f32 %v7843_v52, %v1641_v30 }
 0x345   : > { %v1929_v39 = vpop.f32.mrf.mxu3 }
 0x346   : > { %v2929_v40 = vadd.f32 %v7883_v19, %v2760_v34  ;;  %v1930_v14 = vadd.f32 %v7772_v13, %v1929_v39  ;;  %v1737_v47 = vmax.f32 %v1642_v1, 0.0  ;;  %v5955_v19 = vld [vmem:[#allocation2 + $0xd8] sm:$0xf0]  ;;  %v5966_v1 = vor.u32 %v6759_v37, %v5963_v38 }
 0x347   : > { %v5958_v0 = vor.u32 %v6757_v54, %v5955_v19 }
 0x348   : > { %v3081_v44 = vmax.f32 %v2929_v40, 0.0  ;;  %v2053_v46 = vmax.f32 %v1930_v14, 0.0  ;;  %v1779_v6 = vpack.c.bf16 %v1737_v47, %v1736_v33 }
 0x349   : > { %2980 = vmatmul.bf16.gmra.mxu1 %v5958_v0 }
 0x34a   : > { %v2117_v56 = vpack.c.bf16 %v2053_v46, %v2053_v46  ;;  %v3142_v18 = vpack.c.bf16 %v3081_v44, %v3080_v41 }
 0x34b   : > { %v2762_v50 = vpop.f32.mrf.mxu0  ;;  %v6754_v51 = vld [vmem:[#allocation2 + $0xb4] sm:$0xf0]  ;;  %v1644_v53 = vpop.f32.mrf.mxu2 }
 0x34c   : > { %2181 = vst [vmem:[#allocation2 + $0xc0] sm:$0xf] %v2117_v56  ;;  %3260 = vmatmul.bf16.gmra.mxu2 %v3142_v18  ;;  %v5938_v58 = vor.u32 %v6754_v51, %v5937_v49  ;;  %v2763_v7 = vadd.f32 %v7875_v61, %v2762_v50  ;;  %v1645_v23 = vadd.f32 %v7843_v52, %v1644_v53  ;;  %v6820_v53 = vld [vmem:[%s9085_s1 + $0x148] sm:$0xff] }
 0x34d   : > { %v1931_v60 = vpop.f32.mrf.mxu3  ;;  %3583 = vmatpush.bf16.msra.mxu3 %v6820_v53 }
 0x34e   : > { %v1932_v5 = vadd.f32 %v7772_v13, %v1931_v60  ;;  %2801 = vmatmul.bf16.gmra.mxu0 %v5938_v58  ;;  %v2932_v57 = vadd.f32 %v7892_v42, %v2763_v7  ;;  %v1738_v39 = vmax.f32 %v1645_v23, 0.0 }
 0x350   : > { %v2054_v8 = vmax.f32 %v1932_v5, 0.0  ;;  %v3082_v22 = vmax.f32 %v2932_v57, 0.0  ;;  %v5971_v57 = vld [vmem:[#allocation2 + $0xf8] sm:$0xf0] }
 0x352   : > { %v2118_v29 = vpack.c.bf16 %v2054_v8, %v2054_v8  ;;  %1973 = vmatmul.bf16.gmra.mxu3 %v1779_v6  ;;  %v7937_v40 = vpop.f32.mrf.mxu1 }
 0x353   : > { %v2764_v10 = vpop.f32.mrf.mxu0  ;;  %v1646_v11 = vpop.f32.mrf.mxu2  ;;  %v5945_v28 = vld [vmem:[#allocation2 + $0xc0] sm:$0xf] }
 0x354   : > { %2182 = vst [vmem:[#allocation2 + $0xc8] sm:$0xf] %v2118_v29  ;;  %v2765_v12 = vadd.f32 %v7875_v61, %v2764_v10  ;;  %v1647_v21 = vadd.f32 %v7843_v52, %v1646_v11  ;;  %v6761_v11 = vld [vmem:[#allocation2 + $0xf4] sm:$0xf] }
 0x355   : > { %v1934_v17 = vpop.f32.mrf.mxu3 }
 0x356   : > { %v2934_v2 = vadd.f32 %v7898_v55, %v2765_v12  ;;  %v1935_v45 = vadd.f32 %v7772_v13, %v1934_v17  ;;  %v1739_v27 = vmax.f32 %v1647_v21, 0.0  ;;  %v5974_v17 = vor.u32 %v6761_v11, %v5971_v57  ;;  %v6765_v11 = vld [vmem:[#allocation2 + $0x114] sm:$0xf]  ;;  %v5987_v57 = vld [vmem:[#allocation2 + $0x118] sm:$0xf0] }
 0x358   : > { %v3083_v24 = vmax.f32 %v2934_v2, 0.0  ;;  %v2055_v62 = vmax.f32 %v1935_v45, 0.0  ;;  %v1780_v43 = vpack.c.bf16 %v1739_v27, %v1738_v39 }
 0x359   : > { %2985 = vmatmul.bf16.gmra.mxu1 %v5966_v1 }
 0x35a   : > { %v2119_v26 = vpack.c.bf16 %v2055_v62, %v2055_v62  ;;  %v3143_v42 = vpack.c.bf16 %v3083_v24, %v3082_v22  ;;  %v7943_v51 = vpop.f32.mrf.mxu1 }
 0x35b   : > { %v2767_v30 = vpop.f32.mrf.mxu0  ;;  %v6756_v31 = vld [vmem:[#allocation2 + $0xc4] sm:$0xf0]  ;;  %v1649_v34 = vpop.f32.mrf.mxu2 }
 0x35c   : > { %2183 = vst [vmem:[#allocation2 + $0xd0] sm:$0xf] %v2119_v26  ;;  %3265 = vmatmul.bf16.gmra.mxu2 %v3143_v42  ;;  %v5946_v55 = vor.u32 %v6756_v31, %v5945_v28  ;;  %v2768_v44 = vadd.f32 %v7875_v61, %v2767_v30 }
 0x35d   : > { %v1936_v14 = vpop.f32.mrf.mxu3 }
 0x35e   : > { %v1937_v41 = vadd.f32 %v7772_v13, %v1936_v14  ;;  %2806 = vmatmul.bf16.gmra.mxu0 %v5946_v55  ;;  %v2937_v49 = vadd.f32 %v7904_v20, %v2768_v44  ;;  %v1650_v20 = vadd.f32 %v7843_v52, %v1649_v34 }
 0x360   : > { %v2056_v46 = vmax.f32 %v1937_v41, 0.0  ;;  %v3084_v60 = vmax.f32 %v2937_v49, 0.0  ;;  %v1740_v12 = vmax.f32 %v1650_v20, 0.0 }
 0x362   : > { %v2120_v56 = vpack.c.bf16 %v2056_v46, %v2056_v46  ;;  %1978 = vmatmul.bf16.gmra.mxu3 %v1780_v43  ;;  %v6763_v43 = vld [vmem:[#allocation2 + $0x104] sm:$0xf] }
 0x363   : > { %v2769_v47 = vpop.f32.mrf.mxu0  ;;  %v1651_v18 = vpop.f32.mrf.mxu2  ;;  %v5953_v9 = vld [vmem:[#allocation2 + $0xd0] sm:$0xf] }
 0x364   : > { %2184 = vst [vmem:[#allocation2 + $0xd8] sm:$0xf] %v2120_v56  ;;  %v2770_v50 = vadd.f32 %v7875_v61, %v2769_v47  ;;  %v1652_v58 = vadd.f32 %v7843_v52, %v1651_v18  ;;  %v7957_v52 = vld [vmem:[%s9088_s4 + $0x3] ss:$0 sm:$0xff] }
 0x365   : > { %v1939_v54 = vpop.f32.mrf.mxu3 }
 0x366   : > { %v2939_v19 = vadd.f32 %v7910_v36, %v2770_v50  ;;  %v1940_v33 = vadd.f32 %v7772_v13, %v1939_v54  ;;  %v1741_v7 = vmax.f32 %v1652_v58, 0.0  ;;  %v7952_v36 = vpop.f32.mrf.mxu1  ;;  %v6894_v58 = vld [vmem:[%s9086_s2 + $0x98] sm:$0xff] }
 0x367   : > { %4460 = vmatpush.bf16.msra.mxu0 %v6894_v58 }
 0x368   : > { %v3085_v0 = vmax.f32 %v2939_v19, 0.0  ;;  %v2057_v5 = vmax.f32 %v1940_v33, 0.0  ;;  %v1781_v21 = vpack.c.bf16 %v1741_v7, %v1740_v12 }
 0x369   : > { %2990 = vmatmul.bf16.gmra.mxu1 %v5974_v17 }
 0x36a   : > { %v2121_v6 = vpack.c.bf16 %v2057_v5, %v2057_v5  ;;  %v3144_v8 = vpack.c.bf16 %v3085_v0, %v3084_v60  ;;  %v6902_v60 = vld [vmem:[%s9086_s2 + $0xd8] sm:$0xff] }
 0x36b   : > { %v2772_v29 = vpop.f32.mrf.mxu0  ;;  %v6758_v10 = vld [vmem:[#allocation2 + $0xd4] sm:$0xf0]  ;;  %4629 = vmatpush.bf16.msra.mxu1 %v6902_v60 }
 0x36c   : > { %2185 = vst [vmem:[#allocation2 + $0xe0] sm:$0xf] %v2121_v6  ;;  %3270 = vmatmul.bf16.gmra.mxu2 %v3144_v8  ;;  %v5954_v13 = vor.u32 %v6758_v10, %v5953_v9  ;;  %v2773_v22 = vadd.f32 %v7875_v61, %v2772_v29 }
 0x36d   : > { %v1941_v2 = vpop.f32.mrf.mxu3 }
 0x36e   : > { %v1942_v45 = vadd.f32 %v7957_v52, %v1941_v2  ;;  %2811 = vmatmul.bf16.gmra.mxu0 %v5954_v13  ;;  %v2942_v26 = vadd.f32 %v7922_v59, %v2773_v22  ;;  %v7963_v42 = vpop.f32.mrf.mxu1  ;;  %v5979_v59 = vld [vmem:[#allocation2 + $0x108] sm:$0xf0] }
 0x36f   : > { %v5982_v56 = vor.u32 %v6763_v43, %v5979_v59  ;;  %v6912_v22 = vld [vmem:[%s9087_s3 + $0x28] sm:$0xff] }
 0x370   : > { %v2058_v23 = vmax.f32 %v1942_v45, 0.0  ;;  %v3086_v34 = vmax.f32 %v2942_v26, 0.0  ;;  %4960 = vmatpush.bf16.msra.mxu2 %v6912_v22 }
 0x372   : > { %v2122_v24 = vpack.c.bf16 %v2058_v23, %v2058_v23  ;;  %1983 = vmatmul.bf16.gmra.mxu3 %v1781_v21 }
 0x373   : > { %v2774_v62 = vpop.f32.mrf.mxu0  ;;  %v5961_v14 = vld [vmem:[#allocation2 + $0xe0] sm:$0xf] }
 0x374   : > { %2186 = vst [vmem:[#allocation2 + $0xe8] sm:$0xf] %v2122_v24  ;;  %v2775_v27 = vadd.f32 %v7875_v61, %v2774_v62 }
 0x375   : > { %v1944_v28 = vpop.f32.mrf.mxu3 }
 0x376   : > { %v2944_v30 = vadd.f32 %v7931_v16, %v2775_v27  ;;  %v1945_v31 = vadd.f32 %v7957_v52, %v1944_v28  ;;  %v7967_v46 = vpop.f32.mrf.mxu1 }
 0x378   : > { %v3087_v37 = vmax.f32 %v2944_v30, 0.0  ;;  %v2059_v38 = vmax.f32 %v1945_v31, 0.0 }
 0x379   : > { %2995 = vmatmul.bf16.gmra.mxu1 %v5982_v56 }
 0x37a   : > { %v2123_v39 = vpack.c.bf16 %v2059_v38, %v2059_v38  ;;  %v3145_v55 = vpack.c.bf16 %v3087_v37, %v3086_v34 }
 0x37b   : > { %v2777_v1 = vpop.f32.mrf.mxu0  ;;  %v6760_v41 = vld [vmem:[#allocation2 + $0xe4] sm:$0xf0] }
 0x37c   : > { %2187 = vst [vmem:[#allocation2 + $0xf0] sm:$0xf] %v2123_v39  ;;  %3275 = vmatmul.bf16.gmra.mxu2 %v3145_v55  ;;  %v5962_v44 = vor.u32 %v6760_v41, %v5961_v14  ;;  %v2778_v18 = vadd.f32 %v7875_v61, %v2777_v1  ;;  %v6767_v41 = vld [vmem:[#allocation2 + $0x124] sm:$0xf] }
 0x37d   : > { %v1946_v47 = vpop.f32.mrf.mxu3 }
 0x37e   : > { %v1947_v16 = vadd.f32 %v7957_v52, %v1946_v47  ;;  %2816 = vmatmul.bf16.gmra.mxu0 %v5962_v44  ;;  %v2947_v54 = vadd.f32 %v7937_v40, %v2778_v18  ;;  %v7974_v33 = vpop.f32.mrf.mxu1 }
 0x380   : > { %v2060_v49 = vmax.f32 %v1947_v16, 0.0  ;;  %v3088_v40 = vmax.f32 %v2947_v54, 0.0 }
 0x382   : > { %v2124_v50 = vpack.c.bf16 %v2060_v49, %v2060_v49  ;;  %1988 = vmatmul.bf16.gmra.mxu3 %v7674_v4 }
 0x383   : > { %v2779_v53 = vpop.f32.mrf.mxu0  ;;  %v5969_v9 = vld [vmem:[#allocation2 + $0xf0] sm:$0xf] }
 0x384   : > { %2188 = vst [vmem:[#allocation2 + $0xf8] sm:$0xf] %v2124_v50  ;;  %v2780_v19 = vadd.f32 %v7875_v61, %v2779_v53 }
 0x385   : > { %v1949_v20 = vpop.f32.mrf.mxu3 }
 0x386   : > { %v2949_v0 = vadd.f32 %v7943_v51, %v2780_v19  ;;  %v1950_v4 = vadd.f32 %v7957_v52, %v1949_v20  ;;  %v7984_v13 = vpop.f32.mrf.mxu1  ;;  %v5990_v51 = vor.u32 %v6765_v11, %v5987_v57  ;;  %v6819_v19 = vld [vmem:[%s9085_s1 + $0x140] sm:$0xff] }
 0x387   : > { %3584 = vmatpush.bf16.msra.mxu3 %v6819_v19 }
 0x388   : > { %v3089_v5 = vmax.f32 %v2949_v0, 0.0  ;;  %v2061_v6 = vmax.f32 %v1950_v4, 0.0 }
 0x389   : > { %3000 = vmatmul.bf16.gmra.mxu1 %v5990_v51 }
 0x38a   : > { %v2125_v7 = vpack.c.bf16 %v2061_v6, %v2061_v6  ;;  %v3146_v8 = vpack.c.bf16 %v3089_v5, %v3088_v40 }
 0x38b   : > { %v2782_v29 = vpop.f32.mrf.mxu0  ;;  %v6762_v10 = vld [vmem:[#allocation2 + $0xf4] sm:$0xf0] }
 0x38c   : > { %2189 = vst [vmem:[#allocation2 + $0x100] sm:$0xf] %v2125_v7  ;;  %3280 = vmatmul.bf16.gmra.mxu2 %v3146_v8  ;;  %v5970_v12 = vor.u32 %v6762_v10, %v5969_v9  ;;  %v2783_v45 = vadd.f32 %v7875_v61, %v2782_v29  ;;  %v6769_v8 = vld [vmem:[#allocation2 + $0x134] sm:$0xf]  ;;  %v6003_v9 = vld [vmem:[#allocation2 + $0x138] sm:$0xf0] }
 0x38d   : > { %v1951_v17 = vpop.f32.mrf.mxu3  ;;  %v6006_v11 = vor.u32 %v6769_v8, %v6003_v9 }
 0x38e   : > { %v1952_v2 = vadd.f32 %v7957_v52, %v1951_v17  ;;  %2821 = vmatmul.bf16.gmra.mxu0 %v5970_v12  ;;  %v2952_v62 = vadd.f32 %v7952_v36, %v2783_v45  ;;  %v7994_v27 = vpop.f32.mrf.mxu1  ;;  %v5995_v36 = vld [vmem:[#allocation2 + $0x128] sm:$0xf0]  ;;  %v8019_v45 = vld [vmem:[%s9088_s4 + $0x5] ss:$0 sm:$0xff] }
 0x38f   : > { %v5998_v44 = vor.u32 %v6767_v41, %v5995_v36  ;;  %v6771_v36 = vld [vmem:[#allocation2 + $0x144] sm:$0xf] }
 0x390   : > { %v2062_v21 = vmax.f32 %v1952_v2, 0.0  ;;  %v3090_v34 = vmax.f32 %v2952_v62, 0.0 }
 0x392   : > { %v2126_v23 = vpack.c.bf16 %v2062_v21, %v2062_v21  ;;  %1993 = vmatmul.bf16.gmra.mxu3 %v7690_v35 }
 0x393   : > { %v2784_v24 = vpop.f32.mrf.mxu0  ;;  %v5977_v35 = vld [vmem:[#allocation2 + $0x100] sm:$0xf] }
 0x394   : > { %2190 = vst [vmem:[#allocation2 + $0x108] sm:$0xf] %v2126_v23  ;;  %v2785_v26 = vadd.f32 %v7875_v61, %v2784_v24 }
 0x395   : > { %v1954_v28 = vpop.f32.mrf.mxu3 }
 0x396   : > { %v2954_v30 = vadd.f32 %v7963_v42, %v2785_v26  ;;  %v1955_v31 = vadd.f32 %v7957_v52, %v1954_v28  ;;  %v7998_v59 = vpop.f32.mrf.mxu1 }
 0x398   : > { %v3091_v37 = vmax.f32 %v2954_v30, 0.0  ;;  %v2063_v38 = vmax.f32 %v1955_v31, 0.0 }
 0x399   : > { %3005 = vmatmul.bf16.gmra.mxu1 %v5998_v44 }
 0x39a   : > { %v2127_v39 = vpack.c.bf16 %v2063_v38, %v2063_v38  ;;  %v3147_v55 = vpack.c.bf16 %v3091_v37, %v3090_v34 }
 0x39b   : > { %v2787_v14 = vpop.f32.mrf.mxu0  ;;  %v6764_v1 = vld [vmem:[#allocation2 + $0x104] sm:$0xf0] }
 0x39c   : > { %2191 = vst [vmem:[#allocation2 + $0x110] sm:$0xf] %v2127_v39  ;;  %3285 = vmatmul.bf16.gmra.mxu2 %v3147_v55  ;;  %v5978_v43 = vor.u32 %v6764_v1, %v5977_v35  ;;  %v2788_v47 = vadd.f32 %v7875_v61, %v2787_v14 }
 0x39d   : > { %v1956_v56 = vpop.f32.mrf.mxu3 }
 0x39e   : > { %v1957_v42 = vadd.f32 %v7957_v52, %v1956_v56  ;;  %2826 = vmatmul.bf16.gmra.mxu0 %v5978_v43  ;;  %v2957_v50 = vadd.f32 %v7967_v46, %v2788_v47  ;;  %v8005_v54 = vpop.f32.mrf.mxu1  ;;  %v6011_v43 = vld [vmem:[#allocation2 + $0x148] sm:$0xf0] }
 0x39f   : > { %v6014_v47 = vor.u32 %v6771_v36, %v6011_v43 }
 0x3a0   : > { %v2064_v16 = vmax.f32 %v1957_v42, 0.0  ;;  %v3092_v0 = vmax.f32 %v2957_v50, 0.0 }
 0x3a2   : > { %v2128_v18 = vpack.c.bf16 %v2064_v16, %v2064_v16  ;;  %1998 = vmatmul.bf16.gmra.mxu3 %v7706_v3 }
 0x3a3   : > { %v2789_v49 = vpop.f32.mrf.mxu0  ;;  %v5985_v5 = vld [vmem:[#allocation2 + $0x110] sm:$0xf] }
 0x3a4   : > { %2192 = vst [vmem:[#allocation2 + $0x118] sm:$0xf] %v2128_v18  ;;  %v2790_v53 = vadd.f32 %v7875_v61, %v2789_v49 }
 0x3a5   : > { %v1959_v58 = vpop.f32.mrf.mxu3 }
 0x3a6   : > { %v2959_v60 = vadd.f32 %v7974_v33, %v2790_v53  ;;  %v1960_v20 = vadd.f32 %v7957_v52, %v1959_v58  ;;  %v8012_v10 = vpop.f32.mrf.mxu1 }
 0x3a8   : > { %v3093_v3 = vmax.f32 %v2959_v60, 0.0  ;;  %v2065_v4 = vmax.f32 %v1960_v20, 0.0 }
 0x3a9   : > { %3010 = vmatmul.bf16.gmra.mxu1 %v6006_v11 }
 0x3aa   : > { %v2129_v40 = vpack.c.bf16 %v2065_v4, %v2065_v4  ;;  %v3148_v46 = vpack.c.bf16 %v3093_v3, %v3092_v0  ;;  %v6893_v0 = vld [vmem:[%s9086_s2 + $0x90] sm:$0xff] }
 0x3ab   : > { %v2792_v6 = vpop.f32.mrf.mxu0  ;;  %v6766_v7 = vld [vmem:[#allocation2 + $0x114] sm:$0xf0]  ;;  %v6901_v3 = vld [vmem:[%s9086_s2 + $0xd0] sm:$0xff]  ;;  %4461 = vmatpush.bf16.msra.mxu0 %v6893_v0 }
 0x3ac   : > { %2193 = vst [vmem:[#allocation2 + $0x120] sm:$0xf] %v2129_v40  ;;  %3290 = vmatmul.bf16.gmra.mxu2 %v3148_v46  ;;  %v5986_v29 = vor.u32 %v6766_v7, %v5985_v5  ;;  %v2793_v51 = vadd.f32 %v7875_v61, %v2792_v6  ;;  %4630 = vmatpush.bf16.msra.mxu1 %v6901_v3 }
 0x3ad   : > { %v1961_v33 = vpop.f32.mrf.mxu3 }
 0x3ae   : > { %v1962_v57 = vadd.f32 %v7957_v52, %v1961_v33  ;;  %2831 = vmatmul.bf16.gmra.mxu0 %v5986_v29  ;;  %v2962_v22 = vadd.f32 %v7984_v13, %v2793_v51  ;;  %v8024_v24 = vpop.f32.mrf.mxu1 }
 0x3af   : > { %v3251_v12 = vpop.f32.mrf.mxu2 }
 0x3b0   : > { %v2066_v17 = vmax.f32 %v1962_v57, 0.0  ;;  %v3252_v26 = vadd.f32 %v8019_v45, %v3251_v12  ;;  %v3094_v34 = vmax.f32 %v2962_v22, 0.0 }
 0x3b2   : > { %v2130_v2 = vpack.c.bf16 %v2066_v17, %v2066_v17  ;;  %2003 = vmatmul.bf16.gmra.mxu3 %v7716_v32  ;;  %v3411_v39 = vmax.f32 %v3252_v26, 0.0  ;;  %v6773_v17 = vld [vmem:[#allocation2 + $0x154] sm:$0xf] }
 0x3b3   : > { %v2794_v21 = vpop.f32.mrf.mxu0  ;;  %v5993_v14 = vld [vmem:[#allocation2 + $0x120] sm:$0xf] }
 0x3b4   : > { %2194 = vst [vmem:[#allocation2 + $0x128] sm:$0xf] %v2130_v2  ;;  %v2795_v23 = vadd.f32 %v7875_v61, %v2794_v21  ;;  %v6019_v2 = vld [vmem:[#allocation2 + $0x158] sm:$0xf0] }
 0x3b5   : > { %v1964_v62 = vpop.f32.mrf.mxu3  ;;  %v6022_v22 = vor.u32 %v6773_v17, %v6019_v2 }
 0x3b6   : > { %v2964_v28 = vadd.f32 %v7994_v27, %v2795_v23  ;;  %v1965_v30 = vadd.f32 %v7957_v52, %v1964_v62  ;;  %v8032_v56 = vpop.f32.mrf.mxu1 }
 0x3b7   : > { %v3253_v31 = vpop.f32.mrf.mxu2 }
 0x3b8   : > { %v3095_v37 = vmax.f32 %v2964_v28, 0.0  ;;  %v2067_v38 = vmax.f32 %v1965_v30, 0.0  ;;  %v3254_v32 = vadd.f32 %v8019_v45, %v3253_v31 }
 0x3b9   : > { %3015 = vmatmul.bf16.gmra.mxu1 %v6014_v47 }
 0x3ba   : > { %v2131_v13 = vpack.c.bf16 %v2067_v38, %v2067_v38  ;;  %v3412_v55 = vmax.f32 %v3254_v32, 0.0  ;;  %v3149_v35 = vpack.c.bf16 %v3095_v37, %v3094_v34  ;;  %v6911_v34 = vld [vmem:[%s9087_s3 + $0x20] sm:$0xff] }
 0x3bb   : > { %v2797_v1 = vpop.f32.mrf.mxu0  ;;  %v6768_v41 = vld [vmem:[#allocation2 + $0x124] sm:$0xf0]  ;;  %4961 = vmatpush.bf16.msra.mxu2 %v6911_v34 }
 0x3bc   : > { %2195 = vst [vmem:[#allocation2 + $0x130] sm:$0xf] %v2131_v13  ;;  %v8030_v44 = vpack.c.bf16 %v3412_v55, %v3411_v39  ;;  %3295 = vmatmul.bf16.gmra.mxu2 %v3149_v35  ;;  %v5994_v27 = vor.u32 %v6768_v41, %v5993_v14  ;;  %v2798_v49 = vadd.f32 %v7875_v61, %v2797_v1 }
 0x3bd   : > { %v1966_v42 = vpop.f32.mrf.mxu3 }
 0x3be   : > { %v1967_v16 = vadd.f32 %v7957_v52, %v1966_v42  ;;  %2836 = vmatmul.bf16.gmra.mxu0 %v5994_v27  ;;  %v2967_v58 = vadd.f32 %v7998_v59, %v2798_v49  ;;  %v8039_v20 = vpop.f32.mrf.mxu1 }
 0x3bf   : > { %v3256_v18 = vpop.f32.mrf.mxu2 }
 0x3c0   : > { %v2068_v50 = vmax.f32 %v1967_v16, 0.0  ;;  %v3257_v40 = vadd.f32 %v8019_v45, %v3256_v18  ;;  %v3096_v5 = vmax.f32 %v2967_v58, 0.0 }
 0x3c2   : > { %v2132_v53 = vpack.c.bf16 %v2068_v50, %v2068_v50  ;;  %2008 = vmatmul.bf16.gmra.mxu3 %v7737_v63  ;;  %v3413_v9 = vmax.f32 %v3257_v40, 0.0 }
 0x3c3   : > { %v2799_v19 = vpop.f32.mrf.mxu0  ;;  %v6001_v57 = vld [vmem:[#allocation2 + $0x130] sm:$0xf] }
 0x3c4   : > { %2196 = vst [vmem:[#allocation2 + $0x138] sm:$0xf] %v2132_v53  ;;  %v2800_v60 = vadd.f32 %v7875_v61, %v2799_v19  ;;  %v6775_v53 = vld [vmem:[#allocation2 + $0x164] sm:$0xf]  ;;  %v6027_v19 = vld [vmem:[#allocation2 + $0x168] sm:$0xf0] }
 0x3c5   : > { %v1969_v4 = vpop.f32.mrf.mxu3 }
 0x3c6   : > { %v2969_v63 = vadd.f32 %v8005_v54, %v2800_v60  ;;  %v1970_v59 = vadd.f32 %v7957_v52, %v1969_v4  ;;  %v8051_v21 = vpop.f32.mrf.mxu1  ;;  %v6030_v60 = vor.u32 %v6775_v53, %v6027_v19 }
 0x3c7   : > { %v3258_v46 = vpop.f32.mrf.mxu2 }
 0x3c8   : > { %v3097_v6 = vmax.f32 %v2969_v63, 0.0  ;;  %v2069_v7 = vmax.f32 %v1970_v59, 0.0  ;;  %v3259_v8 = vadd.f32 %v8019_v45, %v3258_v46 }
 0x3c9   : > { %3020 = vmatmul.bf16.gmra.mxu1 %v6022_v22 }
 0x3ca   : > { %v2133_v29 = vpack.c.bf16 %v2069_v7, %v2069_v7  ;;  %v3414_v11 = vmax.f32 %v3259_v8, 0.0  ;;  %v3150_v33 = vpack.c.bf16 %v3097_v6, %v3096_v5 }
 0x3cb   : > { %v2802_v12 = vpop.f32.mrf.mxu0  ;;  %v6770_v51 = vld [vmem:[#allocation2 + $0x134] sm:$0xf0] }
 0x3cc   : > { %2197 = vst [vmem:[#allocation2 + $0x140] sm:$0xf] %v2133_v29  ;;  %3300 = vmatmul.bf16.gmra.mxu2 %v3150_v33  ;;  %v6002_v54 = vor.u32 %v6770_v51, %v6001_v57  ;;  %v8053_v62 = vpack.c.bf16 %v3414_v11, %v3413_v9  ;;  %v2803_v30 = vadd.f32 %v7875_v61, %v2802_v12 }
 0x3cd   : > { %v1971_v23 = vpop.f32.mrf.mxu3 }
 0x3ce   : > { %v1972_v26 = vadd.f32 %v7957_v52, %v1971_v23  ;;  %2841 = vmatmul.bf16.gmra.mxu0 %v6002_v54  ;;  %v2972_v32 = vadd.f32 %v8012_v10, %v2803_v30  ;;  %v8063_v13 = vpop.f32.mrf.mxu1  ;;  %v6777_v30 = vld [vmem:[#allocation2 + $0x174] sm:$0xf] }
 0x3cf   : > { %v3261_v28 = vpop.f32.mrf.mxu2 }
 0x3d0   : > { %v2070_v31 = vmax.f32 %v1972_v26, 0.0  ;;  %v3262_v35 = vadd.f32 %v8019_v45, %v3261_v28  ;;  %v3098_v36 = vmax.f32 %v2972_v32, 0.0 }
 0x3d2   : > { %v2134_v37 = vpack.c.bf16 %v2070_v31, %v2070_v31  ;;  %2013 = vmatmul.bf16.gmra.mxu3 %v7751_v25  ;;  %v3415_v42 = vmax.f32 %v3262_v35, 0.0  ;;  %v6035_v31 = vld [vmem:[#allocation2 + $0x178] sm:$0xf0] }
 0x3d3   : > { %v2804_v38 = vpop.f32.mrf.mxu0  ;;  %v6009_v18 = vld [vmem:[#allocation2 + $0x140] sm:$0xf] }
 0x3d4   : > { %2198 = vst [vmem:[#allocation2 + $0x148] sm:$0xf] %v2134_v37  ;;  %v2805_v39 = vadd.f32 %v7875_v61, %v2804_v38  ;;  %v6038_v37 = vor.u32 %v6777_v30, %v6035_v31 }
 0x3d5   : > { %v1974_v55 = vpop.f32.mrf.mxu3 }
 0x3d6   : > { %v2974_v14 = vadd.f32 %v8024_v24, %v2805_v39  ;;  %v1975_v1 = vadd.f32 %v7957_v52, %v1974_v55  ;;  %v8069_v58 = vpop.f32.mrf.mxu1 }
 0x3d7   : > { %v3263_v41 = vpop.f32.mrf.mxu2 }
 0x3d8   : > { %v3099_v43 = vmax.f32 %v2974_v14, 0.0  ;;  %v2071_v25 = vmax.f32 %v1975_v1, 0.0  ;;  %v3264_v27 = vadd.f32 %v8019_v45, %v3263_v41 }
 0x3d9   : > { %3025 = vmatmul.bf16.gmra.mxu1 %v6030_v60 }
 0x3da   : > { %v2135_v10 = vpack.c.bf16 %v2071_v25, %v2071_v25  ;;  %v3416_v47 = vmax.f32 %v3264_v27, 0.0  ;;  %v3151_v16 = vpack.c.bf16 %v3099_v43, %v3098_v36 }
 0x3db   : > { %v2807_v49 = vpop.f32.mrf.mxu0  ;;  %v6772_v50 = vld [vmem:[#allocation2 + $0x144] sm:$0xf0] }
 0x3dc   : > { %2199 = vst [vmem:[#allocation2 + $0x150] sm:$0xf] %v2135_v10  ;;  %3305 = vmatmul.bf16.gmra.mxu2 %v3151_v16  ;;  %v6010_v24 = vor.u32 %v6772_v50, %v6009_v18  ;;  %v8071_v3 = vpack.c.bf16 %v3416_v47, %v3415_v42  ;;  %v2808_v63 = vadd.f32 %v7875_v61, %v2807_v49 }
 0x3dd   : > { %v1976_v0 = vpop.f32.mrf.mxu3 }
 0x3de   : > { %v1977_v4 = vadd.f32 %v7957_v52, %v1976_v0  ;;  %2846 = vmatmul.bf16.gmra.mxu0 %v6010_v24  ;;  %v2977_v6 = vadd.f32 %v8032_v56, %v2808_v63  ;;  %v8078_v8 = vpop.f32.mrf.mxu1 }
 0x3df   : > { %v3266_v40 = vpop.f32.mrf.mxu2 }
 0x3e0   : > { %v2072_v59 = vmax.f32 %v1977_v4, 0.0  ;;  %v3267_v29 = vadd.f32 %v8019_v45, %v3266_v40  ;;  %v3100_v12 = vmax.f32 %v2977_v6, 0.0  ;;  %v6779_v4 = vld [vmem:[#allocation2 + $0x184] sm:$0xf]  ;;  %v6043_v40 = vld [vmem:[#allocation2 + $0x188] sm:$0xf0] }
 0x3e2   : > { %v2136_v46 = vpack.c.bf16 %v2072_v59, %v2072_v59  ;;  %2018 = vmatmul.bf16.gmra.mxu3 %v7759_v48  ;;  %v3417_v2 = vmax.f32 %v3267_v29, 0.0  ;;  %v6046_v59 = vor.u32 %v6779_v4, %v6043_v40 }
 0x3e3   : > { %v2809_v5 = vpop.f32.mrf.mxu0  ;;  %v6017_v23 = vld [vmem:[#allocation2 + $0x150] sm:$0xf] }
 0x3e4   : > { %2200 = vst [vmem:[#allocation2 + $0x158] sm:$0xf] %v2136_v46  ;;  %v2810_v7 = vadd.f32 %v7875_v61, %v2809_v5 }
 0x3e5   : > { %v1979_v9 = vpop.f32.mrf.mxu3 }
 0x3e6   : > { %v2979_v11 = vadd.f32 %v8039_v20, %v2810_v7  ;;  %v1980_v33 = vadd.f32 %v7957_v52, %v1979_v9  ;;  %v8084_v34 = vpop.f32.mrf.mxu1  ;;  %v8107_v9 = vld [vmem:[%s9088_s4 + $0x4] ss:$0 sm:$0xff] }
 0x3e7   : > { %v3268_v57 = vpop.f32.mrf.mxu2 }
 0x3e8   : > { %v3101_v51 = vmax.f32 %v2979_v11, 0.0  ;;  %v2073_v17 = vmax.f32 %v1980_v33, 0.0  ;;  %v3269_v48 = vadd.f32 %v8019_v45, %v3268_v57 }
 0x3e9   : > { %3030 = vmatmul.bf16.gmra.mxu1 %v6038_v37 }
 0x3ea   : > { %v2137_v56 = vpack.c.bf16 %v2073_v17, %v2073_v17  ;;  %v3418_v54 = vmax.f32 %v3269_v48, 0.0  ;;  %v3152_v22 = vpack.c.bf16 %v3101_v51, %v3100_v12  ;;  %v6892_v48 = vld [vmem:[%s9086_s2 + $0x88] sm:$0xff] }
 0x3eb   : > { %v2812_v26 = vpop.f32.mrf.mxu0  ;;  %v6774_v28 = vld [vmem:[#allocation2 + $0x154] sm:$0xf0]  ;;  %4462 = vmatpush.bf16.msra.mxu0 %v6892_v48 }
 0x3ec   : > { %2201 = vst [vmem:[#allocation2 + $0x160] sm:$0xf] %v2137_v56  ;;  %3310 = vmatmul.bf16.gmra.mxu2 %v3152_v22  ;;  %v6018_v20 = vor.u32 %v6774_v28, %v6017_v23  ;;  %v8086_v32 = vpack.c.bf16 %v3418_v54, %v3417_v2  ;;  %v2813_v35 = vadd.f32 %v7875_v61, %v2812_v26  ;;  %v6900_v2 = vld [vmem:[%s9086_s2 + $0xc8] sm:$0xff] }
 0x3ed   : > { %v1981_v38 = vpop.f32.mrf.mxu3  ;;  %4631 = vmatpush.bf16.msra.mxu1 %v6900_v2 }
 0x3ee   : > { %v1982_v39 = vadd.f32 %v7957_v52, %v1981_v38  ;;  %2851 = vmatmul.bf16.gmra.mxu0 %v6018_v20  ;;  %v2982_v36 = vadd.f32 %v8051_v21, %v2813_v35  ;;  %v8093_v25 = vpop.f32.mrf.mxu1 }
 0x3ef   : > { %v3271_v55 = vpop.f32.mrf.mxu2 }
 0x3f0   : > { %v2074_v14 = vmax.f32 %v1982_v39, 0.0  ;;  %v3272_v42 = vadd.f32 %v8019_v45, %v3271_v55  ;;  %v3102_v18 = vmax.f32 %v2982_v36, 0.0 }
 0x3f2   : > { %v2138_v1 = vpack.c.bf16 %v2074_v14, %v2074_v14  ;;  %2023 = vmatmul.bf16.gmra.mxu3 %v7775_v15  ;;  %v3419_v53 = vmax.f32 %v3272_v42, 0.0  ;;  %v6781_v14 = vld [vmem:[#allocation2 + $0x194] sm:$0xf] }
 0x3f3   : > { %v2814_v41 = vpop.f32.mrf.mxu0 }
 0x3f4   : > { %2202 = vst [vmem:[#allocation2 + $0x168] sm:$0xf] %v2138_v1  ;;  %v2815_v43 = vadd.f32 %v7875_v61, %v2814_v41  ;;  %v6025_v61 = vld [vmem:[#allocation2 + $0x160] sm:$0xf]  ;;  %v6051_v1 = vld [vmem:[#allocation2 + $0x198] sm:$0xf0] }
 0x3f5   : > { %v1984_v27 = vpop.f32.mrf.mxu3  ;;  %v6054_v36 = vor.u32 %v6781_v14, %v6051_v1 }
 0x3f6   : > { %v2984_v10 = vadd.f32 %v8063_v13, %v2815_v43  ;;  %v1985_v47 = vadd.f32 %v7957_v52, %v1984_v27  ;;  %v8099_v63 = vpop.f32.mrf.mxu1 }
 0x3f7   : > { %v3273_v16 = vpop.f32.mrf.mxu2 }
 0x3f8   : > { %v3103_v49 = vmax.f32 %v2984_v10, 0.0  ;;  %v2075_v50 = vmax.f32 %v1985_v47, 0.0  ;;  %v3274_v15 = vadd.f32 %v8019_v45, %v3273_v16 }
 0x3f9   : > { %3035 = vmatmul.bf16.gmra.mxu1 %v6046_v59 }
 0x3fa   : > { %v2139_v21 = vpack.c.bf16 %v2075_v50, %v2075_v50  ;;  %v3420_v19 = vmax.f32 %v3274_v15, 0.0  ;;  %v3153_v24 = vpack.c.bf16 %v3103_v49, %v3102_v18  ;;  %v6910_v18 = vld [vmem:[%s9087_s3 + $0x18] sm:$0xff] }
 0x3fb   : > { %v2817_v60 = vpop.f32.mrf.mxu0  ;;  %v6776_v0 = vld [vmem:[#allocation2 + $0x164] sm:$0xf0]  ;;  %4962 = vmatpush.bf16.msra.mxu2 %v6910_v18 }
 0x3fc   : > { %2203 = vst [vmem:[#allocation2 + $0x170] sm:$0xf] %v2139_v21  ;;  %3315 = vmatmul.bf16.gmra.mxu2 %v3153_v24  ;;  %v6026_v13 = vor.u32 %v6776_v0, %v6025_v61  ;;  %v8101_v5 = vpack.c.bf16 %v3420_v19, %v3419_v53  ;;  %v2818_v29 = vadd.f32 %v8107_v9, %v2817_v60 }
 0x3fd   : > { %v1986_v46 = vpop.f32.mrf.mxu3 }
 0x3fe   : > { %v1987_v6 = vadd.f32 %v7957_v52, %v1986_v46  ;;  %2856 = vmatmul.bf16.gmra.mxu0 %v6026_v13  ;;  %v2987_v12 = vadd.f32 %v8069_v58, %v2818_v29  ;;  %v8113_v17 = vpop.f32.mrf.mxu1 }
 0x3ff   : > { %v3276_v7 = vpop.f32.mrf.mxu2 }
 0x400   : > { %v2076_v11 = vmax.f32 %v1987_v6, 0.0  ;;  %v3277_v54 = vadd.f32 %v8019_v45, %v3276_v7  ;;  %v3104_v23 = vmax.f32 %v2987_v12, 0.0 }
 0x402   : > { %v2140_v33 = vpack.c.bf16 %v2076_v11, %v2076_v11  ;;  %3585 = vmatmul.bf16.vlgmr.msra.gmra.mxu3 %v8030_v44  ;;  %v3421_v31 = vmax.f32 %v3277_v54, 0.0 }
 0x403   : > { %v2819_v57 = vpop.f32.mrf.mxu0  ;;  %v6033_v39 = vld [vmem:[#allocation2 + $0x170] sm:$0xf] }
 0x404   : > { %2204 = vst [vmem:[#allocation2 + $0x178] sm:$0xf] %v2140_v33  ;;  %v2820_v51 = vadd.f32 %v8107_v9, %v2819_v57  ;;  %v6783_v33 = vld [vmem:[#allocation2 + $0x1a4] sm:$0xf]  ;;  %v6059_v57 = vld [vmem:[#allocation2 + $0x1a8] sm:$0xf0] }
 0x405   : > { %v1989_v56 = vpop.f32.mrf.mxu3 }
 0x406   : > { %v2989_v44 = vadd.f32 %v8078_v8, %v2820_v51  ;;  %v1990_v58 = vadd.f32 %v7957_v52, %v1989_v56  ;;  %v8125_v41 = vpop.f32.mrf.mxu1  ;;  %v6062_v51 = vor.u32 %v6783_v33, %v6059_v57 }
 0x407   : > { %v3278_v22 = vpop.f32.mrf.mxu2 }
 0x408   : > { %v3105_v26 = vmax.f32 %v2989_v44, 0.0  ;;  %v2077_v28 = vmax.f32 %v1990_v58, 0.0  ;;  %v3279_v30 = vadd.f32 %v8019_v45, %v3278_v22 }
 0x409   : > { %3040 = vmatmul.bf16.gmra.mxu1 %v6054_v36 }
 0x40a   : > { %v2141_v20 = vpack.c.bf16 %v2077_v28, %v2077_v28  ;;  %v3422_v37 = vmax.f32 %v3279_v30, 0.0  ;;  %v3154_v38 = vpack.c.bf16 %v3105_v26, %v3104_v23 }
 0x40b   : > { %v2822_v55 = vpop.f32.mrf.mxu0  ;;  %v6778_v35 = vld [vmem:[#allocation2 + $0x174] sm:$0xf0] }
 0x40c   : > { %2205 = vst [vmem:[#allocation2 + $0x180] sm:$0xf] %v2141_v20  ;;  %3320 = vmatmul.bf16.gmra.mxu2 %v3154_v38  ;;  %v6034_v8 = vor.u32 %v6778_v35, %v6033_v39  ;;  %v8127_v27 = vpack.c.bf16 %v3422_v37, %v3421_v31  ;;  %v2823_v47 = vadd.f32 %v8107_v9, %v2822_v55 }
 0x40d   : > { %v1991_v43 = vpop.f32.mrf.mxu3 }
 0x40e   : > { %v1992_v42 = vadd.f32 %v7957_v52, %v1991_v43  ;;  %2861 = vmatmul.bf16.gmra.mxu0 %v6034_v8  ;;  %v2992_v15 = vadd.f32 %v8084_v34, %v2823_v47  ;;  %v8137_v21 = vpop.f32.mrf.mxu1  ;;  %v6785_v47 = vld [vmem:[#allocation2 + $0x1b4] sm:$0xf] }
 0x40f   : > { %v3281_v10 = vpop.f32.mrf.mxu2 }
 0x410   : > { %v2078_v16 = vmax.f32 %v1992_v42, 0.0  ;;  %v3282_v24 = vadd.f32 %v8019_v45, %v3281_v10  ;;  %v3106_v4 = vmax.f32 %v2992_v15, 0.0 }
 0x412   : > { %v2142_v49 = vpack.c.bf16 %v2078_v16, %v2078_v16  ;;  %3590 = vmatmul.bf16.gmra.mxu3 %v8053_v62  ;;  %v3423_v59 = vmax.f32 %v3282_v24, 0.0  ;;  %v6067_v16 = vld [vmem:[#allocation2 + $0x1b8] sm:$0xf0] }
 0x413   : > { %v2824_v50 = vpop.f32.mrf.mxu0  ;;  %v6041_v7 = vld [vmem:[#allocation2 + $0x180] sm:$0xf] }
 0x414   : > { %2206 = vst [vmem:[#allocation2 + $0x188] sm:$0xf] %v2142_v49  ;;  %v2825_v53 = vadd.f32 %v8107_v9, %v2824_v50  ;;  %v6070_v49 = vor.u32 %v6785_v47, %v6067_v16 }
 0x415   : > { %v1994_v19 = vpop.f32.mrf.mxu3 }
 0x416   : > { %v2994_v61 = vadd.f32 %v8093_v25, %v2825_v53  ;;  %v1995_v60 = vadd.f32 %v7957_v52, %v1994_v19  ;;  %v8143_v12 = vpop.f32.mrf.mxu1 }
 0x417   : > { %v3283_v0 = vpop.f32.mrf.mxu2 }
 0x418   : > { %v3107_v40 = vmax.f32 %v2994_v61, 0.0  ;;  %v2079_v62 = vmax.f32 %v1995_v60, 0.0  ;;  %v3284_v13 = vadd.f32 %v8019_v45, %v3283_v0 }
 0x419   : > { %3045 = vmatmul.bf16.gmra.mxu1 %v6062_v51 }
 0x41a   : > { %v2143_v34 = vpack.c.bf16 %v2079_v62, %v2079_v62  ;;  %v3424_v46 = vmax.f32 %v3284_v13, 0.0  ;;  %v3155_v6 = vpack.c.bf16 %v3107_v40, %v3106_v4 }
 0x41b   : > { %v2827_v29 = vpop.f32.mrf.mxu0  ;;  %v6780_v11 = vld [vmem:[#allocation2 + $0x184] sm:$0xf0] }
 0x41c   : > { %2207 = vst [vmem:[#allocation2 + $0x190] sm:$0xf] %v2143_v34  ;;  %3325 = vmatmul.bf16.gmra.mxu2 %v3155_v6  ;;  %v6042_v25 = vor.u32 %v6780_v11, %v6041_v7  ;;  %v8145_v2 = vpack.c.bf16 %v3424_v46, %v3423_v59  ;;  %v2828_v44 = vadd.f32 %v8107_v9, %v2827_v29 }
 0x41d   : > { %v1996_v48 = vpop.f32.mrf.mxu3 }
 0x41e   : > { %v1997_v56 = vadd.f32 %v7957_v52, %v1996_v48  ;;  %2866 = vmatmul.bf16.gmra.mxu0 %v6042_v25  ;;  %v2997_v26 = vadd.f32 %v8099_v63, %v2828_v44  ;;  %v8152_v30 = vpop.f32.mrf.mxu1  ;;  %v6075_v44 = vld [vmem:[#allocation2 + $0x1c8] sm:$0xf0] }
 0x41f   : > { %v3286_v54 = vpop.f32.mrf.mxu2 }
 0x420   : > { %v2080_v58 = vmax.f32 %v1997_v56, 0.0  ;;  %v3287_v20 = vadd.f32 %v8019_v45, %v3286_v54  ;;  %v3108_v55 = vmax.f32 %v2997_v26, 0.0  ;;  %v6787_v54 = vld [vmem:[#allocation2 + $0x1c4] sm:$0xf] }
 0x422   : > { %v2144_v22 = vpack.c.bf16 %v2080_v58, %v2080_v58  ;;  %3595 = vmatmul.bf16.gmra.mxu3 %v8071_v3  ;;  %v3425_v1 = vmax.f32 %v3287_v20, 0.0 }
 0x423   : > { %v2829_v23 = vpop.f32.mrf.mxu0  ;;  %v6049_v43 = vld [vmem:[#allocation2 + $0x190] sm:$0xf] }
 0x424   : > { %2208 = vst [vmem:[#allocation2 + $0x198] sm:$0xf] %v2144_v22  ;;  %v2830_v28 = vadd.f32 %v8107_v9, %v2829_v23  ;;  %v6078_v22 = vor.u32 %v6787_v54, %v6075_v44 }
 0x425   : > { %v1999_v31 = vpop.f32.mrf.mxu3 }
 0x426   : > { %v2999_v37 = vadd.f32 %v8113_v17, %v2830_v28  ;;  %v2000_v38 = vadd.f32 %v7957_v52, %v1999_v31  ;;  %v8158_v18 = vpop.f32.mrf.mxu1 }
 0x427   : > { %v3288_v39 = vpop.f32.mrf.mxu2 }
 0x428   : > { %v3109_v35 = vmax.f32 %v2999_v37, 0.0  ;;  %v2081_v14 = vmax.f32 %v2000_v38, 0.0  ;;  %v3289_v3 = vadd.f32 %v8019_v45, %v3288_v39 }
 0x429   : > { %3050 = vmatmul.bf16.gmra.mxu1 %v6070_v49 }
 0x42a   : > { %v2145_v63 = vpack.c.bf16 %v2081_v14, %v2081_v14  ;;  %v3426_v8 = vmax.f32 %v3289_v3, 0.0  ;;  %v3156_v36 = vpack.c.bf16 %v3109_v35, %v3108_v55  ;;  %v6891_v3 = vld [vmem:[%s9086_s2 + $0x80] sm:$0xff] }
 0x42b   : > { %v2832_v42 = vpop.f32.mrf.mxu0  ;;  %v6782_v10 = vld [vmem:[#allocation2 + $0x194] sm:$0xf0]  ;;  %4463 = vmatpush.bf16.msra.mxu0 %v6891_v3 }
 0x42c   : > { %2209 = vst [vmem:[#allocation2 + $0x1a0] sm:$0xf] %v2145_v63  ;;  %3330 = vmatmul.bf16.gmra.mxu2 %v3156_v36  ;;  %v6050_v17 = vor.u32 %v6782_v10, %v6049_v43  ;;  %v8160_v15 = vpack.c.bf16 %v3426_v8, %v3425_v1  ;;  %v2833_v24 = vadd.f32 %v8107_v9, %v2832_v42  ;;  %v6899_v1 = vld [vmem:[%s9086_s2 + $0xc0] sm:$0xff] }
 0x42d   : > { %v2001_v50 = vpop.f32.mrf.mxu3  ;;  %4632 = vmatpush.bf16.msra.mxu1 %v6899_v1 }
 0x42e   : > { %v2002_v53 = vadd.f32 %v7957_v52, %v2001_v50  ;;  %2871 = vmatmul.bf16.gmra.mxu0 %v6050_v17  ;;  %v3002_v4 = vadd.f32 %v8125_v41, %v2833_v24  ;;  %v8167_v62 = vpop.f32.mrf.mxu1 }
 0x42f   : > { %v3291_v19 = vpop.f32.mrf.mxu2 }
 0x430   : > { %v2082_v61 = vmax.f32 %v2002_v53, 0.0  ;;  %v3292_v59 = vadd.f32 %v8019_v45, %v3291_v19  ;;  %v3110_v7 = vmax.f32 %v3002_v4, 0.0 }
 0x432   : > { %v2146_v60 = vpack.c.bf16 %v2082_v61, %v2082_v61  ;;  %3600 = vmatmul.bf16.gmra.mxu3 %v8086_v32  ;;  %v3427_v33 = vmax.f32 %v3292_v59, 0.0  ;;  %v6789_v61 = vld [vmem:[#allocation2 + $0x1d4] sm:$0xf] }
 0x433   : > { %v2834_v0 = vpop.f32.mrf.mxu0  ;;  %v6057_v51 = vld [vmem:[#allocation2 + $0x1a0] sm:$0xf] }
 0x434   : > { %2210 = vst [vmem:[#allocation2 + $0x1a8] sm:$0xf] %v2146_v60  ;;  %v2835_v40 = vadd.f32 %v8107_v9, %v2834_v0  ;;  %v6083_v60 = vld [vmem:[#allocation2 + $0x1d8] sm:$0xf0] }
 0x435   : > { %v2004_v13 = vpop.f32.mrf.mxu3  ;;  %v6086_v0 = vor.u32 %v6789_v61, %v6083_v60 }
 0x436   : > { %v3004_v34 = vadd.f32 %v8137_v21, %v2835_v40  ;;  %v2005_v46 = vadd.f32 %v7957_v52, %v2004_v13  ;;  %v8173_v58 = vpop.f32.mrf.mxu1  ;;  %v8201_v13 = vld [vmem:[%s9088_s4 + $0x3] ss:$0 sm:$0xff] }
 0x437   : > { %v3293_v6 = vpop.f32.mrf.mxu2 }
 0x438   : > { %v3111_v29 = vmax.f32 %v3004_v34, 0.0  ;;  %v2083_v11 = vmax.f32 %v2005_v46, 0.0  ;;  %v3294_v32 = vadd.f32 %v8019_v45, %v3293_v6 }
 0x439   : > { %3055 = vmatmul.bf16.gmra.mxu1 %v6078_v22 }
 0x43a   : > { %v2147_v41 = vpack.c.bf16 %v2083_v11, %v2083_v11  ;;  %v3428_v57 = vmax.f32 %v3294_v32, 0.0  ;;  %v3157_v25 = vpack.c.bf16 %v3111_v29, %v3110_v7  ;;  %v6909_v7 = vld [vmem:[%s9087_s3 + $0x10] sm:$0xff] }
 0x43b   : > { %v2837_v48 = vpop.f32.mrf.mxu0  ;;  %v6784_v56 = vld [vmem:[#allocation2 + $0x1a4] sm:$0xf0]  ;;  %4963 = vmatpush.bf16.msra.mxu2 %v6909_v7 }
 0x43c   : > { %2211 = vst [vmem:[#allocation2 + $0x1b0] sm:$0xf] %v2147_v41  ;;  %3335 = vmatmul.bf16.gmra.mxu2 %v3157_v25  ;;  %v6058_v21 = vor.u32 %v6784_v56, %v6057_v51  ;;  %v8175_v26 = vpack.c.bf16 %v3428_v57, %v3427_v33  ;;  %v2838_v20 = vadd.f32 %v8107_v9, %v2837_v48 }
 0x43d   : > { %v2006_v23 = vpop.f32.mrf.mxu3 }
 0x43e   : > { %v2007_v28 = vadd.f32 %v7957_v52, %v2006_v23  ;;  %2876 = vmatmul.bf16.gmra.mxu0 %v6058_v21  ;;  %v3007_v55 = vadd.f32 %v8143_v12, %v2838_v20  ;;  %v8182_v14 = vpop.f32.mrf.mxu1 }
 0x43f   : > { %v3296_v31 = vpop.f32.mrf.mxu2 }
 0x440   : > { %v2084_v37 = vmax.f32 %v2007_v28, 0.0  ;;  %v3297_v8 = vadd.f32 %v8019_v45, %v3296_v31  ;;  %v3112_v43 = vmax.f32 %v3007_v55, 0.0 }
 0x442   : > { %v2148_v38 = vpack.c.bf16 %v2084_v37, %v2084_v37  ;;  %3605 = vmatmul.bf16.gmra.mxu3 %v8101_v5  ;;  %v3429_v16 = vmax.f32 %v3297_v8, 0.0 }
 0x443   : > { %v2839_v39 = vpop.f32.mrf.mxu0  ;;  %v6065_v53 = vld [vmem:[#allocation2 + $0x1b0] sm:$0xf] }
 0x444   : > { %2212 = vst [vmem:[#allocation2 + $0x1b8] sm:$0xf] %v2148_v38  ;;  %v2840_v35 = vadd.f32 %v8107_v9, %v2839_v39  ;;  %v6791_v38 = vld [vmem:[#allocation2 + $0x1e4] sm:$0xf]  ;;  %v6091_v39 = vld [vmem:[#allocation2 + $0x1e8] sm:$0xf0] }
 0x445   : > { %v2009_v63 = vpop.f32.mrf.mxu3 }
 0x446   : > { %v3009_v5 = vadd.f32 %v8152_v30, %v2840_v35  ;;  %v2010_v12 = vadd.f32 %v7957_v52, %v2009_v63  ;;  %v8194_v30 = vpop.f32.mrf.mxu1  ;;  %v6094_v35 = vor.u32 %v6791_v38, %v6091_v39 }
 0x447   : > { %v3298_v36 = vpop.f32.mrf.mxu2 }
 0x448   : > { %v3113_v42 = vmax.f32 %v3009_v5, 0.0  ;;  %v2085_v10 = vmax.f32 %v2010_v12, 0.0  ;;  %v3299_v47 = vadd.f32 %v8019_v45, %v3298_v36 }
 0x449   : > { %3060 = vmatmul.bf16.gmra.mxu1 %v6086_v0 }
 0x44a   : > { %v2149_v17 = vpack.c.bf16 %v2085_v10, %v2085_v10  ;;  %v3430_v49 = vmax.f32 %v3299_v47, 0.0  ;;  %v3158_v50 = vpack.c.bf16 %v3113_v42, %v3112_v43 }
 0x44b   : > { %v2842_v19 = vpop.f32.mrf.mxu0  ;;  %v6786_v24 = vld [vmem:[#allocation2 + $0x1b4] sm:$0xf0] }
 0x44c   : > { %2213 = vst [vmem:[#allocation2 + $0x1c0] sm:$0xf] %v2149_v17  ;;  %3340 = vmatmul.bf16.gmra.mxu2 %v3158_v50  ;;  %v6066_v52 = vor.u32 %v6786_v24, %v6065_v53  ;;  %v8196_v40 = vpack.c.bf16 %v3430_v49, %v3429_v16  ;;  %v2843_v46 = vadd.f32 %v8107_v9, %v2842_v19 }
 0x44d   : > { %v2011_v4 = vpop.f32.mrf.mxu3 }
 0x44e   : > { %v2012_v59 = vadd.f32 %v8201_v13, %v2011_v4  ;;  %2881 = vmatmul.bf16.gmra.mxu0 %v6066_v52  ;;  %v3012_v32 = vadd.f32 %v8158_v18, %v2843_v46  ;;  %v8211_v41 = vpop.f32.mrf.mxu1  ;;  %v6793_v46 = vld [vmem:[#allocation2 + $0x1f4] sm:$0xf] }
 0x44f   : > { %v3301_v34 = vpop.f32.mrf.mxu2 }
 0x450   : > { %v2086_v6 = vmax.f32 %v2012_v59, 0.0  ;;  %v3302_v25 = vadd.f32 %v8019_v45, %v3301_v34  ;;  %v3114_v54 = vmax.f32 %v3012_v32, 0.0 }
 0x452   : > { %v2150_v29 = vpack.c.bf16 %v2086_v6, %v2086_v6  ;;  %3610 = vmatmul.bf16.gmra.mxu3 %v8127_v27  ;;  %v3431_v22 = vmax.f32 %v3302_v25, 0.0  ;;  %v6099_v6 = vld [vmem:[#allocation2 + $0x1f8] sm:$0xf0] }
 0x453   : > { %v2844_v11 = vpop.f32.mrf.mxu0  ;;  %v6073_v31 = vld [vmem:[#allocation2 + $0x1c0] sm:$0xf] }
 0x454   : > { %2214 = vst [vmem:[#allocation2 + $0x1c8] sm:$0xf] %v2150_v29  ;;  %v2845_v33 = vadd.f32 %v8107_v9, %v2844_v11  ;;  %v6102_v29 = vor.u32 %v6793_v46, %v6099_v6 }
 0x455   : > { %v2014_v57 = vpop.f32.mrf.mxu3 }
 0x456   : > { %v3014_v51 = vadd.f32 %v8167_v62, %v2845_v33  ;;  %v2015_v48 = vadd.f32 %v8201_v13, %v2014_v57  ;;  %v8217_v55 = vpop.f32.mrf.mxu1 }
 0x457   : > { %v3303_v56 = vpop.f32.mrf.mxu2 }
 0x458   : > { %v3115_v44 = vmax.f32 %v3014_v51, 0.0  ;;  %v2087_v27 = vmax.f32 %v2015_v48, 0.0  ;;  %v3304_v21 = vadd.f32 %v8019_v45, %v3303_v56 }
 0x459   : > { %3065 = vmatmul.bf16.gmra.mxu1 %v6094_v35 }
 0x45a   : > { %v2151_v18 = vpack.c.bf16 %v2087_v27, %v2087_v27  ;;  %v3432_v23 = vmax.f32 %v3304_v21, 0.0  ;;  %v3159_v28 = vpack.c.bf16 %v3115_v44, %v3114_v54 }
 0x45b   : > { %v2847_v20 = vpop.f32.mrf.mxu0  ;;  %v6788_v37 = vld [vmem:[#allocation2 + $0x1c4] sm:$0xf0] }
 0x45c   : > { %2215 = vst [vmem:[#allocation2 + $0x1d0] sm:$0xf] %v2151_v18  ;;  %3345 = vmatmul.bf16.gmra.mxu2 %v3159_v28  ;;  %v6074_v62 = vor.u32 %v6788_v37, %v6073_v31  ;;  %v8219_v1 = vpack.c.bf16 %v3432_v23, %v3431_v22  ;;  %v2848_v5 = vadd.f32 %v8107_v9, %v2847_v20 }
 0x45d   : > { %v2016_v3 = vpop.f32.mrf.mxu3 }
 0x45e   : > { %v2017_v63 = vadd.f32 %v8201_v13, %v2016_v3  ;;  %2886 = vmatmul.bf16.gmra.mxu0 %v6074_v62  ;;  %v3017_v42 = vadd.f32 %v8173_v58, %v2848_v5  ;;  %v8226_v47 = vpop.f32.mrf.mxu1  ;;  %v6302_v5 = vld [vmem:[#allocation2 + $0x8] sm:$0xf0] }
 0x45f   : > { %v3306_v8 = vpop.f32.mrf.mxu2 }
 0x460   : > { %v2088_v12 = vmax.f32 %v2017_v63, 0.0  ;;  %v3307_v17 = vadd.f32 %v8019_v45, %v3306_v8  ;;  %v3116_v19 = vmax.f32 %v3017_v42, 0.0  ;;  %v6827_v8 = vld [vmem:[#allocation2 + $0x4] sm:$0xf] }
 0x462   : > { %v2152_v36 = vpack.c.bf16 %v2088_v12, %v2088_v12  ;;  %3615 = vmatmul.bf16.gmra.mxu3 %v8145_v2  ;;  %v3433_v60 = vmax.f32 %v3307_v17, 0.0 }
 0x463   : > { %v2849_v43 = vpop.f32.mrf.mxu0  ;;  %v6081_v4 = vld [vmem:[#allocation2 + $0x1d0] sm:$0xf] }
 0x464   : > { %2216 = vst [vmem:[#allocation2 + $0x1d8] sm:$0xf] %v2152_v36  ;;  %v2850_v10 = vadd.f32 %v8107_v9, %v2849_v43  ;;  %v6305_v36 = vor.u32 %v6827_v8, %v6302_v5 }
 0x465   : > { %v2019_v16 = vpop.f32.mrf.mxu3 }
 0x466   : > { %v3019_v49 = vadd.f32 %v8182_v14, %v2850_v10  ;;  %v2020_v50 = vadd.f32 %v8201_v13, %v2019_v16  ;;  %v8232_v7 = vpop.f32.mrf.mxu1 }
 0x467   : > { %v3308_v53 = vpop.f32.mrf.mxu2 }
 0x468   : > { %v3117_v24 = vmax.f32 %v3019_v49, 0.0  ;;  %v2089_v61 = vmax.f32 %v2020_v50, 0.0  ;;  %v3309_v2 = vadd.f32 %v8019_v45, %v3308_v53  ;;  %v8257_v50 = vld [vmem:[%s9088_s4 + $0x6] ss:$0 sm:$0xff] }
 0x469   : > { %3070 = vmatmul.bf16.gmra.mxu1 %v6102_v29 }
 0x46a   : > { %v2153_v58 = vpack.c.bf16 %v2089_v61, %v2089_v61  ;;  %v3434_v52 = vmax.f32 %v3309_v2, 0.0  ;;  %v3160_v0 = vpack.c.bf16 %v3117_v24, %v3116_v19  ;;  %v8266_v2 = vld [vmem:[%s9088_s4 + $0x5] ss:$0 sm:$0xff] }
 0x46b   : > { %v2852_v59 = vpop.f32.mrf.mxu0  ;;  %v6790_v34 = vld [vmem:[#allocation2 + $0x1d4] sm:$0xf0] }
 0x46c   : > { %2217 = vst [vmem:[#allocation2 + $0x1e0] sm:$0xf] %v2153_v58  ;;  %3350 = vmatmul.bf16.gmra.mxu2 %v3160_v0  ;;  %v6082_v14 = vor.u32 %v6790_v34, %v6081_v4  ;;  %v8234_v32 = vpack.c.bf16 %v3434_v52, %v3433_v60  ;;  %v2853_v25 = vadd.f32 %v8107_v9, %v2852_v59 }
 0x46d   : > { %v2021_v11 = vpop.f32.mrf.mxu3 }
 0x46e   : > { %v2022_v33 = vadd.f32 %v8201_v13, %v2021_v11  ;;  %2891 = vmatmul.bf16.gmra.mxu0 %v6082_v14  ;;  %v3022_v54 = vadd.f32 %v8194_v30, %v2853_v25  ;;  %v8241_v27 = vpop.f32.mrf.mxu1  ;;  %v6310_v25 = vld [vmem:[#allocation2 + $0x18] sm:$0xf0] }
 0x46f   : > { %v3311_v57 = vpop.f32.mrf.mxu2 }
 0x470   : > { %v2090_v51 = vmax.f32 %v2022_v33, 0.0  ;;  %v3312_v22 = vadd.f32 %v8019_v45, %v3311_v57  ;;  %v3118_v31 = vmax.f32 %v3022_v54, 0.0  ;;  %v6829_v57 = vld [vmem:[#allocation2 + $0x14] sm:$0xf] }
 0x472   : > { %v2154_v48 = vpack.c.bf16 %v2090_v51, %v2090_v51  ;;  %3620 = vmatmul.bf16.gmra.mxu3 %v8160_v15  ;;  %v3435_v38 = vmax.f32 %v3312_v22, 0.0 }
 0x473   : > { %v2854_v56 = vpop.f32.mrf.mxu0  ;;  %v6089_v35 = vld [vmem:[#allocation2 + $0x1e0] sm:$0xf] }
 0x474   : > { %2218 = vst [vmem:[#allocation2 + $0x1e8] sm:$0xf] %v2154_v48  ;;  %v2855_v44 = vadd.f32 %v8107_v9, %v2854_v56  ;;  %v6313_v48 = vor.u32 %v6829_v57, %v6310_v25 }
 0x475   : > { %v2024_v21 = vpop.f32.mrf.mxu3 }
 0x476   : > { %v3024_v18 = vadd.f32 %v8211_v41, %v2855_v44  ;;  %v2025_v23 = vadd.f32 %v8201_v13, %v2024_v21  ;;  %v8247_v12 = vpop.f32.mrf.mxu1 }
 0x477   : > { %v3313_v28 = vpop.f32.mrf.mxu2 }
 0x478   : > { %v3119_v20 = vmax.f32 %v3024_v18, 0.0  ;;  %v2091_v37 = vmax.f32 %v2025_v23, 0.0  ;;  %v3314_v15 = vadd.f32 %v8019_v45, %v3313_v28  ;;  %v6908_v23 = vld [vmem:[%s9087_s3 + $0x8] sm:$0xff] }
 0x479   : > { %4633 = vmatmul.bf16.vlgmr.msra.gmra.mxu1 %v6305_v36  ;;  %4964 = vmatpush.bf16.msra.mxu2 %v6908_v23 }
 0x47a   : > { %v2155_v30 = vpack.c.bf16 %v2091_v37, %v2091_v37  ;;  %v3436_v39 = vmax.f32 %v3314_v15, 0.0  ;;  %v3161_v62 = vpack.c.bf16 %v3119_v20, %v3118_v31 }
 0x47b   : > { %v2857_v3 = vpop.f32.mrf.mxu0  ;;  %v6792_v63 = vld [vmem:[#allocation2 + $0x1e4] sm:$0xf0] }
 0x47c   : > { %2219 = vst [vmem:[#allocation2 + $0x1f0] sm:$0xf] %v2155_v30  ;;  %3355 = vmatmul.bf16.gmra.mxu2 %v3161_v62  ;;  %v6090_v41 = vor.u32 %v6792_v63, %v6089_v35  ;;  %v8249_v42 = vpack.c.bf16 %v3436_v39, %v3435_v38  ;;  %v2858_v16 = vadd.f32 %v8107_v9, %v2857_v3 }
 0x47d   : > { %v2026_v43 = vpop.f32.mrf.mxu3 }
 0x47e   : > { %v2027_v45 = vadd.f32 %v8201_v13, %v2026_v43  ;;  %2896 = vmatmul.bf16.gmra.mxu0 %v6090_v41  ;;  %v3027_v19 = vadd.f32 %v8217_v55, %v2858_v16  ;;  %v8261_v24 = vpop.f32.mrf.mxu1  ;;  %v6831_v16 = vld [vmem:[#allocation2 + $0x24] sm:$0xf] }
 0x47f   : > { %v3316_v10 = vpop.f32.mrf.mxu2 }
 0x480   : > { %v2092_v17 = vmax.f32 %v2027_v45, 0.0  ;;  %v3120_v0 = vmax.f32 %v3027_v19, 0.0 }
 0x482   : > { %v2156_v49 = vpack.c.bf16 %v2092_v17, %v2092_v17  ;;  %3625 = vmatmul.bf16.gmra.mxu3 %v8175_v26  ;;  %v3317_v26 = vadd.f32 %v8266_v2, %v3316_v10  ;;  %v6318_v17 = vld [vmem:[#allocation2 + $0x28] sm:$0xf0] }
 0x483   : > { %v2859_v53 = vpop.f32.mrf.mxu0  ;;  %v6097_v29 = vld [vmem:[#allocation2 + $0x1f0] sm:$0xf] }
 0x484   : > { %2220 = vst [vmem:[#allocation2 + $0x1f8] sm:$0xf] %v2156_v49  ;;  %v2860_v13 = vadd.f32 %v8107_v9, %v2859_v53  ;;  %v3437_v34 = vmax.f32 %v3317_v26, 0.0  ;;  %v6321_v53 = vor.u32 %v6831_v16, %v6318_v17 }
 0x485   : > { %v3586_v61 = vpop.f32.mrf.mxu3 }
 0x486   : > { %v3029_v60 = vadd.f32 %v8226_v47, %v2860_v13  ;;  %v3587_v58 = vadd.f32 %v8257_v50, %v3586_v61  ;;  %v8272_v51 = vpop.f32.mrf.mxu1 }
 0x487   : > { %v3318_v52 = vpop.f32.mrf.mxu2 }
 0x488   : > { %v3121_v55 = vmax.f32 %v3029_v60, 0.0  ;;  %v3746_v4 = vmax.f32 %v3587_v58, 0.0  ;;  %v3319_v59 = vadd.f32 %v8266_v2, %v3318_v52 }
 0x489   : > { %4638 = vmatmul.bf16.gmra.mxu1 %v6313_v48 }
 0x48a   : > { %v3810_v46 = vpack.c.bf16 %v3746_v4, %v3746_v4  ;;  %v3438_v6 = vmax.f32 %v3319_v59, 0.0  ;;  %v3162_v14 = vpack.c.bf16 %v3121_v55, %v3120_v0 }
 0x48b   : > { %v2862_v11 = vpop.f32.mrf.mxu0  ;;  %v6794_v33 = vld [vmem:[#allocation2 + $0x1f4] sm:$0xf0] }
 0x48c   : > { %3874 = vst [vmem:[#allocation2] sm:$0xf] %v3810_v46  ;;  %3360 = vmatmul.bf16.gmra.mxu2 %v3162_v14  ;;  %v6098_v47 = vor.u32 %v6794_v33, %v6097_v29  ;;  %v8274_v54 = vpack.c.bf16 %v3438_v6, %v3437_v34  ;;  %v2863_v22 = vadd.f32 %v8107_v9, %v2862_v11 }
 0x48d   : > { %v3588_v56 = vpop.f32.mrf.mxu3 }
 0x48e   : > { %v3589_v44 = vadd.f32 %v8257_v50, %v3588_v56  ;;  %2901 = vmatmul.bf16.gmra.mxu0 %v6098_v47  ;;  %v3032_v20 = vadd.f32 %v8232_v7, %v2863_v22  ;;  %v8284_v15 = vpop.f32.mrf.mxu1  ;;  %v6833_v22 = vld [vmem:[#allocation2 + $0x34] sm:$0xf] }
 0x48f   : > { %v3321_v21 = vpop.f32.mrf.mxu2 }
 0x490   : > { %v3747_v18 = vmax.f32 %v3589_v44, 0.0  ;;  %v3322_v30 = vadd.f32 %v8266_v2, %v3321_v21  ;;  %v3122_v3 = vmax.f32 %v3032_v20, 0.0 }
 0x492   : > { %v3811_v28 = vpack.c.bf16 %v3747_v18, %v3747_v18  ;;  %3630 = vmatmul.bf16.gmra.mxu3 %v8196_v40  ;;  %v3439_v5 = vmax.f32 %v3322_v30, 0.0  ;;  %v6326_v18 = vld [vmem:[#allocation2 + $0x38] sm:$0xf0] }
 0x493   : > { %v2864_v31 = vpop.f32.mrf.mxu0  ;;  %v6300_v43 = vld [vmem:[#allocation2] sm:$0xf] }
 0x494   : > { %3875 = vst [vmem:[#allocation2 + $0x8] sm:$0xf] %v3811_v28  ;;  %v2865_v37 = vadd.f32 %v8107_v9, %v2864_v31  ;;  %v6329_v28 = vor.u32 %v6833_v22, %v6326_v18 }
 0x495   : > { %v3591_v38 = vpop.f32.mrf.mxu3 }
 0x496   : > { %v3034_v39 = vadd.f32 %v8241_v27, %v2865_v37  ;;  %v3592_v62 = vadd.f32 %v8257_v50, %v3591_v38  ;;  %v8290_v49 = vpop.f32.mrf.mxu1 }
 0x497   : > { %v3323_v35 = vpop.f32.mrf.mxu2 }
 0x498   : > { %v3123_v63 = vmax.f32 %v3034_v39, 0.0  ;;  %v3748_v40 = vmax.f32 %v3592_v62, 0.0  ;;  %v3324_v8 = vadd.f32 %v8266_v2, %v3323_v35 }
 0x499   : > { %4643 = vmatmul.bf16.gmra.mxu1 %v6321_v53 }
 0x49a   : > { %v3812_v7 = vpack.c.bf16 %v3748_v40, %v3748_v40  ;;  %v3440_v41 = vmax.f32 %v3324_v8, 0.0  ;;  %v3163_v36 = vpack.c.bf16 %v3123_v63, %v3122_v3 }
 0x49b   : > { %v2867_v45 = vpop.f32.mrf.mxu0  ;;  %v6828_v10 = vld [vmem:[#allocation2 + $0x4] sm:$0xf0] }
 0x49c   : > { %3876 = vst [vmem:[#allocation2 + $0x10] sm:$0xf] %v3812_v7  ;;  %3365 = vmatmul.bf16.gmra.mxu2 %v3163_v36  ;;  %v6301_v27 = vor.u32 %v6828_v10, %v6300_v43  ;;  %v8292_v13 = vpack.c.bf16 %v3440_v41, %v3439_v5  ;;  %v2868_v60 = vadd.f32 %v8107_v9, %v2867_v45 }
 0x49d   : > { %v3593_v19 = vpop.f32.mrf.mxu3 }
 0x49e   : > { %v3594_v61 = vadd.f32 %v8257_v50, %v3593_v19  ;;  %4464 = vmatmul.bf16.vlgmr.msra.gmra.mxu0 %v6301_v27  ;;  %v3037_v55 = vadd.f32 %v8247_v12, %v2868_v60  ;;  %v8299_v59 = vpop.f32.mrf.mxu1  ;;  %v6334_v60 = vld [vmem:[#allocation2 + $0x48] sm:$0xf0] }
 0x49f   : > { %v3326_v26 = vpop.f32.mrf.mxu2 }
 0x4a0   : > { %v3749_v58 = vmax.f32 %v3594_v61, 0.0  ;;  %v3327_v46 = vadd.f32 %v8266_v2, %v3326_v26  ;;  %v3124_v11 = vmax.f32 %v3037_v55, 0.0  ;;  %v6835_v26 = vld [vmem:[#allocation2 + $0x44] sm:$0xf] }
 0x4a2   : > { %v3813_v52 = vpack.c.bf16 %v3749_v58, %v3749_v58  ;;  %3635 = vmatmul.bf16.gmra.mxu3 %v8219_v1  ;;  %v3441_v25 = vmax.f32 %v3327_v46, 0.0 }
 0x4a3   : > { %v2869_v0 = vpop.f32.mrf.mxu0  ;;  %v6308_v56 = vld [vmem:[#allocation2 + $0x10] sm:$0xf] }
 0x4a4   : > { %3877 = vst [vmem:[#allocation2 + $0x18] sm:$0xf] %v3813_v52  ;;  %v2870_v4 = vadd.f32 %v8107_v9, %v2869_v0  ;;  %v6337_v52 = vor.u32 %v6835_v26, %v6334_v60 }
 0x4a5   : > { %v3596_v34 = vpop.f32.mrf.mxu3 }
 0x4a6   : > { %v3039_v6 = vadd.f32 %v8261_v24, %v2870_v4  ;;  %v3597_v14 = vadd.f32 %v8257_v50, %v3596_v34  ;;  %v8305_v23 = vpop.f32.mrf.mxu1 }
 0x4a7   : > { %v3328_v29 = vpop.f32.mrf.mxu2 }
 0x4a8   : > { %v3125_v33 = vmax.f32 %v3039_v6, 0.0  ;;  %v3750_v57 = vmax.f32 %v3597_v14, 0.0  ;;  %v3329_v1 = vadd.f32 %v8266_v2, %v3328_v29 }
 0x4a9   : > { %4648 = vmatmul.bf16.gmra.mxu1 %v6329_v28 }
 0x4aa   : > { %v3814_v12 = vpack.c.bf16 %v3750_v57, %v3750_v57  ;;  %v3442_v47 = vmax.f32 %v3329_v1, 0.0  ;;  %v3164_v48 = vpack.c.bf16 %v3125_v33, %v3124_v11 }
 0x4ab   : > { %v2872_v44 = vpop.f32.mrf.mxu0  ;;  %v6830_v21 = vld [vmem:[#allocation2 + $0x14] sm:$0xf0] }
 0x4ac   : > { %3878 = vst [vmem:[#allocation2 + $0x20] sm:$0xf] %v3814_v12  ;;  %3370 = vmatmul.bf16.gmra.mxu2 %v3164_v48  ;;  %v6309_v24 = vor.u32 %v6830_v21, %v6308_v56  ;;  %v8307_v20 = vpack.c.bf16 %v3442_v47, %v3441_v25  ;;  %v2873_v30 = vadd.f32 %v8107_v9, %v2872_v44 }
 0x4ad   : > { %v3598_v31 = vpop.f32.mrf.mxu3 }
 0x4ae   : > { %v3599_v37 = vadd.f32 %v8257_v50, %v3598_v31  ;;  %4469 = vmatmul.bf16.gmra.mxu0 %v6309_v24  ;;  %v3042_v3 = vadd.f32 %v8272_v51, %v2873_v30  ;;  %v8314_v40 = vpop.f32.mrf.mxu1  ;;  %v6342_v30 = vld [vmem:[#allocation2 + $0x58] sm:$0xf0] }
 0x4af   : > { %v3331_v38 = vpop.f32.mrf.mxu2 }
 0x4b0   : > { %v3751_v39 = vmax.f32 %v3599_v37, 0.0  ;;  %v3332_v5 = vadd.f32 %v8266_v2, %v3331_v38  ;;  %v3126_v43 = vmax.f32 %v3042_v3, 0.0  ;;  %v6837_v38 = vld [vmem:[#allocation2 + $0x54] sm:$0xf] }
 0x4b2   : > { %v3815_v62 = vpack.c.bf16 %v3751_v39, %v3751_v39  ;;  %3640 = vmatmul.bf16.gmra.mxu3 %v8234_v32  ;;  %v3443_v16 = vmax.f32 %v3332_v5, 0.0 }
 0x4b3   : > { %v2874_v35 = vpop.f32.mrf.mxu0  ;;  %v6316_v53 = vld [vmem:[#allocation2 + $0x20] sm:$0xf] }
 0x4b4   : > { %3879 = vst [vmem:[#allocation2 + $0x28] sm:$0xf] %v3815_v62  ;;  %v2875_v63 = vadd.f32 %v8107_v9, %v2874_v35  ;;  %v6345_v62 = vor.u32 %v6837_v38, %v6342_v30 }
 0x4b5   : > { %v3601_v8 = vpop.f32.mrf.mxu3 }
 0x4b6   : > { %v3044_v7 = vadd.f32 %v8284_v15, %v2875_v63  ;;  %v3602_v41 = vadd.f32 %v8257_v50, %v3601_v8  ;;  %v8320_v58 = vpop.f32.mrf.mxu1 }
 0x4b7   : > { %v3333_v36 = vpop.f32.mrf.mxu2 }
 0x4b8   : > { %v3127_v45 = vmax.f32 %v3044_v7, 0.0  ;;  %v3752_v10 = vmax.f32 %v3602_v41, 0.0  ;;  %v3334_v32 = vadd.f32 %v8266_v2, %v3333_v36  ;;  %v6907_v41 = vld [vmem:[%s9087_s3] sm:$0xff] }
 0x4b9   : > { %4653 = vmatmul.bf16.gmra.mxu1 %v6337_v52  ;;  %4965 = vmatpush.bf16.msra.mxu2 %v6907_v41 }
 0x4ba   : > { %v3816_v51 = vpack.c.bf16 %v3752_v10, %v3752_v10  ;;  %v3444_v17 = vmax.f32 %v3334_v32, 0.0  ;;  %v3165_v27 = vpack.c.bf16 %v3127_v45, %v3126_v43  ;;  %v8349_v10 = vld [vmem:[%s9088_s4 + $0x4] ss:$0 sm:$0xff] }
 0x4bb   : > { %v2877_v19 = vpop.f32.mrf.mxu0  ;;  %v6832_v61 = vld [vmem:[#allocation2 + $0x24] sm:$0xf0] }
 0x4bc   : > { %3880 = vst [vmem:[#allocation2 + $0x30] sm:$0xf] %v3816_v51  ;;  %3375 = vmatmul.bf16.gmra.mxu2 %v3165_v27  ;;  %v6317_v15 = vor.u32 %v6832_v61, %v6316_v53  ;;  %v8322_v55 = vpack.c.bf16 %v3444_v17, %v3443_v16  ;;  %v2878_v46 = vadd.f32 %v8107_v9, %v2877_v19 }
 0x4bd   : > { %v3603_v0 = vpop.f32.mrf.mxu3 }
 0x4be   : > { %v3604_v4 = vadd.f32 %v8257_v50, %v3603_v0  ;;  %4474 = vmatmul.bf16.gmra.mxu0 %v6317_v15  ;;  %v3047_v11 = vadd.f32 %v8290_v49, %v2878_v46  ;;  %v8329_v57 = vpop.f32.mrf.mxu1  ;;  %v6839_v46 = vld [vmem:[#allocation2 + $0x64] sm:$0xf] }
 0x4bf   : > { %v3336_v34 = vpop.f32.mrf.mxu2 }
 0x4c0   : > { %v3753_v6 = vmax.f32 %v3604_v4, 0.0  ;;  %v3337_v25 = vadd.f32 %v8266_v2, %v3336_v34  ;;  %v3128_v56 = vmax.f32 %v3047_v11, 0.0 }
 0x4c2   : > { %v3817_v14 = vpack.c.bf16 %v3753_v6, %v3753_v6  ;;  %3645 = vmatmul.bf16.gmra.mxu3 %v8249_v42  ;;  %v3445_v22 = vmax.f32 %v3337_v25, 0.0  ;;  %v6350_v6 = vld [vmem:[#allocation2 + $0x68] sm:$0xf0] }
 0x4c3   : > { %v2879_v29 = vpop.f32.mrf.mxu0  ;;  %v6324_v28 = vld [vmem:[#allocation2 + $0x30] sm:$0xf] }
 0x4c4   : > { %3881 = vst [vmem:[#allocation2 + $0x38] sm:$0xf] %v3817_v14  ;;  %v2880_v33 = vadd.f32 %v8107_v9, %v2879_v29  ;;  %v6353_v29 = vor.u32 %v6839_v46, %v6350_v6 }
 0x4c5   : > { %v3606_v1 = vpop.f32.mrf.mxu3 }
 0x4c6   : > { %v3049_v12 = vadd.f32 %v8299_v59, %v2880_v33  ;;  %v3607_v47 = vadd.f32 %v8257_v50, %v3606_v1  ;;  %v8335_v39 = vpop.f32.mrf.mxu1 }
 0x4c7   : > { %v3338_v48 = vpop.f32.mrf.mxu2 }
 0x4c8   : > { %v3129_v44 = vmax.f32 %v3049_v12, 0.0  ;;  %v3754_v21 = vmax.f32 %v3607_v47, 0.0  ;;  %v3339_v42 = vadd.f32 %v8266_v2, %v3338_v48 }
 0x4c9   : > { %4658 = vmatmul.bf16.gmra.mxu1 %v6345_v62 }
 0x4ca   : > { %v3818_v49 = vpack.c.bf16 %v3754_v21, %v3754_v21  ;;  %v3446_v18 = vmax.f32 %v3339_v42, 0.0  ;;  %v3166_v24 = vpack.c.bf16 %v3129_v44, %v3128_v56 }
 0x4cb   : > { %v2882_v31 = vpop.f32.mrf.mxu0  ;;  %v6834_v37 = vld [vmem:[#allocation2 + $0x34] sm:$0xf0] }
 0x4cc   : > { %3882 = vst [vmem:[#allocation2 + $0x40] sm:$0xf] %v3818_v49  ;;  %3380 = vmatmul.bf16.gmra.mxu2 %v3166_v24  ;;  %v6325_v59 = vor.u32 %v6834_v37, %v6324_v28  ;;  %v8337_v3 = vpack.c.bf16 %v3446_v18, %v3445_v22  ;;  %v2883_v5 = vadd.f32 %v8107_v9, %v2882_v31 }
 0x4cd   : > { %v3608_v35 = vpop.f32.mrf.mxu3 }
 0x4ce   : > { %v3609_v63 = vadd.f32 %v8257_v50, %v3608_v35  ;;  %4479 = vmatmul.bf16.gmra.mxu0 %v6325_v59  ;;  %v3052_v45 = vadd.f32 %v8305_v23, %v2883_v5  ;;  %v8352_v32 = vpop.f32.mrf.mxu1  ;;  %v6841_v5 = vld [vmem:[#allocation2 + $0x74] sm:$0xf] }
 0x4cf   : > { %v3341_v8 = vpop.f32.mrf.mxu2 }
 0x4d0   : > { %v3755_v7 = vmax.f32 %v3609_v63, 0.0  ;;  %v3342_v51 = vadd.f32 %v8266_v2, %v3341_v8  ;;  %v3130_v53 = vmax.f32 %v3052_v45, 0.0 }
 0x4d2   : > { %v3819_v36 = vpack.c.bf16 %v3755_v7, %v3755_v7  ;;  %3650 = vmatmul.bf16.gmra.mxu3 %v8274_v54  ;;  %v3447_v26 = vmax.f32 %v3342_v51, 0.0  ;;  %v6358_v7 = vld [vmem:[#allocation2 + $0x78] sm:$0xf0] }
 0x4d3   : > { %v2884_v43 = vpop.f32.mrf.mxu0  ;;  %v6332_v0 = vld [vmem:[#allocation2 + $0x40] sm:$0xf] }
 0x4d4   : > { %3883 = vst [vmem:[#allocation2 + $0x48] sm:$0xf] %v3819_v36  ;;  %v2885_v9 = vadd.f32 %v8349_v10, %v2884_v43  ;;  %v6361_v36 = vor.u32 %v6841_v5, %v6358_v7 }
 0x4d5   : > { %v3611_v16 = vpop.f32.mrf.mxu3 }
 0x4d6   : > { %v3054_v17 = vadd.f32 %v8314_v40, %v2885_v9  ;;  %v3612_v54 = vadd.f32 %v8257_v50, %v3611_v16  ;;  %v8358_v14 = vpop.f32.mrf.mxu1 }
 0x4d7   : > { %v3343_v27 = vpop.f32.mrf.mxu2 }
 0x4d8   : > { %v3131_v23 = vmax.f32 %v3054_v17, 0.0  ;;  %v3756_v19 = vmax.f32 %v3612_v54, 0.0  ;;  %v3344_v61 = vadd.f32 %v8266_v2, %v3343_v27 }
 0x4d9   : > { %4663 = vmatmul.bf16.gmra.mxu1 %v6353_v29 }
 0x4da   : > { %v3820_v60 = vpack.c.bf16 %v3756_v19, %v3756_v19  ;;  %v3448_v15 = vmax.f32 %v3344_v61, 0.0  ;;  %v3167_v52 = vpack.c.bf16 %v3131_v23, %v3130_v53 }
 0x4db   : > { %v2887_v4 = vpop.f32.mrf.mxu0  ;;  %v6836_v34 = vld [vmem:[#allocation2 + $0x44] sm:$0xf0] }
 0x4dc   : > { %3884 = vst [vmem:[#allocation2 + $0x50] sm:$0xf] %v3820_v60  ;;  %3385 = vmatmul.bf16.gmra.mxu2 %v3167_v52  ;;  %v6333_v40 = vor.u32 %v6836_v34, %v6332_v0  ;;  %v8360_v33 = vpack.c.bf16 %v3448_v15, %v3447_v26  ;;  %v2888_v12 = vadd.f32 %v8349_v10, %v2887_v4 }
 0x4dd   : > { %v3613_v11 = vpop.f32.mrf.mxu3 }
 0x4de   : > { %v3614_v1 = vadd.f32 %v8257_v50, %v3613_v11  ;;  %4484 = vmatmul.bf16.gmra.mxu0 %v6333_v40  ;;  %v3057_v44 = vadd.f32 %v8320_v58, %v2888_v12  ;;  %v8367_v42 = vpop.f32.mrf.mxu1  ;;  %v6366_v12 = vld [vmem:[#allocation2 + $0x88] sm:$0xf0] }
 0x4df   : > { %v3346_v25 = vpop.f32.mrf.mxu2 }
 0x4e0   : > { %v3757_v47 = vmax.f32 %v3614_v1, 0.0  ;;  %v3347_v49 = vadd.f32 %v8266_v2, %v3346_v25  ;;  %v3132_v31 = vmax.f32 %v3057_v44, 0.0  ;;  %v6843_v25 = vld [vmem:[#allocation2 + $0x84] sm:$0xf] }
 0x4e2   : > { %v3821_v48 = vpack.c.bf16 %v3757_v47, %v3757_v47  ;;  %3655 = vmatmul.bf16.gmra.mxu3 %v8292_v13  ;;  %v3449_v30 = vmax.f32 %v3347_v49, 0.0 }
 0x4e3   : > { %v2889_v56 = vpop.f32.mrf.mxu0  ;;  %v6340_v35 = vld [vmem:[#allocation2 + $0x50] sm:$0xf] }
 0x4e4   : > { %3885 = vst [vmem:[#allocation2 + $0x58] sm:$0xf] %v3821_v48  ;;  %v2890_v21 = vadd.f32 %v8349_v10, %v2889_v56  ;;  %v6369_v48 = vor.u32 %v6843_v25, %v6366_v12 }
 0x4e5   : > { %v3616_v22 = vpop.f32.mrf.mxu3 }
 0x4e6   : > { %v3059_v18 = vadd.f32 %v8329_v57, %v2890_v21  ;;  %v3617_v24 = vadd.f32 %v8257_v50, %v3616_v22  ;;  %v8373_v41 = vpop.f32.mrf.mxu1 }
 0x4e7   : > { %v3348_v28 = vpop.f32.mrf.mxu2 }
 0x4e8   : > { %v3133_v37 = vmax.f32 %v3059_v18, 0.0  ;;  %v3758_v38 = vmax.f32 %v3617_v24, 0.0  ;;  %v3349_v13 = vadd.f32 %v8266_v2, %v3348_v28 }
 0x4e9   : > { %4668 = vmatmul.bf16.gmra.mxu1 %v6361_v36 }
 0x4ea   : > { %v3822_v58 = vpack.c.bf16 %v3758_v38, %v3758_v38  ;;  %v3450_v59 = vmax.f32 %v3349_v13, 0.0  ;;  %v3168_v62 = vpack.c.bf16 %v3133_v37, %v3132_v31 }
 0x4eb   : > { %v2892_v63 = vpop.f32.mrf.mxu0  ;;  %v6838_v8 = vld [vmem:[#allocation2 + $0x54] sm:$0xf0] }
 0x4ec   : > { %3886 = vst [vmem:[#allocation2 + $0x60] sm:$0xf] %v3822_v58  ;;  %3390 = vmatmul.bf16.gmra.mxu2 %v3168_v62  ;;  %v6341_v57 = vor.u32 %v6838_v8, %v6340_v35  ;;  %v8375_v45 = vpack.c.bf16 %v3450_v59, %v3449_v30  ;;  %v2893_v51 = vadd.f32 %v8349_v10, %v2892_v63 }
 0x4ed   : > { %v3618_v43 = vpop.f32.mrf.mxu3 }
 0x4ee   : > { %v3619_v9 = vadd.f32 %v8257_v50, %v3618_v43  ;;  %4489 = vmatmul.bf16.gmra.mxu0 %v6341_v57  ;;  %v3062_v53 = vadd.f32 %v8335_v39, %v2893_v51  ;;  %v8382_v19 = vpop.f32.mrf.mxu1  ;;  %v6374_v51 = vld [vmem:[#allocation2 + $0x98] sm:$0xf0] }
 0x4ef   : > { %v3351_v16 = vpop.f32.mrf.mxu2 }
 0x4f0   : > { %v3759_v17 = vmax.f32 %v3619_v9, 0.0  ;;  %v3352_v26 = vadd.f32 %v8266_v2, %v3351_v16  ;;  %v3134_v0 = vmax.f32 %v3062_v53, 0.0  ;;  %v6845_v16 = vld [vmem:[#allocation2 + $0x94] sm:$0xf] }
 0x4f2   : > { %v3823_v54 = vpack.c.bf16 %v3759_v17, %v3759_v17  ;;  %3660 = vmatmul.bf16.gmra.mxu3 %v8307_v20  ;;  %v3451_v46 = vmax.f32 %v3352_v26, 0.0 }
 0x4f3   : > { %v2894_v27 = vpop.f32.mrf.mxu0  ;;  %v6348_v29 = vld [vmem:[#allocation2 + $0x60] sm:$0xf] }
 0x4f4   : > { %3887 = vst [vmem:[#allocation2 + $0x68] sm:$0xf] %v3823_v54  ;;  %v2895_v23 = vadd.f32 %v8349_v10, %v2894_v27  ;;  %v6377_v54 = vor.u32 %v6845_v16, %v6374_v51 }
 0x4f5   : > { %v3621_v61 = vpop.f32.mrf.mxu3 }
 0x4f6   : > { %v3064_v60 = vadd.f32 %v8352_v32, %v2895_v23  ;;  %v3622_v15 = vadd.f32 %v8257_v50, %v3621_v61  ;;  %v8388_v47 = vpop.f32.mrf.mxu1 }
 0x4f7   : > { %v3353_v52 = vpop.f32.mrf.mxu2 }
 0x4f8   : > { %v3135_v4 = vmax.f32 %v3064_v60, 0.0  ;;  %v3760_v34 = vmax.f32 %v3622_v15, 0.0  ;;  %v3354_v20 = vadd.f32 %v8266_v2, %v3353_v52 }
 0x4f9   : > { %4673 = vmatmul.bf16.gmra.mxu1 %v6369_v48 }
 0x4fa   : > { %v3824_v39 = vpack.c.bf16 %v3760_v34, %v3760_v34  ;;  %v3452_v6 = vmax.f32 %v3354_v20, 0.0  ;;  %v3169_v40 = vpack.c.bf16 %v3135_v4, %v3134_v0 }
 0x4fb   : > { %v2897_v11 = vpop.f32.mrf.mxu0  ;;  %v6840_v1 = vld [vmem:[#allocation2 + $0x64] sm:$0xf0] }
 0x4fc   : > { %3888 = vst [vmem:[#allocation2 + $0x70] sm:$0xf] %v3824_v39  ;;  %3395 = vmatmul.bf16.gmra.mxu2 %v3169_v40  ;;  %v6349_v32 = vor.u32 %v6840_v1, %v6348_v29  ;;  %v8390_v44 = vpack.c.bf16 %v3452_v6, %v3451_v46  ;;  %v2898_v49 = vadd.f32 %v8349_v10, %v2897_v11 }
 0x4fd   : > { %v3623_v56 = vpop.f32.mrf.mxu3 }
 0x4fe   : > { %v3624_v21 = vadd.f32 %v8257_v50, %v3623_v56  ;;  %4494 = vmatmul.bf16.gmra.mxu0 %v6349_v32  ;;  %v3067_v31 = vadd.f32 %v8358_v14, %v2898_v49  ;;  %v8397_v38 = vpop.f32.mrf.mxu1 }
 0x4ff   : > { %v3356_v22 = vpop.f32.mrf.mxu2 }
 0x500   : > { %v3761_v18 = vmax.f32 %v3624_v21, 0.0  ;;  %v3357_v30 = vadd.f32 %v8266_v2, %v3356_v22  ;;  %v3136_v35 = vmax.f32 %v3067_v31, 0.0  ;;  %v6847_v21 = vld [vmem:[#allocation2 + $0xa4] sm:$0xf]  ;;  %v6382_v22 = vld [vmem:[#allocation2 + $0xa8] sm:$0xf0] }
 0x502   : > { %v3825_v24 = vpack.c.bf16 %v3761_v18, %v3761_v18  ;;  %3665 = vmatmul.bf16.gmra.mxu3 %v8322_v55  ;;  %v3453_v5 = vmax.f32 %v3357_v30, 0.0 }
 0x503   : > { %v2899_v28 = vpop.f32.mrf.mxu0  ;;  %v6356_v36 = vld [vmem:[#allocation2 + $0x70] sm:$0xf] }
 0x504   : > { %3889 = vst [vmem:[#allocation2 + $0x78] sm:$0xf] %v3825_v24  ;;  %v2900_v37 = vadd.f32 %v8349_v10, %v2899_v28  ;;  %v6385_v24 = vor.u32 %v6847_v21, %v6382_v22 }
 0x505   : > { %v3626_v13 = vpop.f32.mrf.mxu3 }
 0x506   : > { %v3069_v58 = vadd.f32 %v8367_v42, %v2900_v37  ;;  %v3627_v59 = vadd.f32 %v8257_v50, %v3626_v13  ;;  %v8403_v17 = vpop.f32.mrf.mxu1 }
 0x507   : > { %v3358_v62 = vpop.f32.mrf.mxu2 }
 0x508   : > { %v3137_v63 = vmax.f32 %v3069_v58, 0.0  ;;  %v3762_v8 = vmax.f32 %v3627_v59, 0.0  ;;  %v3359_v55 = vadd.f32 %v8266_v2, %v3358_v62 }
 0x509   : > { %4678 = vmatmul.bf16.gmra.mxu1 %v6377_v54 }
 0x50a   : > { %v3826_v14 = vpack.c.bf16 %v3762_v8, %v3762_v8  ;;  %v3454_v7 = vmax.f32 %v3359_v55, 0.0  ;;  %v3170_v57 = vpack.c.bf16 %v3137_v63, %v3136_v35 }
 0x50b   : > { %v2902_v43 = vpop.f32.mrf.mxu0  ;;  %v6842_v9 = vld [vmem:[#allocation2 + $0x74] sm:$0xf0] }
 0x50c   : > { %3890 = vst [vmem:[#allocation2 + $0x80] sm:$0xf] %v3826_v14  ;;  %3400 = vmatmul.bf16.gmra.mxu2 %v3170_v57  ;;  %v6357_v42 = vor.u32 %v6842_v9, %v6356_v36  ;;  %v8405_v53 = vpack.c.bf16 %v3454_v7, %v3453_v5  ;;  %v2903_v26 = vadd.f32 %v8349_v10, %v2902_v43 }
 0x50d   : > { %v3628_v27 = vpop.f32.mrf.mxu3 }
 0x50e   : > { %v3629_v23 = vadd.f32 %v8257_v50, %v3628_v27  ;;  %4499 = vmatmul.bf16.gmra.mxu0 %v6357_v42  ;;  %v3072_v0 = vadd.f32 %v8373_v41, %v2903_v26  ;;  %v8412_v34 = vpop.f32.mrf.mxu1  ;;  %v6390_v26 = vld [vmem:[#allocation2 + $0xb8] sm:$0xf0] }
 0x50f   : > { %v3361_v61 = vpop.f32.mrf.mxu2 }
 0x510   : > { %v3763_v60 = vmax.f32 %v3629_v23, 0.0  ;;  %v3362_v46 = vadd.f32 %v8266_v2, %v3361_v61  ;;  %v3138_v29 = vmax.f32 %v3072_v0, 0.0  ;;  %v6849_v61 = vld [vmem:[#allocation2 + $0xb4] sm:$0xf] }
 0x512   : > { %v3827_v15 = vpack.c.bf16 %v3763_v60, %v3763_v60  ;;  %3670 = vmatmul.bf16.gmra.mxu3 %v8337_v3  ;;  %v3455_v25 = vmax.f32 %v3362_v46, 0.0 }
 0x513   : > { %v2904_v52 = vpop.f32.mrf.mxu0 }
 0x514   : > { %3891 = vst [vmem:[#allocation2 + $0x88] sm:$0xf] %v3827_v15  ;;  %v2905_v4 = vadd.f32 %v8349_v10, %v2904_v52  ;;  %v6364_v10 = vld [vmem:[#allocation2 + $0x80] sm:$0xf]  ;;  %v6393_v15 = vor.u32 %v6849_v61, %v6390_v26 }
 0x515   : > { %v3631_v20 = vpop.f32.mrf.mxu3 }
 0x516   : > { %v3074_v39 = vadd.f32 %v8382_v19, %v2905_v4  ;;  %v3632_v6 = vadd.f32 %v8257_v50, %v3631_v20  ;;  %v8421_v19 = vld [vmem:[%s9088_s4 + $0x7] ss:$0 sm:$0xff]  ;;  %v8423_v18 = vpop.f32.mrf.mxu1 }
 0x517   : > { %v3363_v40 = vpop.f32.mrf.mxu2 }
 0x518   : > { %v3139_v11 = vmax.f32 %v3074_v39, 0.0  ;;  %v3764_v1 = vmax.f32 %v3632_v6, 0.0  ;;  %v3364_v3 = vadd.f32 %v8266_v2, %v3363_v40 }
 0x519   : > { %4683 = vmatmul.bf16.gmra.mxu1 %v6385_v24 }
 0x51a   : > { %v3828_v41 = vpack.c.bf16 %v3764_v1, %v3764_v1  ;;  %v3456_v12 = vmax.f32 %v3364_v3, 0.0  ;;  %v3171_v32 = vpack.c.bf16 %v3139_v11, %v3138_v29 }
 0x51b   : > { %v4465_v48 = vpop.f32.mrf.mxu0  ;;  %v6844_v56 = vld [vmem:[#allocation2 + $0x84] sm:$0xf0] }
 0x51c   : > { %3892 = vst [vmem:[#allocation2 + $0x90] sm:$0xf] %v3828_v41  ;;  %3405 = vmatmul.bf16.gmra.mxu2 %v3171_v32  ;;  %v6365_v49 = vor.u32 %v6844_v56, %v6364_v10  ;;  %v8425_v31 = vpack.c.bf16 %v3456_v12, %v3455_v25  ;;  %v4466_v30 = vadd.f32 %v8421_v19, %v4465_v48 }
 0x51d   : > { %v3633_v28 = vpop.f32.mrf.mxu3 }
 0x51e   : > { %v3634_v37 = vadd.f32 %v8257_v50, %v3633_v28  ;;  %4504 = vmatmul.bf16.gmra.mxu0 %v6365_v49  ;;  %v4635_v35 = vadd.f32 %v8388_v47, %v4466_v30  ;;  %v8432_v8 = vpop.f32.mrf.mxu1  ;;  %v6398_v30 = vld [vmem:[#allocation2 + $0xc8] sm:$0xf0] }
 0x51f   : > { %v3366_v13 = vpop.f32.mrf.mxu2 }
 0x520   : > { %v3765_v58 = vmax.f32 %v3634_v37, 0.0  ;;  %v3367_v5 = vadd.f32 %v8266_v2, %v3366_v13  ;;  %v4794_v36 = vmax.f32 %v4635_v35, 0.0  ;;  %v6851_v13 = vld [vmem:[#allocation2 + $0xc4] sm:$0xf] }
 0x522   : > { %v3829_v59 = vpack.c.bf16 %v3765_v58, %v3765_v58  ;;  %3675 = vmatmul.bf16.gmra.mxu3 %v8360_v33  ;;  %v3457_v16 = vmax.f32 %v3367_v5, 0.0 }
 0x523   : > { %v4467_v62 = vpop.f32.mrf.mxu0  ;;  %v6372_v54 = vld [vmem:[#allocation2 + $0x90] sm:$0xf] }
 0x524   : > { %3893 = vst [vmem:[#allocation2 + $0x98] sm:$0xf] %v3829_v59  ;;  %v4468_v63 = vadd.f32 %v8421_v19, %v4467_v62  ;;  %v6401_v59 = vor.u32 %v6851_v13, %v6398_v30 }
 0x525   : > { %v3636_v55 = vpop.f32.mrf.mxu3 }
 0x526   : > { %v4637_v14 = vadd.f32 %v8397_v38, %v4468_v63  ;;  %v3637_v7 = vadd.f32 %v8257_v50, %v3636_v55  ;;  %v8438_v60 = vpop.f32.mrf.mxu1 }
 0x527   : > { %v3368_v57 = vpop.f32.mrf.mxu2 }
 0x528   : > { %v4795_v43 = vmax.f32 %v4637_v14, 0.0  ;;  %v3766_v9 = vmax.f32 %v3637_v7, 0.0  ;;  %v3369_v33 = vadd.f32 %v8266_v2, %v3368_v57 }
 0x529   : > { %4688 = vmatmul.bf16.gmra.mxu1 %v6393_v15 }
 0x52a   : > { %v4858_v47 = vpack.c.bf16 %v4795_v43, %v4794_v36  ;;  %v3830_v51 = vpack.c.bf16 %v3766_v9, %v3766_v9  ;;  %v3458_v42 = vmax.f32 %v3369_v33, 0.0 }
 0x52b   : > { %v4470_v27 = vpop.f32.mrf.mxu0  ;;  %v6846_v23 = vld [vmem:[#allocation2 + $0x94] sm:$0xf0] }
 0x52c   : > { %3894 = vst [vmem:[#allocation2 + $0xa0] sm:$0xf] %v3830_v51  ;;  %4966 = vmatmul.bf16.vlgmr.msra.gmra.mxu2 %v4858_v47  ;;  %v6373_v38 = vor.u32 %v6846_v23, %v6372_v54  ;;  %v8440_v0 = vpack.c.bf16 %v3458_v42, %v3457_v16  ;;  %v4471_v46 = vadd.f32 %v8421_v19, %v4470_v27 }
 0x52d   : > { %v3638_v52 = vpop.f32.mrf.mxu3 }
 0x52e   : > { %v3639_v4 = vadd.f32 %v8257_v50, %v3638_v52  ;;  %4509 = vmatmul.bf16.gmra.mxu0 %v6373_v38  ;;  %v4640_v29 = vadd.f32 %v8403_v17, %v4471_v46  ;;  %v8447_v1 = vpop.f32.mrf.mxu1  ;;  %v6406_v46 = vld [vmem:[#allocation2 + $0xd8] sm:$0xf0] }
 0x52f   : > { %v3371_v20 = vpop.f32.mrf.mxu2 }
 0x530   : > { %v3767_v39 = vmax.f32 %v3639_v4, 0.0  ;;  %v3372_v25 = vadd.f32 %v8266_v2, %v3371_v20  ;;  %v4796_v10 = vmax.f32 %v4640_v29, 0.0  ;;  %v6853_v20 = vld [vmem:[#allocation2 + $0xd4] sm:$0xf] }
 0x532   : > { %v3831_v6 = vpack.c.bf16 %v3767_v39, %v3767_v39  ;;  %3680 = vmatmul.bf16.gmra.mxu3 %v8375_v45  ;;  %v3459_v21 = vmax.f32 %v3372_v25, 0.0 }
 0x533   : > { %v4472_v40 = vpop.f32.mrf.mxu0  ;;  %v6380_v24 = vld [vmem:[#allocation2 + $0xa0] sm:$0xf] }
 0x534   : > { %3895 = vst [vmem:[#allocation2 + $0xa8] sm:$0xf] %v3831_v6  ;;  %v4473_v11 = vadd.f32 %v8421_v19, %v4472_v40  ;;  %v6409_v6 = vor.u32 %v6853_v20, %v6406_v46 }
 0x535   : > { %v3641_v3 = vpop.f32.mrf.mxu3 }
 0x536   : > { %v4642_v41 = vadd.f32 %v8412_v34, %v4473_v11  ;;  %v3642_v12 = vadd.f32 %v8257_v50, %v3641_v3  ;;  %v8453_v58 = vpop.f32.mrf.mxu1 }
 0x537   : > { %v3373_v32 = vpop.f32.mrf.mxu2 }
 0x538   : > { %v4797_v48 = vmax.f32 %v4642_v41, 0.0  ;;  %v3768_v56 = vmax.f32 %v3642_v12, 0.0  ;;  %v3374_v45 = vadd.f32 %v8266_v2, %v3373_v32 }
 0x539   : > { %4693 = vmatmul.bf16.gmra.mxu1 %v6401_v59 }
 0x53a   : > { %v3832_v17 = vpack.c.bf16 %v3768_v56, %v3768_v56  ;;  %v3460_v22 = vmax.f32 %v3374_v45, 0.0  ;;  %v4859_v49 = vpack.c.bf16 %v4797_v48, %v4796_v10 }
 0x53b   : > { %v4475_v28 = vpop.f32.mrf.mxu0  ;;  %v6848_v37 = vld [vmem:[#allocation2 + $0xa4] sm:$0xf0] }
 0x53c   : > { %3896 = vst [vmem:[#allocation2 + $0xb0] sm:$0xf] %v3832_v17  ;;  %4971 = vmatmul.bf16.gmra.mxu2 %v4859_v49  ;;  %v6381_v34 = vor.u32 %v6848_v37, %v6380_v24  ;;  %v8455_v35 = vpack.c.bf16 %v3460_v22, %v3459_v21  ;;  %v4476_v5 = vadd.f32 %v8421_v19, %v4475_v28 }
 0x53d   : > { %v3643_v62 = vpop.f32.mrf.mxu3 }
 0x53e   : > { %v3644_v63 = vadd.f32 %v8257_v50, %v3643_v62  ;;  %4514 = vmatmul.bf16.gmra.mxu0 %v6381_v34  ;;  %v4645_v36 = vadd.f32 %v8423_v18, %v4476_v5  ;;  %v8462_v9 = vpop.f32.mrf.mxu1  ;;  %v6414_v5 = vld [vmem:[#allocation2 + $0xe8] sm:$0xf0] }
 0x53f   : > { %v3376_v55 = vpop.f32.mrf.mxu2 }
 0x540   : > { %v3769_v14 = vmax.f32 %v3644_v63, 0.0  ;;  %v3377_v16 = vadd.f32 %v8266_v2, %v3376_v55  ;;  %v4798_v54 = vmax.f32 %v4645_v36, 0.0  ;;  %v6855_v55 = vld [vmem:[#allocation2 + $0xe4] sm:$0xf] }
 0x542   : > { %v3833_v7 = vpack.c.bf16 %v3769_v14, %v3769_v14  ;;  %3685 = vmatmul.bf16.gmra.mxu3 %v8390_v44  ;;  %v3461_v61 = vmax.f32 %v3377_v16, 0.0 }
 0x543   : > { %v4477_v57 = vpop.f32.mrf.mxu0  ;;  %v6388_v15 = vld [vmem:[#allocation2 + $0xb0] sm:$0xf] }
 0x544   : > { %3897 = vst [vmem:[#allocation2 + $0xb8] sm:$0xf] %v3833_v7  ;;  %v4478_v43 = vadd.f32 %v8421_v19, %v4477_v57 }
 0x545   : > { %v3646_v33 = vpop.f32.mrf.mxu3 }
 0x546   : > { %v4647_v47 = vadd.f32 %v8432_v8, %v4478_v43  ;;  %v3647_v51 = vadd.f32 %v8257_v50, %v3646_v33  ;;  %v8468_v39 = vpop.f32.mrf.mxu1 }
 0x547   : > { %v3378_v42 = vpop.f32.mrf.mxu2 }
 0x548   : > { %v4799_v27 = vmax.f32 %v4647_v47, 0.0  ;;  %v3770_v23 = vmax.f32 %v3647_v51, 0.0  ;;  %v3379_v44 = vadd.f32 %v8266_v2, %v3378_v42 }
 0x549   : > { %4698 = vmatmul.bf16.gmra.mxu1 %v6409_v6 }
 0x54a   : > { %v3834_v18 = vpack.c.bf16 %v3770_v23, %v3770_v23  ;;  %v3462_v26 = vmax.f32 %v3379_v44, 0.0  ;;  %v4860_v38 = vpack.c.bf16 %v4799_v27, %v4798_v54  ;;  %v8502_v44 = vld [vmem:[%s9088_s4 + $0x5] ss:$0 sm:$0xff] }
 0x54b   : > { %v4480_v52 = vpop.f32.mrf.mxu0  ;;  %v6850_v4 = vld [vmem:[#allocation2 + $0xb4] sm:$0xf0] }
 0x54c   : > { %3898 = vst [vmem:[#allocation2 + $0xc0] sm:$0xf] %v3834_v18  ;;  %4976 = vmatmul.bf16.gmra.mxu2 %v4860_v38  ;;  %v6389_v8 = vor.u32 %v6850_v4, %v6388_v15  ;;  %v8470_v29 = vpack.c.bf16 %v3462_v26, %v3461_v61  ;;  %v4481_v25 = vadd.f32 %v8421_v19, %v4480_v52 }
 0x54d   : > { %v3648_v40 = vpop.f32.mrf.mxu3 }
 0x54e   : > { %v3649_v11 = vadd.f32 %v8257_v50, %v3648_v40  ;;  %4519 = vmatmul.bf16.gmra.mxu0 %v6389_v8  ;;  %v4650_v10 = vadd.f32 %v8438_v60, %v4481_v25  ;;  %v8477_v56 = vpop.f32.mrf.mxu1  ;;  %v6422_v25 = vld [vmem:[#allocation2 + $0xf8] sm:$0xf0] }
 0x54f   : > { %v3381_v3 = vpop.f32.mrf.mxu2 }
 0x550   : > { %v3771_v41 = vmax.f32 %v3649_v11, 0.0  ;;  %v3382_v21 = vadd.f32 %v8266_v2, %v3381_v3  ;;  %v4800_v24 = vmax.f32 %v4650_v10, 0.0  ;;  %v6857_v3 = vld [vmem:[#allocation2 + $0xf4] sm:$0xf] }
 0x552   : > { %v3835_v12 = vpack.c.bf16 %v3771_v41, %v3771_v41  ;;  %3690 = vmatmul.bf16.gmra.mxu3 %v8405_v53  ;;  %v3463_v13 = vmax.f32 %v3382_v21, 0.0 }
 0x553   : > { %v4482_v32 = vpop.f32.mrf.mxu0  ;;  %v6396_v59 = vld [vmem:[#allocation2 + $0xc0] sm:$0xf] }
 0x554   : > { %3899 = vst [vmem:[#allocation2 + $0xc8] sm:$0xf] %v3835_v12  ;;  %v4483_v48 = vadd.f32 %v8421_v19, %v4482_v32  ;;  %v6425_v12 = vor.u32 %v6857_v3, %v6422_v25 }
 0x555   : > { %v3651_v45 = vpop.f32.mrf.mxu3 }
 0x556   : > { %v4652_v17 = vadd.f32 %v8447_v1, %v4483_v48  ;;  %v3652_v22 = vadd.f32 %v8257_v50, %v3651_v45  ;;  %v8483_v14 = vpop.f32.mrf.mxu1  ;;  %v6417_v50 = vor.u32 %v6855_v55, %v6414_v5 }
 0x557   : > { %v3383_v49 = vpop.f32.mrf.mxu2 }
 0x558   : > { %v4801_v28 = vmax.f32 %v4652_v17, 0.0  ;;  %v3772_v37 = vmax.f32 %v3652_v22, 0.0  ;;  %v3384_v53 = vadd.f32 %v8266_v2, %v3383_v49  ;;  %v8490_v2 = vld [vmem:[%s9088_s4 + $0x6] ss:$0 sm:$0xff] }
 0x559   : > { %4703 = vmatmul.bf16.gmra.mxu1 %v6417_v50 }
 0x55a   : > { %v3836_v60 = vpack.c.bf16 %v3772_v37, %v3772_v37  ;;  %v3464_v30 = vmax.f32 %v3384_v53, 0.0  ;;  %v4861_v34 = vpack.c.bf16 %v4801_v28, %v4800_v24 }
 0x55b   : > { %v4485_v62 = vpop.f32.mrf.mxu0  ;;  %v6852_v63 = vld [vmem:[#allocation2 + $0xc4] sm:$0xf0] }
 0x55c   : > { %3900 = vst [vmem:[#allocation2 + $0xd0] sm:$0xf] %v3836_v60  ;;  %4981 = vmatmul.bf16.gmra.mxu2 %v4861_v34  ;;  %v6397_v1 = vor.u32 %v6852_v63, %v6396_v59  ;;  %v8485_v57 = vpack.c.bf16 %v3464_v30, %v3463_v13  ;;  %v4486_v33 = vadd.f32 %v8421_v19, %v4485_v62 }
 0x55d   : > { %v3653_v7 = vpop.f32.mrf.mxu3 }
 0x55e   : > { %v3654_v36 = vadd.f32 %v8490_v2, %v3653_v7  ;;  %4524 = vmatmul.bf16.gmra.mxu0 %v6397_v1  ;;  %v4655_v42 = vadd.f32 %v8453_v58, %v4486_v33  ;;  %v8497_v27 = vpop.f32.mrf.mxu1  ;;  %v6430_v33 = vld [vmem:[#allocation2 + $0x108] sm:$0xf0] }
 0x55f   : > { %v3386_v43 = vpop.f32.mrf.mxu2 }
 0x560   : > { %v3773_v16 = vmax.f32 %v3654_v36, 0.0  ;;  %v3387_v61 = vadd.f32 %v8502_v44, %v3386_v43  ;;  %v4802_v38 = vmax.f32 %v4655_v42, 0.0  ;;  %v6859_v43 = vld [vmem:[#allocation2 + $0x104] sm:$0xf] }
 0x562   : > { %v3837_v47 = vpack.c.bf16 %v3773_v16, %v3773_v16  ;;  %3695 = vmatmul.bf16.gmra.mxu3 %v8425_v31  ;;  %v3465_v4 = vmax.f32 %v3387_v61, 0.0 }
 0x563   : > { %v4487_v51 = vpop.f32.mrf.mxu0  ;;  %v6404_v6 = vld [vmem:[#allocation2 + $0xd0] sm:$0xf] }
 0x564   : > { %3901 = vst [vmem:[#allocation2 + $0xd8] sm:$0xf] %v3837_v47  ;;  %v4488_v54 = vadd.f32 %v8421_v19, %v4487_v51  ;;  %v6433_v47 = vor.u32 %v6859_v43, %v6430_v33 }
 0x565   : > { %v3656_v23 = vpop.f32.mrf.mxu3 }
 0x566   : > { %v4657_v18 = vadd.f32 %v8462_v9, %v4488_v54  ;;  %v3657_v31 = vadd.f32 %v8490_v2, %v3656_v23  ;;  %v8508_v41 = vpop.f32.mrf.mxu1 }
 0x567   : > { %v3388_v26 = vpop.f32.mrf.mxu2 }
 0x568   : > { %v4803_v58 = vmax.f32 %v4657_v18, 0.0  ;;  %v3774_v15 = vmax.f32 %v3657_v31, 0.0  ;;  %v3389_v52 = vadd.f32 %v8502_v44, %v3388_v26 }
 0x569   : > { %4708 = vmatmul.bf16.gmra.mxu1 %v6425_v12 }
 0x56a   : > { %v3838_v20 = vpack.c.bf16 %v3774_v15, %v3774_v15  ;;  %v3466_v46 = vmax.f32 %v3389_v52, 0.0  ;;  %v4862_v8 = vpack.c.bf16 %v4803_v58, %v4802_v38 }
 0x56b   : > { %v4490_v40 = vpop.f32.mrf.mxu0  ;;  %v6854_v11 = vld [vmem:[#allocation2 + $0xd4] sm:$0xf0] }
 0x56c   : > { %3902 = vst [vmem:[#allocation2 + $0xe0] sm:$0xf] %v3838_v20  ;;  %4986 = vmatmul.bf16.gmra.mxu2 %v4862_v8  ;;  %v6405_v9 = vor.u32 %v6854_v11, %v6404_v6  ;;  %v8510_v10 = vpack.c.bf16 %v3466_v46, %v3465_v4  ;;  %v4491_v21 = vadd.f32 %v8421_v19, %v4490_v40 }
 0x56d   : > { %v3658_v32 = vpop.f32.mrf.mxu3 }
 0x56e   : > { %v3659_v48 = vadd.f32 %v8490_v2, %v3658_v32  ;;  %4529 = vmatmul.bf16.gmra.mxu0 %v6405_v9  ;;  %v4660_v24 = vadd.f32 %v8468_v39, %v4491_v21  ;;  %v8517_v37 = vpop.f32.mrf.mxu1  ;;  %v6438_v21 = vld [vmem:[#allocation2 + $0x118] sm:$0xf0] }
 0x56f   : > { %v3391_v45 = vpop.f32.mrf.mxu2 }
 0x570   : > { %v3775_v17 = vmax.f32 %v3659_v48, 0.0  ;;  %v3392_v13 = vadd.f32 %v8502_v44, %v3391_v45  ;;  %v4804_v59 = vmax.f32 %v4660_v24, 0.0  ;;  %v6861_v45 = vld [vmem:[#allocation2 + $0x114] sm:$0xf] }
 0x572   : > { %v3839_v22 = vpack.c.bf16 %v3775_v17, %v3775_v17  ;;  %3700 = vmatmul.bf16.gmra.mxu3 %v8440_v0  ;;  %v3467_v55 = vmax.f32 %v3392_v13, 0.0 }
 0x573   : > { %v4492_v49 = vpop.f32.mrf.mxu0  ;;  %v6412_v50 = vld [vmem:[#allocation2 + $0xe0] sm:$0xf] }
 0x574   : > { %3903 = vst [vmem:[#allocation2 + $0xe8] sm:$0xf] %v3839_v22  ;;  %v4493_v28 = vadd.f32 %v8421_v19, %v4492_v49  ;;  %v6441_v22 = vor.u32 %v6861_v45, %v6438_v21 }
 0x575   : > { %v3661_v53 = vpop.f32.mrf.mxu3 }
 0x576   : > { %v4662_v60 = vadd.f32 %v8477_v56, %v4493_v28  ;;  %v3662_v30 = vadd.f32 %v8490_v2, %v3661_v53  ;;  %v8523_v16 = vpop.f32.mrf.mxu1 }
 0x577   : > { %v3393_v34 = vpop.f32.mrf.mxu2 }
 0x578   : > { %v4805_v62 = vmax.f32 %v4662_v60, 0.0  ;;  %v3776_v63 = vmax.f32 %v3662_v30, 0.0  ;;  %v3394_v0 = vadd.f32 %v8502_v44, %v3393_v34 }
 0x579   : > { %4713 = vmatmul.bf16.gmra.mxu1 %v6433_v47 }
 0x57a   : > { %v3840_v39 = vpack.c.bf16 %v3776_v63, %v3776_v63  ;;  %v3468_v5 = vmax.f32 %v3394_v0, 0.0  ;;  %v4863_v1 = vpack.c.bf16 %v4805_v62, %v4804_v59 }
 0x57b   : > { %v4495_v7 = vpop.f32.mrf.mxu0  ;;  %v6856_v36 = vld [vmem:[#allocation2 + $0xe4] sm:$0xf0] }
 0x57c   : > { %3904 = vst [vmem:[#allocation2 + $0xf0] sm:$0xf] %v3840_v39  ;;  %4991 = vmatmul.bf16.gmra.mxu2 %v4863_v1  ;;  %v6413_v56 = vor.u32 %v6856_v36, %v6412_v50  ;;  %v8525_v42 = vpack.c.bf16 %v3468_v5, %v3467_v55  ;;  %v4496_v61 = vadd.f32 %v8421_v19, %v4495_v7 }
 0x57d   : > { %v3663_v51 = vpop.f32.mrf.mxu3 }
 0x57e   : > { %v3664_v54 = vadd.f32 %v8490_v2, %v3663_v51  ;;  %4534 = vmatmul.bf16.gmra.mxu0 %v6413_v56  ;;  %v4665_v38 = vadd.f32 %v8483_v14, %v4496_v61  ;;  %v8532_v15 = vpop.f32.mrf.mxu1  ;;  %v6446_v61 = vld [vmem:[#allocation2 + $0x128] sm:$0xf0] }
 0x57f   : > { %v3396_v23 = vpop.f32.mrf.mxu2 }
 0x580   : > { %v3777_v18 = vmax.f32 %v3664_v54, 0.0  ;;  %v3397_v4 = vadd.f32 %v8502_v44, %v3396_v23  ;;  %v4806_v6 = vmax.f32 %v4665_v38, 0.0  ;;  %v6863_v23 = vld [vmem:[#allocation2 + $0x124] sm:$0xf] }
 0x582   : > { %v3841_v31 = vpack.c.bf16 %v3777_v18, %v3777_v18  ;;  %3705 = vmatmul.bf16.gmra.mxu3 %v8455_v35  ;;  %v3469_v3 = vmax.f32 %v3397_v4, 0.0 }
 0x583   : > { %v4497_v26 = vpop.f32.mrf.mxu0  ;;  %v6420_v12 = vld [vmem:[#allocation2 + $0xf0] sm:$0xf] }
 0x584   : > { %3905 = vst [vmem:[#allocation2 + $0xf8] sm:$0xf] %v3841_v31  ;;  %v4498_v58 = vadd.f32 %v8421_v19, %v4497_v26  ;;  %v6449_v31 = vor.u32 %v6863_v23, %v6446_v61 }
 0x585   : > { %v3666_v52 = vpop.f32.mrf.mxu3 }
 0x586   : > { %v4667_v20 = vadd.f32 %v8497_v27, %v4498_v58  ;;  %v3667_v46 = vadd.f32 %v8490_v2, %v3666_v52  ;;  %v8538_v17 = vpop.f32.mrf.mxu1 }
 0x587   : > { %v3398_v8 = vpop.f32.mrf.mxu2 }
 0x588   : > { %v4807_v40 = vmax.f32 %v4667_v20, 0.0  ;;  %v3778_v11 = vmax.f32 %v3667_v46, 0.0  ;;  %v3399_v35 = vadd.f32 %v8502_v44, %v3398_v8 }
 0x589   : > { %4718 = vmatmul.bf16.gmra.mxu1 %v6441_v22 }
 0x58a   : > { %v3842_v14 = vpack.c.bf16 %v3778_v11, %v3778_v11  ;;  %v3470_v25 = vmax.f32 %v3399_v35, 0.0  ;;  %v4864_v9 = vpack.c.bf16 %v4807_v40, %v4806_v6 }
 0x58b   : > { %v4500_v32 = vpop.f32.mrf.mxu0  ;;  %v6858_v48 = vld [vmem:[#allocation2 + $0xf4] sm:$0xf0] }
 0x58c   : > { %3906 = vst [vmem:[#allocation2 + $0x100] sm:$0xf] %v3842_v14  ;;  %4996 = vmatmul.bf16.gmra.mxu2 %v4864_v9  ;;  %v6421_v27 = vor.u32 %v6858_v48, %v6420_v12  ;;  %v8540_v24 = vpack.c.bf16 %v3470_v25, %v3469_v3  ;;  %v4501_v13 = vadd.f32 %v8421_v19, %v4500_v32 }
 0x58d   : > { %v3668_v49 = vpop.f32.mrf.mxu3 }
 0x58e   : > { %v3669_v28 = vadd.f32 %v8490_v2, %v3668_v49  ;;  %4539 = vmatmul.bf16.gmra.mxu0 %v6421_v27  ;;  %v4670_v59 = vadd.f32 %v8508_v41, %v4501_v13  ;;  %v8547_v63 = vpop.f32.mrf.mxu1  ;;  %v6454_v13 = vld [vmem:[#allocation2 + $0x138] sm:$0xf0] }
 0x58f   : > { %v3401_v53 = vpop.f32.mrf.mxu2 }
 0x590   : > { %v3779_v60 = vmax.f32 %v3669_v28, 0.0  ;;  %v3402_v55 = vadd.f32 %v8502_v44, %v3401_v53  ;;  %v4808_v50 = vmax.f32 %v4670_v59, 0.0  ;;  %v6865_v53 = vld [vmem:[#allocation2 + $0x134] sm:$0xf] }
 0x592   : > { %v3843_v30 = vpack.c.bf16 %v3779_v60, %v3779_v60  ;;  %3710 = vmatmul.bf16.gmra.mxu3 %v8470_v29  ;;  %v3471_v43 = vmax.f32 %v3402_v55, 0.0  ;;  %v8572_v60 = vld [vmem:[%s9089_s5] ss:$0 sm:$0xff] }
 0x593   : > { %v4502_v34 = vpop.f32.mrf.mxu0  ;;  %v6428_v47 = vld [vmem:[#allocation2 + $0x100] sm:$0xf] }
 0x594   : > { %3907 = vst [vmem:[#allocation2 + $0x108] sm:$0xf] %v3843_v30  ;;  %v4503_v62 = vadd.f32 %v8421_v19, %v4502_v34  ;;  %v6457_v30 = vor.u32 %v6865_v53, %v6454_v13  ;;  %v6869_v13 = vld [vmem:[#allocation2 + $0x154] sm:$0xf] }
 0x595   : > { %v3671_v0 = vpop.f32.mrf.mxu3 }
 0x596   : > { %v4672_v39 = vadd.f32 %v8517_v37, %v4503_v62  ;;  %v3672_v5 = vadd.f32 %v8490_v2, %v3671_v0  ;;  %v8553_v18 = vpop.f32.mrf.mxu1 }
 0x597   : > { %v3403_v1 = vpop.f32.mrf.mxu2 }
 0x598   : > { %v4809_v7 = vmax.f32 %v4672_v39, 0.0  ;;  %v3780_v36 = vmax.f32 %v3672_v5, 0.0  ;;  %v3404_v29 = vadd.f32 %v8502_v44, %v3403_v1 }
 0x599   : > { %4723 = vmatmul.bf16.gmra.mxu1 %v6449_v31 }
 0x59a   : > { %v3844_v41 = vpack.c.bf16 %v3780_v36, %v3780_v36  ;;  %v3472_v33 = vmax.f32 %v3404_v29, 0.0  ;;  %v4865_v56 = vpack.c.bf16 %v4809_v7, %v4808_v50 }
 0x59b   : > { %v4505_v51 = vpop.f32.mrf.mxu0  ;;  %v6860_v54 = vld [vmem:[#allocation2 + $0x104] sm:$0xf0] }
 0x59c   : > { %3908 = vst [vmem:[#allocation2 + $0x110] sm:$0xf] %v3844_v41  ;;  %5001 = vmatmul.bf16.gmra.mxu2 %v4865_v56  ;;  %v6429_v37 = vor.u32 %v6860_v54, %v6428_v47  ;;  %v8555_v38 = vpack.c.bf16 %v3472_v33, %v3471_v43  ;;  %v4506_v4 = vadd.f32 %v8421_v19, %v4505_v51 }
 0x59d   : > { %v3673_v26 = vpop.f32.mrf.mxu3 }
 0x59e   : > { %v3674_v58 = vadd.f32 %v8490_v2, %v3673_v26  ;;  %4544 = vmatmul.bf16.gmra.mxu0 %v6429_v37  ;;  %v4675_v6 = vadd.f32 %v8523_v16, %v4506_v4  ;;  %v8562_v11 = vpop.f32.mrf.mxu1  ;;  %v6867_v26 = vld [vmem:[#allocation2 + $0x144] sm:$0xf] }
 0x59f   : > { %v3406_v52 = vpop.f32.mrf.mxu2 }
 0x5a0   : > { %v3781_v20 = vmax.f32 %v3674_v58, 0.0  ;;  %v3407_v3 = vadd.f32 %v8502_v44, %v3406_v52  ;;  %v4810_v12 = vmax.f32 %v4675_v6, 0.0  ;;  %v6462_v58 = vld [vmem:[#allocation2 + $0x148] sm:$0xf0] }
 0x5a1   : > { %v6465_v4 = vor.u32 %v6867_v26, %v6462_v58  ;;  %v6871_v26 = vld [vmem:[#allocation2 + $0x164] sm:$0xf]  ;;  %v6478_v58 = vld [vmem:[#allocation2 + $0x168] sm:$0xf0] }
 0x5a2   : > { %v3845_v46 = vpack.c.bf16 %v3781_v20, %v3781_v20  ;;  %3715 = vmatmul.bf16.gmra.mxu3 %v8485_v57  ;;  %v3473_v16 = vmax.f32 %v3407_v3, 0.0 }
 0x5a3   : > { %v4507_v8 = vpop.f32.mrf.mxu0  ;;  %v6436_v22 = vld [vmem:[#allocation2 + $0x110] sm:$0xf] }
 0x5a4   : > { %3909 = vst [vmem:[#allocation2 + $0x118] sm:$0xf] %v3845_v46  ;;  %v4508_v40 = vadd.f32 %v8421_v19, %v4507_v8 }
 0x5a5   : > { %v3676_v35 = vpop.f32.mrf.mxu3 }
 0x5a6   : > { %v4677_v14 = vadd.f32 %v8532_v15, %v4508_v40  ;;  %v3677_v25 = vadd.f32 %v8490_v2, %v3676_v35 }
 0x5a7   : > { %v3408_v9 = vpop.f32.mrf.mxu2 }
 0x5a8   : > { %v4811_v32 = vmax.f32 %v4677_v14, 0.0  ;;  %v3782_v48 = vmax.f32 %v3677_v25, 0.0  ;;  %v3409_v57 = vadd.f32 %v8502_v44, %v3408_v9  ;;  %v8574_v44 = vpop.f32.mrf.mxu1 }
 0x5a9   : > { %4728 = vmatmul.bf16.gmra.mxu1 %v6457_v30 }
 0x5aa   : > { %v3846_v45 = vpack.c.bf16 %v3782_v48, %v3782_v48  ;;  %v3474_v21 = vmax.f32 %v3409_v57, 0.0  ;;  %v4866_v27 = vpack.c.bf16 %v4811_v32, %v4810_v12 }
 0x5ab   : > { %v4510_v49 = vpop.f32.mrf.mxu0  ;;  %v6862_v28 = vld [vmem:[#allocation2 + $0x114] sm:$0xf0] }
 0x5ac   : > { %3910 = vst [vmem:[#allocation2 + $0x120] sm:$0xf] %v3846_v45  ;;  %5006 = vmatmul.bf16.gmra.mxu2 %v4866_v27  ;;  %v6437_v15 = vor.u32 %v6862_v28, %v6436_v22  ;;  %v8576_v59 = vpack.c.bf16 %v3474_v21, %v3473_v16  ;;  %v4511_v55 = vadd.f32 %v8421_v19, %v4510_v49 }
 0x5ad   : > { %v3678_v34 = vpop.f32.mrf.mxu3 }
 0x5ae   : > { %v3679_v62 = vadd.f32 %v8490_v2, %v3678_v34  ;;  %4549 = vmatmul.bf16.gmra.mxu0 %v6437_v15  ;;  %v4680_v7 = vadd.f32 %v8538_v17, %v4511_v55  ;;  %v6470_v15 = vld [vmem:[#allocation2 + $0x158] sm:$0xf0] }
 0x5af   : > { %v4967_v0 = vpop.f32.mrf.mxu2  ;;  %v6473_v34 = vor.u32 %v6869_v13, %v6470_v15  ;;  %v6486_v13 = vld [vmem:[#allocation2 + $0x178] sm:$0xf0] }
 0x5b0   : > { %v3783_v39 = vmax.f32 %v3679_v62, 0.0  ;;  %v4968_v5 = vadd.f32 %v8572_v60, %v4967_v0  ;;  %v8588_v29 = vpop.f32.mrf.mxu1  ;;  %v4812_v47 = vmax.f32 %v4680_v7, 0.0 }
 0x5b2   : > { %v3847_v1 = vpack.c.bf16 %v3783_v39, %v3783_v39  ;;  %5128 = vst.msk [vmem:[%s8581_s21] sm:$0xff] %vm5127_vm1, %v4968_v5  ;;  %3720 = vmatmul.bf16.gmra.mxu3 %v8510_v10 }
 0x5b3   : > { %v4512_v50 = vpop.f32.mrf.mxu0  ;;  %v6444_v61 = vld [vmem:[#allocation2 + $0x120] sm:$0xf] }
 0x5b4   : > { %3911 = vst [vmem:[#allocation2 + $0x128] sm:$0xf] %v3847_v1  ;;  %v4513_v36 = vadd.f32 %v8421_v19, %v4512_v50 }
 0x5b5   : > { %v3681_v43 = vpop.f32.mrf.mxu3 }
 0x5b6   : > { %v4682_v41 = vadd.f32 %v8547_v63, %v4513_v36  ;;  %v3682_v33 = vadd.f32 %v8490_v2, %v3681_v43 }
 0x5b7   : > { %v4969_v56 = vpop.f32.mrf.mxu2 }
 0x5b8   : > { %v4813_v51 = vmax.f32 %v4682_v41, 0.0  ;;  %v3784_v54 = vmax.f32 %v3682_v33, 0.0  ;;  %v4970_v23 = vadd.f32 %v8572_v60, %v4969_v56  ;;  %v8595_v52 = vpop.f32.mrf.mxu1 }
 0x5b9   : > { %4733 = vmatmul.bf16.gmra.mxu1 %v6465_v4  ;;  %v6481_v4 = vor.u32 %v6871_v26, %v6478_v58 }
 0x5ba   : > { %v3848_v10 = vpack.c.bf16 %v3784_v54, %v3784_v54  ;;  %5129 = vst.msk [vmem:[%s8581_s21 + $0x8] sm:$0xff] %vm5127_vm1, %v4970_v23  ;;  %v4867_v17 = vpack.c.bf16 %v4813_v51, %v4812_v47 }
 0x5bb   : > { %v4515_v37 = vpop.f32.mrf.mxu0  ;;  %v6864_v31 = vld [vmem:[#allocation2 + $0x124] sm:$0xf0] }
 0x5bc   : > { %3912 = vst [vmem:[#allocation2 + $0x130] sm:$0xf] %v3848_v10  ;;  %5011 = vmatmul.bf16.gmra.mxu2 %v4867_v17  ;;  %v6445_v63 = vor.u32 %v6864_v31, %v6444_v61  ;;  %v4516_v6 = vadd.f32 %v8421_v19, %v4515_v37 }
 0x5bd   : > { %v3683_v20 = vpop.f32.mrf.mxu3 }
 0x5be   : > { %v3684_v46 = vadd.f32 %v8490_v2, %v3683_v20  ;;  %4554 = vmatmul.bf16.gmra.mxu0 %v6445_v63  ;;  %v4685_v25 = vadd.f32 %v8553_v18, %v4516_v6 }
 0x5bf   : > { %v4972_v8 = vpop.f32.mrf.mxu2 }
 0x5c0   : > { %v3785_v40 = vmax.f32 %v3684_v46, 0.0  ;;  %v4973_v35 = vadd.f32 %v8572_v60, %v4972_v8  ;;  %v8605_v12 = vpop.f32.mrf.mxu1  ;;  %v4814_v45 = vmax.f32 %v4685_v25, 0.0 }
 0x5c2   : > { %v3849_v3 = vpack.c.bf16 %v3785_v40, %v3785_v40  ;;  %5130 = vst.msk [vmem:[%s8581_s21 + $0x10] sm:$0xff] %vm5127_vm1, %v4973_v35  ;;  %3725 = vmatmul.bf16.gmra.mxu3 %v8525_v42 }
 0x5c3   : > { %v4517_v14 = vpop.f32.mrf.mxu0  ;;  %v6452_v49 = vld [vmem:[#allocation2 + $0x130] sm:$0xf] }
 0x5c4   : > { %3913 = vst [vmem:[#allocation2 + $0x138] sm:$0xf] %v3849_v3  ;;  %v4518_v9 = vadd.f32 %v8421_v19, %v4517_v14 }
 0x5c5   : > { %v3686_v32 = vpop.f32.mrf.mxu3 }
 0x5c6   : > { %v4687_v48 = vadd.f32 %v8562_v11, %v4518_v9  ;;  %v3687_v57 = vadd.f32 %v8490_v2, %v3686_v32 }
 0x5c7   : > { %v4974_v16 = vpop.f32.mrf.mxu2 }
 0x5c8   : > { %v4815_v21 = vmax.f32 %v4687_v48, 0.0  ;;  %v3786_v27 = vmax.f32 %v3687_v57, 0.0  ;;  %v4975_v22 = vadd.f32 %v8572_v60, %v4974_v16  ;;  %v8612_v30 = vpop.f32.mrf.mxu1 }
 0x5c9   : > { %4738 = vmatmul.bf16.gmra.mxu1 %v6473_v34 }
 0x5ca   : > { %v3850_v42 = vpack.c.bf16 %v3786_v27, %v3786_v27  ;;  %5131 = vst.msk [vmem:[%s8581_s21 + $0x18] sm:$0xff] %vm5127_vm1, %v4975_v22  ;;  %v4868_v18 = vpack.c.bf16 %v4815_v21, %v4814_v45 }
 0x5cb   : > { %v4520_v28 = vpop.f32.mrf.mxu0  ;;  %v6866_v53 = vld [vmem:[#allocation2 + $0x134] sm:$0xf0] }
 0x5cc   : > { %3914 = vst [vmem:[#allocation2 + $0x140] sm:$0xf] %v3850_v42  ;;  %5016 = vmatmul.bf16.gmra.mxu2 %v4868_v18  ;;  %v6453_v11 = vor.u32 %v6866_v53, %v6452_v49  ;;  %v4521_v39 = vadd.f32 %v8421_v19, %v4520_v28  ;;  %v6873_v53 = vld [vmem:[#allocation2 + $0x174] sm:$0xf] }
 0x5cd   : > { %v3688_v62 = vpop.f32.mrf.mxu3 }
 0x5ce   : > { %v3689_v0 = vadd.f32 %v8490_v2, %v3688_v62  ;;  %4559 = vmatmul.bf16.gmra.mxu0 %v6453_v11  ;;  %v4690_v36 = vadd.f32 %v8574_v44, %v4521_v39  ;;  %v6489_v11 = vor.u32 %v6873_v53, %v6486_v13 }
 0x5cf   : > { %v4977_v55 = vpop.f32.mrf.mxu2 }
 0x5d0   : > { %v3787_v5 = vmax.f32 %v3689_v0, 0.0  ;;  %v4978_v1 = vadd.f32 %v8572_v60, %v4977_v55  ;;  %v8622_v41 = vpop.f32.mrf.mxu1  ;;  %v4816_v54 = vmax.f32 %v4690_v36, 0.0  ;;  %v8658_v36 = vld [vmem:[%s9088_s4 + $0x7] ss:$0 sm:$0xff] }
 0x5d2   : > { %v3851_v50 = vpack.c.bf16 %v3787_v5, %v3787_v5  ;;  %5132 = vst.msk [vmem:[%s8581_s21 + $0x20] sm:$0xff] %vm5127_vm1, %v4978_v1  ;;  %3730 = vmatmul.bf16.gmra.mxu3 %v8540_v24 }
 0x5d3   : > { %v4522_v7 = vpop.f32.mrf.mxu0  ;;  %v6460_v61 = vld [vmem:[#allocation2 + $0x140] sm:$0xf] }
 0x5d4   : > { %3915 = vst [vmem:[#allocation2 + $0x148] sm:$0xf] %v3851_v50  ;;  %v4523_v43 = vadd.f32 %v8421_v19, %v4522_v7 }
 0x5d5   : > { %v3691_v33 = vpop.f32.mrf.mxu3 }
 0x5d6   : > { %v4692_v56 = vadd.f32 %v8588_v29, %v4523_v43  ;;  %v3692_v47 = vadd.f32 %v8490_v2, %v3691_v33 }
 0x5d7   : > { %v4979_v51 = vpop.f32.mrf.mxu2 }
 0x5d8   : > { %v4817_v23 = vmax.f32 %v4692_v56, 0.0  ;;  %v3788_v10 = vmax.f32 %v3692_v47, 0.0  ;;  %v4980_v17 = vadd.f32 %v8572_v60, %v4979_v51  ;;  %v8629_v63 = vpop.f32.mrf.mxu1 }
 0x5d9   : > { %4743 = vmatmul.bf16.gmra.mxu1 %v6481_v4 }
 0x5da   : > { %v3852_v24 = vpack.c.bf16 %v3788_v10, %v3788_v10  ;;  %5133 = vst.msk [vmem:[%s8581_s21 + $0x28] sm:$0xff] %vm5127_vm1, %v4980_v17  ;;  %v4869_v44 = vpack.c.bf16 %v4817_v23, %v4816_v54 }
 0x5db   : > { %v4525_v37 = vpop.f32.mrf.mxu0  ;;  %v6868_v31 = vld [vmem:[#allocation2 + $0x144] sm:$0xf0] }
 0x5dc   : > { %3916 = vst [vmem:[#allocation2 + $0x150] sm:$0xf] %v3852_v24  ;;  %5021 = vmatmul.bf16.gmra.mxu2 %v4869_v44  ;;  %v6461_v29 = vor.u32 %v6868_v31, %v6460_v61  ;;  %v4526_v6 = vadd.f32 %v8421_v19, %v4525_v37  ;;  %v6875_v37 = vld [vmem:[#allocation2 + $0x184] sm:$0xf]  ;;  %v6494_v31 = vld [vmem:[#allocation2 + $0x188] sm:$0xf0] }
 0x5dd   : > { %v3693_v20 = vpop.f32.mrf.mxu3  ;;  %v6497_v58 = vor.u32 %v6875_v37, %v6494_v31 }
 0x5de   : > { %v3694_v46 = vadd.f32 %v8490_v2, %v3693_v20  ;;  %4564 = vmatmul.bf16.gmra.mxu0 %v6461_v29  ;;  %v4695_v25 = vadd.f32 %v8595_v52, %v4526_v6 }
 0x5df   : > { %v4982_v8 = vpop.f32.mrf.mxu2 }
 0x5e0   : > { %v3789_v40 = vmax.f32 %v3694_v46, 0.0  ;;  %v4983_v35 = vadd.f32 %v8572_v60, %v4982_v8  ;;  %v8639_v32 = vpop.f32.mrf.mxu1  ;;  %v4818_v21 = vmax.f32 %v4695_v25, 0.0 }
 0x5e2   : > { %v3853_v3 = vpack.c.bf16 %v3789_v40, %v3789_v40  ;;  %5134 = vst.msk [vmem:[%s8581_s21 + $0x30] sm:$0xff] %vm5127_vm1, %v4983_v35  ;;  %3735 = vmatmul.bf16.gmra.mxu3 %v8555_v38 }
 0x5e3   : > { %v4527_v14 = vpop.f32.mrf.mxu0  ;;  %v6468_v18 = vld [vmem:[#allocation2 + $0x150] sm:$0xf] }
 0x5e4   : > { %3917 = vst [vmem:[#allocation2 + $0x158] sm:$0xf] %v3853_v3  ;;  %v4528_v9 = vadd.f32 %v8421_v19, %v4527_v14 }
 0x5e5   : > { %v3696_v48 = vpop.f32.mrf.mxu3 }
 0x5e6   : > { %v4697_v57 = vadd.f32 %v8605_v12, %v4528_v9  ;;  %v3697_v16 = vadd.f32 %v8490_v2, %v3696_v48 }
 0x5e7   : > { %v4984_v45 = vpop.f32.mrf.mxu2 }
 0x5e8   : > { %v4819_v27 = vmax.f32 %v4697_v57, 0.0  ;;  %v3790_v22 = vmax.f32 %v3697_v16, 0.0  ;;  %v4985_v42 = vadd.f32 %v8572_v60, %v4984_v45  ;;  %v8646_v15 = vpop.f32.mrf.mxu1 }
 0x5e9   : > { %4748 = vmatmul.bf16.gmra.mxu1 %v6489_v11 }
 0x5ea   : > { %v3854_v38 = vpack.c.bf16 %v3790_v22, %v3790_v22  ;;  %5135 = vst.msk [vmem:[%s8581_s21 + $0x38] sm:$0xff] %vm5127_vm1, %v4985_v42  ;;  %v4870_v52 = vpack.c.bf16 %v4819_v27, %v4818_v21 }
 0x5eb   : > { %v4530_v49 = vpop.f32.mrf.mxu0  ;;  %v6870_v28 = vld [vmem:[#allocation2 + $0x154] sm:$0xf0] }
 0x5ec   : > { %3918 = vst [vmem:[#allocation2 + $0x160] sm:$0xf] %v3854_v38  ;;  %5026 = vmatmul.bf16.gmra.mxu2 %v4870_v52  ;;  %v6469_v12 = vor.u32 %v6870_v28, %v6468_v18  ;;  %v4531_v55 = vadd.f32 %v8421_v19, %v4530_v49  ;;  %v6877_v49 = vld [vmem:[#allocation2 + $0x194] sm:$0xf]  ;;  %v6502_v28 = vld [vmem:[#allocation2 + $0x198] sm:$0xf0] }
 0x5ed   : > { %v3698_v34 = vpop.f32.mrf.mxu3  ;;  %v6505_v13 = vor.u32 %v6877_v49, %v6502_v28 }
 0x5ee   : > { %v3699_v62 = vadd.f32 %v8490_v2, %v3698_v34  ;;  %4569 = vmatmul.bf16.gmra.mxu0 %v6469_v12  ;;  %v4700_v7 = vadd.f32 %v8612_v30, %v4531_v55 }
 0x5ef   : > { %v4987_v0 = vpop.f32.mrf.mxu2 }
 0x5f0   : > { %v3791_v39 = vmax.f32 %v3699_v62, 0.0  ;;  %v4988_v5 = vadd.f32 %v8572_v60, %v4987_v0  ;;  %v8661_v43 = vpop.f32.mrf.mxu1  ;;  %v4820_v51 = vmax.f32 %v4700_v7, 0.0 }
 0x5f2   : > { %v3855_v1 = vpack.c.bf16 %v3791_v39, %v3791_v39  ;;  %5136 = vst.msk [vmem:[%s8581_s21 + $0x40] sm:$0xff] %vm5127_vm1, %v4988_v5  ;;  %3740 = vmatmul.bf16.gmra.mxu3 %v8576_v59 }
 0x5f3   : > { %v4532_v50 = vpop.f32.mrf.mxu0  ;;  %v6476_v24 = vld [vmem:[#allocation2 + $0x160] sm:$0xf] }
 0x5f4   : > { %3919 = vst [vmem:[#allocation2 + $0x168] sm:$0xf] %v3855_v1  ;;  %v4533_v19 = vadd.f32 %v8658_v36, %v4532_v50 }
 0x5f5   : > { %v3701_v33 = vpop.f32.mrf.mxu3 }
 0x5f6   : > { %v4702_v56 = vadd.f32 %v8622_v41, %v4533_v19  ;;  %v3702_v47 = vadd.f32 %v8490_v2, %v3701_v33 }
 0x5f7   : > { %v4989_v59 = vpop.f32.mrf.mxu2 }
 0x5f8   : > { %v4821_v54 = vmax.f32 %v4702_v56, 0.0  ;;  %v3792_v23 = vmax.f32 %v3702_v47, 0.0  ;;  %v4990_v30 = vadd.f32 %v8572_v60, %v4989_v59  ;;  %v8668_v26 = vpop.f32.mrf.mxu1 }
 0x5f9   : > { %4753 = vmatmul.bf16.gmra.mxu1 %v6497_v58 }
 0x5fa   : > { %v3856_v10 = vpack.c.bf16 %v3792_v23, %v3792_v23  ;;  %5137 = vst.msk [vmem:[%s8581_s21 + $0x48] sm:$0xff] %vm5127_vm1, %v4990_v30  ;;  %v4871_v17 = vpack.c.bf16 %v4821_v54, %v4820_v51 }
 0x5fb   : > { %v4535_v44 = vpop.f32.mrf.mxu0  ;;  %v6872_v61 = vld [vmem:[#allocation2 + $0x164] sm:$0xf0] }
 0x5fc   : > { %3920 = vst [vmem:[#allocation2 + $0x170] sm:$0xf] %v3856_v10  ;;  %5031 = vmatmul.bf16.gmra.mxu2 %v4871_v17  ;;  %v6477_v41 = vor.u32 %v6872_v61, %v6476_v24  ;;  %v4536_v46 = vadd.f32 %v8658_v36, %v4535_v44  ;;  %v6879_v44 = vld [vmem:[#allocation2 + $0x1a4] sm:$0xf]  ;;  %v6510_v61 = vld [vmem:[#allocation2 + $0x1a8] sm:$0xf0] }
 0x5fd   : > { %v3703_v29 = vpop.f32.mrf.mxu3  ;;  %v6513_v31 = vor.u32 %v6879_v44, %v6510_v61 }
 0x5fe   : > { %v3704_v4 = vadd.f32 %v8490_v2, %v3703_v29  ;;  %4574 = vmatmul.bf16.gmra.mxu0 %v6477_v41  ;;  %v4705_v3 = vadd.f32 %v8629_v63, %v4536_v46 }
 0x5ff   : > { %v4992_v20 = vpop.f32.mrf.mxu2 }
 0x600   : > { %v3793_v8 = vmax.f32 %v3704_v4, 0.0  ;;  %v4993_v6 = vadd.f32 %v8572_v60, %v4992_v20  ;;  %v8677_v25 = vpop.f32.mrf.mxu1  ;;  %v4822_v45 = vmax.f32 %v4705_v3, 0.0 }
 0x602   : > { %v3857_v40 = vpack.c.bf16 %v3793_v8, %v3793_v8  ;;  %5138 = vst.msk [vmem:[%s8581_s21 + $0x50] sm:$0xff] %vm5127_vm1, %v4993_v6 }
 0x603   : > { %v4537_v35 = vpop.f32.mrf.mxu0  ;;  %v6484_v38 = vld [vmem:[#allocation2 + $0x170] sm:$0xf] }
 0x604   : > { %3921 = vst [vmem:[#allocation2 + $0x178] sm:$0xf] %v3857_v40  ;;  %v4538_v14 = vadd.f32 %v8658_v36, %v4537_v35 }
 0x605   : > { %v3706_v9 = vpop.f32.mrf.mxu3 }
 0x606   : > { %v4707_v48 = vadd.f32 %v8639_v32, %v4538_v14  ;;  %v3707_v57 = vadd.f32 %v8490_v2, %v3706_v9 }
 0x607   : > { %v4994_v16 = vpop.f32.mrf.mxu2 }
 0x608   : > { %v4823_v21 = vmax.f32 %v4707_v48, 0.0  ;;  %v3794_v27 = vmax.f32 %v3707_v57, 0.0  ;;  %v4995_v22 = vadd.f32 %v8572_v60, %v4994_v16  ;;  %v8684_v53 = vpop.f32.mrf.mxu1 }
 0x609   : > { %4758 = vmatmul.bf16.gmra.mxu1 %v6505_v13 }
 0x60a   : > { %v3858_v42 = vpack.c.bf16 %v3794_v27, %v3794_v27  ;;  %5139 = vst.msk [vmem:[%s8581_s21 + $0x58] sm:$0xff] %vm5127_vm1, %v4995_v22  ;;  %v4872_v63 = vpack.c.bf16 %v4823_v21, %v4822_v45 }
 0x60b   : > { %v4540_v52 = vpop.f32.mrf.mxu0  ;;  %v6874_v18 = vld [vmem:[#allocation2 + $0x174] sm:$0xf0] }
 0x60c   : > { %3922 = vst [vmem:[#allocation2 + $0x180] sm:$0xf] %v3858_v42  ;;  %5036 = vmatmul.bf16.gmra.mxu2 %v4872_v63  ;;  %v6485_v32 = vor.u32 %v6874_v18, %v6484_v38  ;;  %v4541_v62 = vadd.f32 %v8658_v36, %v4540_v52  ;;  %v6881_v52 = vld [vmem:[#allocation2 + $0x1b4] sm:$0xf]  ;;  %v6518_v18 = vld [vmem:[#allocation2 + $0x1b8] sm:$0xf0] }
 0x60d   : > { %v3708_v12 = vpop.f32.mrf.mxu3  ;;  %v6521_v28 = vor.u32 %v6881_v52, %v6518_v18 }
 0x60e   : > { %v3709_v11 = vadd.f32 %v8490_v2, %v3708_v12  ;;  %4579 = vmatmul.bf16.gmra.mxu0 %v6485_v32  ;;  %v4710_v1 = vadd.f32 %v8646_v15, %v4541_v62 }
 0x60f   : > { %v4997_v34 = vpop.f32.mrf.mxu2 }
 0x610   : > { %v3795_v0 = vmax.f32 %v3709_v11, 0.0  ;;  %v4998_v55 = vadd.f32 %v8572_v60, %v4997_v34  ;;  %v8693_v7 = vpop.f32.mrf.mxu1  ;;  %v4824_v59 = vmax.f32 %v4710_v1, 0.0 }
 0x612   : > { %v3859_v39 = vpack.c.bf16 %v3795_v0, %v3795_v0  ;;  %5140 = vst.msk [vmem:[%s8581_s21 + $0x60] sm:$0xff] %vm5127_vm1, %v4998_v55 }
 0x613   : > { %v4542_v5 = vpop.f32.mrf.mxu0  ;;  %v6492_v10 = vld [vmem:[#allocation2 + $0x180] sm:$0xf] }
 0x614   : > { %3923 = vst [vmem:[#allocation2 + $0x188] sm:$0xf] %v3859_v39  ;;  %v4543_v50 = vadd.f32 %v8658_v36, %v4542_v5 }
 0x615   : > { %v3711_v19 = vpop.f32.mrf.mxu3 }
 0x616   : > { %v4712_v33 = vadd.f32 %v8661_v43, %v4543_v50  ;;  %v3712_v56 = vadd.f32 %v8490_v2, %v3711_v19 }
 0x617   : > { %v4999_v47 = vpop.f32.mrf.mxu2 }
 0x618   : > { %v4825_v51 = vmax.f32 %v4712_v33, 0.0  ;;  %v3796_v54 = vmax.f32 %v3712_v56, 0.0  ;;  %v5000_v23 = vadd.f32 %v8572_v60, %v4999_v47  ;;  %v8700_v37 = vpop.f32.mrf.mxu1 }
 0x619   : > { %4763 = vmatmul.bf16.gmra.mxu1 %v6513_v31 }
 0x61a   : > { %v3860_v30 = vpack.c.bf16 %v3796_v54, %v3796_v54  ;;  %5141 = vst.msk [vmem:[%s8581_s21 + $0x68] sm:$0xff] %vm5127_vm1, %v5000_v23  ;;  %v4873_v15 = vpack.c.bf16 %v4825_v51, %v4824_v59 }
 0x61b   : > { %v4545_v17 = vpop.f32.mrf.mxu0  ;;  %v6876_v24 = vld [vmem:[#allocation2 + $0x184] sm:$0xf0] }
 0x61c   : > { %3924 = vst [vmem:[#allocation2 + $0x190] sm:$0xf] %v3860_v30  ;;  %5041 = vmatmul.bf16.gmra.mxu2 %v4873_v15  ;;  %v6493_v43 = vor.u32 %v6876_v24, %v6492_v10  ;;  %v4546_v4 = vadd.f32 %v8658_v36, %v4545_v17  ;;  %v6883_v17 = vld [vmem:[#allocation2 + $0x1c4] sm:$0xf]  ;;  %v6526_v24 = vld [vmem:[#allocation2 + $0x1c8] sm:$0xf0] }
 0x61d   : > { %v3713_v41 = vpop.f32.mrf.mxu3  ;;  %v6529_v44 = vor.u32 %v6883_v17, %v6526_v24 }
 0x61e   : > { %v3714_v58 = vadd.f32 %v8490_v2, %v3713_v41  ;;  %4584 = vmatmul.bf16.gmra.mxu0 %v6493_v43  ;;  %v4715_v40 = vadd.f32 %v8668_v26, %v4546_v4  ;;  %v8737_v43 = vld [vmem:[%s9088_s4 + $0x6] ss:$0 sm:$0xff] }
 0x61f   : > { %v5002_v29 = vpop.f32.mrf.mxu2 }
 0x620   : > { %v3797_v20 = vmax.f32 %v3714_v58, 0.0  ;;  %v5003_v46 = vadd.f32 %v8572_v60, %v5002_v29  ;;  %v8709_v3 = vpop.f32.mrf.mxu1  ;;  %v4826_v16 = vmax.f32 %v4715_v40, 0.0 }
 0x622   : > { %v3861_v8 = vpack.c.bf16 %v3797_v20, %v3797_v20  ;;  %5142 = vst.msk [vmem:[%s8581_s21 + $0x70] sm:$0xff] %vm5127_vm1, %v5003_v46 }
 0x623   : > { %v4547_v6 = vpop.f32.mrf.mxu0  ;;  %v6500_v42 = vld [vmem:[#allocation2 + $0x190] sm:$0xf] }
 0x624   : > { %3925 = vst [vmem:[#allocation2 + $0x198] sm:$0xf] %v3861_v8  ;;  %v4548_v35 = vadd.f32 %v8658_v36, %v4547_v6 }
 0x625   : > { %v3716_v14 = vpop.f32.mrf.mxu3 }
 0x626   : > { %v4717_v9 = vadd.f32 %v8677_v25, %v4548_v35  ;;  %v3717_v48 = vadd.f32 %v8490_v2, %v3716_v14 }
 0x627   : > { %v5004_v57 = vpop.f32.mrf.mxu2 }
 0x628   : > { %v4827_v45 = vmax.f32 %v4717_v9, 0.0  ;;  %v3798_v21 = vmax.f32 %v3717_v48, 0.0  ;;  %v5005_v27 = vadd.f32 %v8572_v60, %v5004_v57  ;;  %v8716_v49 = vpop.f32.mrf.mxu1 }
 0x629   : > { %4768 = vmatmul.bf16.gmra.mxu1 %v6521_v28 }
 0x62a   : > { %v3862_v22 = vpack.c.bf16 %v3798_v21, %v3798_v21  ;;  %5143 = vst.msk [vmem:[%s8581_s21 + $0x78] sm:$0xff] %vm5127_vm1, %v5005_v27  ;;  %v4874_v26 = vpack.c.bf16 %v4827_v45, %v4826_v16 }
 0x62b   : > { %v4550_v63 = vpop.f32.mrf.mxu0  ;;  %v6878_v38 = vld [vmem:[#allocation2 + $0x194] sm:$0xf0] }
 0x62c   : > { %3926 = vst [vmem:[#allocation2 + $0x1a0] sm:$0xf] %v3862_v22  ;;  %5046 = vmatmul.bf16.gmra.mxu2 %v4874_v26  ;;  %v6501_v25 = vor.u32 %v6878_v38, %v6500_v42  ;;  %v4551_v11 = vadd.f32 %v8658_v36, %v4550_v63  ;;  %v6885_v63 = vld [vmem:[#allocation2 + $0x1d4] sm:$0xf]  ;;  %v6534_v38 = vld [vmem:[#allocation2 + $0x1d8] sm:$0xf0] }
 0x62d   : > { %v3718_v32 = vpop.f32.mrf.mxu3  ;;  %v6537_v18 = vor.u32 %v6885_v63, %v6534_v38 }
 0x62e   : > { %v3719_v13 = vadd.f32 %v8490_v2, %v3718_v32  ;;  %4589 = vmatmul.bf16.gmra.mxu0 %v6501_v25  ;;  %v4720_v39 = vadd.f32 %v8684_v53, %v4551_v11 }
 0x62f   : > { %v5007_v12 = vpop.f32.mrf.mxu2 }
 0x630   : > { %v3799_v34 = vmax.f32 %v3719_v13, 0.0  ;;  %v5008_v62 = vadd.f32 %v8572_v60, %v5007_v12  ;;  %v8725_v1 = vpop.f32.mrf.mxu1  ;;  %v4828_v47 = vmax.f32 %v4720_v39, 0.0 }
 0x632   : > { %v3863_v0 = vpack.c.bf16 %v3799_v34, %v3799_v34  ;;  %5144 = vst.msk [vmem:[%s8581_s21 + $0x80] sm:$0xff] %vm5127_vm1, %v5008_v62 }
 0x633   : > { %v4552_v55 = vpop.f32.mrf.mxu0  ;;  %v6508_v30 = vld [vmem:[#allocation2 + $0x1a0] sm:$0xf] }
 0x634   : > { %3927 = vst [vmem:[#allocation2 + $0x1a8] sm:$0xf] %v3863_v0  ;;  %v4553_v5 = vadd.f32 %v8658_v36, %v4552_v55 }
 0x635   : > { %v3721_v50 = vpop.f32.mrf.mxu3 }
 0x636   : > { %v4722_v19 = vadd.f32 %v8693_v7, %v4553_v5  ;;  %v3722_v33 = vadd.f32 %v8490_v2, %v3721_v50 }
 0x637   : > { %v5009_v56 = vpop.f32.mrf.mxu2 }
 0x638   : > { %v4829_v59 = vmax.f32 %v4722_v19, 0.0  ;;  %v3800_v51 = vmax.f32 %v3722_v33, 0.0  ;;  %v5010_v54 = vadd.f32 %v8572_v60, %v5009_v56  ;;  %v8732_v2 = vpop.f32.mrf.mxu1 }
 0x639   : > { %4773 = vmatmul.bf16.gmra.mxu1 %v6529_v44 }
 0x63a   : > { %v3864_v23 = vpack.c.bf16 %v3800_v51, %v3800_v51  ;;  %5145 = vst.msk [vmem:[%s8581_s21 + $0x88] sm:$0xff] %vm5127_vm1, %v5010_v54  ;;  %v4875_v53 = vpack.c.bf16 %v4829_v59, %v4828_v47 }
 0x63b   : > { %v4555_v15 = vpop.f32.mrf.mxu0  ;;  %v6880_v10 = vld [vmem:[#allocation2 + $0x1a4] sm:$0xf0] }
 0x63c   : > { %3928 = vst [vmem:[#allocation2 + $0x1b0] sm:$0xf] %v3864_v23  ;;  %5051 = vmatmul.bf16.gmra.mxu2 %v4875_v53  ;;  %v6509_v7 = vor.u32 %v6880_v10, %v6508_v30  ;;  %v4556_v58 = vadd.f32 %v8658_v36, %v4555_v15  ;;  %v6887_v15 = vld [vmem:[#allocation2 + $0x1e4] sm:$0xf]  ;;  %v6542_v10 = vld [vmem:[#allocation2 + $0x1e8] sm:$0xf0] }
 0x63d   : > { %v3723_v61 = vpop.f32.mrf.mxu3  ;;  %v6545_v24 = vor.u32 %v6887_v15, %v6542_v10 }
 0x63e   : > { %v3724_v31 = vadd.f32 %v8737_v43, %v3723_v61  ;;  %4594 = vmatmul.bf16.gmra.mxu0 %v6509_v7  ;;  %v4725_v8 = vadd.f32 %v8700_v37, %v4556_v58 }
 0x63f   : > { %v5012_v41 = vpop.f32.mrf.mxu2 }
 0x640   : > { %v3801_v29 = vmax.f32 %v3724_v31, 0.0  ;;  %v5013_v4 = vadd.f32 %v8572_v60, %v5012_v41  ;;  %v8746_v40 = vpop.f32.mrf.mxu1  ;;  %v4830_v57 = vmax.f32 %v4725_v8, 0.0 }
 0x642   : > { %v3865_v20 = vpack.c.bf16 %v3801_v29, %v3801_v29  ;;  %5146 = vst.msk [vmem:[%s8581_s21 + $0x90] sm:$0xff] %vm5127_vm1, %v5013_v4 }
 0x643   : > { %v4557_v46 = vpop.f32.mrf.mxu0  ;;  %v6516_v22 = vld [vmem:[#allocation2 + $0x1b0] sm:$0xf] }
 0x644   : > { %3929 = vst [vmem:[#allocation2 + $0x1b8] sm:$0xf] %v3865_v20  ;;  %v4558_v6 = vadd.f32 %v8658_v36, %v4557_v46 }
 0x645   : > { %v3726_v35 = vpop.f32.mrf.mxu3 }
 0x646   : > { %v4727_v14 = vadd.f32 %v8709_v3, %v4558_v6  ;;  %v3727_v9 = vadd.f32 %v8737_v43, %v3726_v35 }
 0x647   : > { %v5014_v48 = vpop.f32.mrf.mxu2 }
 0x648   : > { %v4831_v16 = vmax.f32 %v4727_v14, 0.0  ;;  %v3802_v45 = vmax.f32 %v3727_v9, 0.0  ;;  %v5015_v21 = vadd.f32 %v8572_v60, %v5014_v48  ;;  %v8753_v52 = vpop.f32.mrf.mxu1 }
 0x649   : > { %4778 = vmatmul.bf16.gmra.mxu1 %v6537_v18 }
 0x64a   : > { %v3866_v27 = vpack.c.bf16 %v3802_v45, %v3802_v45  ;;  %5147 = vst.msk [vmem:[%s8581_s21 + $0x98] sm:$0xff] %vm5127_vm1, %v5015_v21  ;;  %v4876_v37 = vpack.c.bf16 %v4831_v16, %v4830_v57 }
 0x64b   : > { %v4560_v26 = vpop.f32.mrf.mxu0  ;;  %v6882_v42 = vld [vmem:[#allocation2 + $0x1b4] sm:$0xf0] }
 0x64c   : > { %3930 = vst [vmem:[#allocation2 + $0x1c0] sm:$0xf] %v3866_v27  ;;  %5056 = vmatmul.bf16.gmra.mxu2 %v4876_v37  ;;  %v6517_v3 = vor.u32 %v6882_v42, %v6516_v22  ;;  %v4561_v13 = vadd.f32 %v8658_v36, %v4560_v26  ;;  %v6889_v27 = vld [vmem:[#allocation2 + $0x1f4] sm:$0xf]  ;;  %v6550_v37 = vld [vmem:[#allocation2 + $0x1f8] sm:$0xf0] }
 0x64d   : > { %v3728_v25 = vpop.f32.mrf.mxu3  ;;  %v6553_v63 = vor.u32 %v6889_v27, %v6550_v37 }
 0x64e   : > { %v3729_v28 = vadd.f32 %v8737_v43, %v3728_v25  ;;  %4599 = vmatmul.bf16.gmra.mxu0 %v6517_v3  ;;  %v4730_v0 = vadd.f32 %v8716_v49, %v4561_v13 }
 0x64f   : > { %v5017_v32 = vpop.f32.mrf.mxu2 }
 0x650   : > { %v3803_v12 = vmax.f32 %v3729_v28, 0.0  ;;  %v5018_v11 = vadd.f32 %v8572_v60, %v5017_v32  ;;  %v8762_v39 = vpop.f32.mrf.mxu1  ;;  %v4832_v56 = vmax.f32 %v4730_v0, 0.0 }
 0x652   : > { %v3867_v34 = vpack.c.bf16 %v3803_v12, %v3803_v12  ;;  %5148 = vst.msk [vmem:[%s8581_s21 + $0xa0] sm:$0xff] %vm5127_vm1, %v5018_v11 }
 0x653   : > { %v4562_v62 = vpop.f32.mrf.mxu0  ;;  %v6524_v23 = vld [vmem:[#allocation2 + $0x1c0] sm:$0xf] }
 0x654   : > { %3931 = vst [vmem:[#allocation2 + $0x1c8] sm:$0xf] %v3867_v34  ;;  %v4563_v55 = vadd.f32 %v8658_v36, %v4562_v62 }
 0x655   : > { %v3731_v5 = vpop.f32.mrf.mxu3 }
 0x656   : > { %v4732_v50 = vadd.f32 %v8725_v1, %v4563_v55  ;;  %v3732_v19 = vadd.f32 %v8737_v43, %v3731_v5 }
 0x657   : > { %v5019_v33 = vpop.f32.mrf.mxu2 }
 0x658   : > { %v4833_v47 = vmax.f32 %v4732_v50, 0.0  ;;  %v3804_v59 = vmax.f32 %v3732_v19, 0.0  ;;  %v5020_v51 = vadd.f32 %v8572_v60, %v5019_v33  ;;  %v8769_v17 = vpop.f32.mrf.mxu1 }
 0x659   : > { %4783 = vmatmul.bf16.gmra.mxu1 %v6545_v24 }
 0x65a   : > { %v3868_v54 = vpack.c.bf16 %v3804_v59, %v3804_v59  ;;  %5149 = vst.msk [vmem:[%s8581_s21 + $0xa8] sm:$0xff] %vm5127_vm1, %v5020_v51  ;;  %v4877_v49 = vpack.c.bf16 %v4833_v47, %v4832_v56 }
 0x65b   : > { %v4565_v53 = vpop.f32.mrf.mxu0  ;;  %v6884_v30 = vld [vmem:[#allocation2 + $0x1c4] sm:$0xf0] }
 0x65c   : > { %3932 = vst [vmem:[#allocation2 + $0x1d0] sm:$0xf] %v3868_v54  ;;  %5061 = vmatmul.bf16.gmra.mxu2 %v4877_v49  ;;  %v6525_v1 = vor.u32 %v6884_v30, %v6524_v23  ;;  %v4566_v31 = vadd.f32 %v8658_v36, %v4565_v53 }
 0x65d   : > { %v3733_v7 = vpop.f32.mrf.mxu3 }
 0x65e   : > { %v3734_v44 = vadd.f32 %v8737_v43, %v3733_v7  ;;  %4604 = vmatmul.bf16.gmra.mxu0 %v6525_v1  ;;  %v4735_v20 = vadd.f32 %v8732_v2, %v4566_v31 }
 0x65f   : > { %v5022_v61 = vpop.f32.mrf.mxu2 }
 0x660   : > { %v3805_v41 = vmax.f32 %v3734_v44, 0.0  ;;  %v5023_v58 = vadd.f32 %v8572_v60, %v5022_v61  ;;  %v8778_v8 = vpop.f32.mrf.mxu1  ;;  %v4834_v48 = vmax.f32 %v4735_v20, 0.0 }
 0x662   : > { %v3869_v29 = vpack.c.bf16 %v3805_v41, %v3805_v41  ;;  %5150 = vst.msk [vmem:[%s8581_s21 + $0xb0] sm:$0xff] %vm5127_vm1, %v5023_v58 }
 0x663   : > { %v4567_v4 = vpop.f32.mrf.mxu0  ;;  %v6532_v26 = vld [vmem:[#allocation2 + $0x1d0] sm:$0xf] }
 0x664   : > { %3933 = vst [vmem:[#allocation2 + $0x1d8] sm:$0xf] %v3869_v29  ;;  %v4568_v46 = vadd.f32 %v8658_v36, %v4567_v4 }
 0x665   : > { %v3736_v6 = vpop.f32.mrf.mxu3 }
 0x666   : > { %v4737_v35 = vadd.f32 %v8746_v40, %v4568_v46  ;;  %v3737_v14 = vadd.f32 %v8737_v43, %v3736_v6 }
 0x667   : > { %v5024_v9 = vpop.f32.mrf.mxu2 }
 0x668   : > { %v4835_v57 = vmax.f32 %v4737_v35, 0.0  ;;  %v3806_v16 = vmax.f32 %v3737_v14, 0.0  ;;  %v5025_v45 = vadd.f32 %v8572_v60, %v5024_v9  ;;  %v8785_v38 = vpop.f32.mrf.mxu1 }
 0x669   : > { %4788 = vmatmul.bf16.gmra.mxu1 %v6553_v63 }
 0x66a   : > { %v3870_v21 = vpack.c.bf16 %v3806_v16, %v3806_v16  ;;  %5151 = vst.msk [vmem:[%s8581_s21 + $0xb8] sm:$0xff] %vm5127_vm1, %v5025_v45  ;;  %v4878_v2 = vpack.c.bf16 %v4835_v57, %v4834_v48 }
 0x66b   : > { %v4570_v22 = vpop.f32.mrf.mxu0  ;;  %v6886_v42 = vld [vmem:[#allocation2 + $0x1d4] sm:$0xf0] }
 0x66c   : > { %3934 = vst [vmem:[#allocation2 + $0x1e0] sm:$0xf] %v3870_v21  ;;  %5066 = vmatmul.bf16.gmra.mxu2 %v4878_v2  ;;  %v6533_v40 = vor.u32 %v6886_v42, %v6532_v26  ;;  %v4571_v28 = vadd.f32 %v8658_v36, %v4570_v22  ;;  %v8819_v42 = vld [vmem:[%s9089_s5] ss:$0 sm:$0xff] }
 0x66d   : > { %v3738_v3 = vpop.f32.mrf.mxu3 }
 0x66e   : > { %v3739_v18 = vadd.f32 %v8737_v43, %v3738_v3  ;;  %4609 = vmatmul.bf16.gmra.mxu0 %v6533_v40  ;;  %v4740_v34 = vadd.f32 %v8753_v52, %v4571_v28 }
 0x66f   : > { %v5027_v25 = vpop.f32.mrf.mxu2 }
 0x670   : > { %v3807_v32 = vmax.f32 %v3739_v18, 0.0  ;;  %v5028_v13 = vadd.f32 %v8572_v60, %v5027_v25  ;;  %v4751_v55 = vpop.f32.mrf.mxu1  ;;  %v4836_v33 = vmax.f32 %v4740_v34, 0.0 }
 0x672   : > { %v3871_v12 = vpack.c.bf16 %v3807_v32, %v3807_v32  ;;  %5152 = vst.msk [vmem:[%s8581_s21 + $0xc0] sm:$0xff] %vm5127_vm1, %v5028_v13 }
 0x673   : > { %v4572_v11 = vpop.f32.mrf.mxu0  ;;  %v6540_v49 = vld [vmem:[#allocation2 + $0x1e0] sm:$0xf] }
 0x674   : > { %3935 = vst [vmem:[#allocation2 + $0x1e8] sm:$0xf] %v3871_v12  ;;  %v4573_v62 = vadd.f32 %v8658_v36, %v4572_v11 }
 0x675   : > { %v3741_v0 = vpop.f32.mrf.mxu3 }
 0x676   : > { %v4742_v5 = vadd.f32 %v8762_v39, %v4573_v62  ;;  %v3742_v50 = vadd.f32 %v8737_v43, %v3741_v0 }
 0x677   : > { %v5029_v19 = vpop.f32.mrf.mxu2 }
 0x678   : > { %v4837_v56 = vmax.f32 %v4742_v5, 0.0  ;;  %v3808_v47 = vmax.f32 %v3742_v50, 0.0  ;;  %v5030_v59 = vadd.f32 %v8572_v60, %v5029_v19  ;;  %v4754_v10 = vpop.f32.mrf.mxu1 }
 0x67a   : > { %v3872_v51 = vpack.c.bf16 %v3808_v47, %v3808_v47  ;;  %5153 = vst.msk [vmem:[%s8581_s21 + $0xc8] sm:$0xff] %vm5127_vm1, %v5030_v59  ;;  %v4879_v54 = vpack.c.bf16 %v4837_v56, %v4836_v33 }
 0x67b   : > { %v4575_v52 = vpop.f32.mrf.mxu0  ;;  %v6888_v23 = vld [vmem:[#allocation2 + $0x1e4] sm:$0xf0] }
 0x67c   : > { %3936 = vst [vmem:[#allocation2 + $0x1f0] sm:$0xf] %v3872_v51  ;;  %5071 = vmatmul.bf16.gmra.mxu2 %v4879_v54  ;;  %v6541_v53 = vor.u32 %v6888_v23, %v6540_v49  ;;  %v4576_v1 = vadd.f32 %v8658_v36, %v4575_v52 }
 0x67d   : > { %v3743_v39 = vpop.f32.mrf.mxu3 }
 0x67e   : > { %v3744_v30 = vadd.f32 %v8737_v43, %v3743_v39  ;;  %4614 = vmatmul.bf16.gmra.mxu0 %v6541_v53  ;;  %v4745_v31 = vadd.f32 %v8769_v17, %v4576_v1 }
 0x67f   : > { %v5032_v15 = vpop.f32.mrf.mxu2 }
 0x680   : > { %v3809_v24 = vmax.f32 %v3744_v30, 0.0  ;;  %v5033_v7 = vadd.f32 %v8572_v60, %v5032_v15  ;;  %v4838_v29 = vmax.f32 %v4745_v31, 0.0  ;;  %v4756_v46 = vpop.f32.mrf.mxu1 }
 0x682   : > { %v3873_v44 = vpack.c.bf16 %v3809_v24, %v3809_v24  ;;  %5154 = vst.msk [vmem:[%s8581_s21 + $0xd0] sm:$0xff] %vm5127_vm1, %v5033_v7 }
 0x683   : > { %v4577_v61 = vpop.f32.mrf.mxu0  ;;  %v6548_v14 = vld [vmem:[#allocation2 + $0x1f0] sm:$0xf] }
 0x684   : > { %3937 = vst [vmem:[#allocation2 + $0x1f8] sm:$0xf] %v3873_v44  ;;  %v4578_v41 = vadd.f32 %v8658_v36, %v4577_v61 }
 0x686   : > { %v4747_v43 = vadd.f32 %v8778_v8, %v4578_v41 }
 0x687   : > { %v5034_v58 = vpop.f32.mrf.mxu2 }
 0x688   : > { %v4839_v4 = vmax.f32 %v4747_v43, 0.0  ;;  %v5035_v20 = vadd.f32 %v8572_v60, %v5034_v58  ;;  %v4759_v45 = vpop.f32.mrf.mxu1 }
 0x68a   : > { %5155 = vst.msk [vmem:[%s8581_s21 + $0xd8] sm:$0xff] %vm5127_vm1, %v5035_v20  ;;  %v4880_v6 = vpack.c.bf16 %v4839_v4, %v4838_v29 }
 0x68b   : > { %v4580_v35 = vpop.f32.mrf.mxu0  ;;  %v6890_v9 = vld [vmem:[#allocation2 + $0x1f4] sm:$0xf0] }
 0x68c   : > { %5076 = vmatmul.bf16.gmra.mxu2 %v4880_v6  ;;  %v6549_v17 = vor.u32 %v6890_v9, %v6548_v14  ;;  %v4581_v8 = vadd.f32 %v8658_v36, %v4580_v35 }
 0x68e   : > { %4619 = vmatmul.bf16.gmra.mxu0 %v6549_v17  ;;  %v4750_v21 = vadd.f32 %v8785_v38, %v4581_v8 }
 0x68f   : > { %v5037_v48 = vpop.f32.mrf.mxu2 }
 0x690   : > { %v5038_v57 = vadd.f32 %v8572_v60, %v5037_v48  ;;  %v4840_v22 = vmax.f32 %v4750_v21, 0.0  ;;  %v4761_v38 = vpop.f32.mrf.mxu1 }
 0x692   : > { %5156 = vst.msk [vmem:[%s8581_s21 + $0xe0] sm:$0xff] %vm5127_vm1, %v5038_v57 }
 0x693   : > { %v4582_v16 = vpop.f32.mrf.mxu0 }
 0x694   : > { %v4583_v2 = vadd.f32 %v8658_v36, %v4582_v16 }
 0x696   : > { %v4752_v27 = vadd.f32 %v4751_v55, %v4583_v2 }
 0x697   : > { %v5039_v37 = vpop.f32.mrf.mxu2 }
 0x698   : > { %v4841_v26 = vmax.f32 %v4752_v27, 0.0  ;;  %v5040_v60 = vadd.f32 %v8819_v42, %v5039_v37  ;;  %v4764_v34 = vpop.f32.mrf.mxu1 }
 0x69a   : > { %5157 = vst.msk [vmem:[%s8581_s21 + $0xe8] sm:$0xff] %vm5127_vm1, %v5040_v60  ;;  %v4881_v63 = vpack.c.bf16 %v4841_v26, %v4840_v22 }
 0x69b   : > { %v4585_v40 = vpop.f32.mrf.mxu0 }
 0x69c   : > { %5081 = vmatmul.bf16.gmra.mxu2 %v4881_v63  ;;  %v4586_v18 = vadd.f32 %v8658_v36, %v4585_v40 }
 0x69e   : > { %v4755_v32 = vadd.f32 %v4754_v10, %v4586_v18 }
 0x69f   : > { %v5042_v3 = vpop.f32.mrf.mxu2 }
 0x6a0   : > { %v5043_v25 = vadd.f32 %v8819_v42, %v5042_v3  ;;  %v4842_v62 = vmax.f32 %v4755_v32, 0.0  ;;  %v4766_v47 = vpop.f32.mrf.mxu1 }
 0x6a2   : > { %5158 = vst.msk [vmem:[%s8581_s21 + $0xf0] sm:$0xff] %vm5127_vm1, %v5043_v25 }
 0x6a3   : > { %v4587_v28 = vpop.f32.mrf.mxu0 }
 0x6a4   : > { %v4588_v13 = vadd.f32 %v8658_v36, %v4587_v28 }
 0x6a6   : > { %v4757_v12 = vadd.f32 %v4756_v46, %v4588_v13 }
 0x6a7   : > { %v5044_v11 = vpop.f32.mrf.mxu2 }
 0x6a8   : > { %v4843_v0 = vmax.f32 %v4757_v12, 0.0  ;;  %v5045_v55 = vadd.f32 %v8819_v42, %v5044_v11  ;;  %v4769_v10 = vpop.f32.mrf.mxu1 }
 0x6aa   : > { %5159 = vst.msk [vmem:[%s8581_s21 + $0xf8] sm:$0xff] %vm5127_vm1, %v5045_v55  ;;  %v4882_v5 = vpack.c.bf16 %v4843_v0, %v4842_v62 }
 0x6ab   : > { %v4590_v50 = vpop.f32.mrf.mxu0 }
 0x6ac   : > { %5086 = vmatmul.bf16.gmra.mxu2 %v4882_v5  ;;  %v4591_v33 = vadd.f32 %v8658_v36, %v4590_v50 }
 0x6ae   : > { %v4760_v51 = vadd.f32 %v4759_v45, %v4591_v33 }
 0x6af   : > { %v5047_v19 = vpop.f32.mrf.mxu2 }
 0x6b0   : > { %v5048_v56 = vadd.f32 %v8819_v42, %v5047_v19  ;;  %v4844_v23 = vmax.f32 %v4760_v51, 0.0  ;;  %v4771_v41 = vpop.f32.mrf.mxu1 }
 0x6b2   : > { %5160 = vst.msk [vmem:[%s8581_s21 + $0x100] sm:$0xff] %vm5127_vm1, %v5048_v56 }
 0x6b3   : > { %v4592_v59 = vpop.f32.mrf.mxu0 }
 0x6b4   : > { %v4593_v54 = vadd.f32 %v8658_v36, %v4592_v59 }
 0x6b6   : > { %v4762_v52 = vadd.f32 %v4761_v38, %v4593_v54 }
 0x6b7   : > { %v5049_v49 = vpop.f32.mrf.mxu2 }
 0x6b8   : > { %v4845_v53 = vmax.f32 %v4762_v52, 0.0  ;;  %v5050_v39 = vadd.f32 %v8819_v42, %v5049_v49  ;;  %v4774_v14 = vpop.f32.mrf.mxu1 }
 0x6ba   : > { %5161 = vst.msk [vmem:[%s8581_s21 + $0x108] sm:$0xff] %vm5127_vm1, %v5050_v39  ;;  %v4883_v30 = vpack.c.bf16 %v4845_v53, %v4844_v23 }
 0x6bb   : > { %v4595_v15 = vpop.f32.mrf.mxu0 }
 0x6bc   : > { %5091 = vmatmul.bf16.gmra.mxu2 %v4883_v30  ;;  %v4596_v24 = vadd.f32 %v8658_v36, %v4595_v15 }
 0x6be   : > { %v4765_v61 = vadd.f32 %v4764_v34, %v4596_v24 }
 0x6bf   : > { %v5052_v1 = vpop.f32.mrf.mxu2 }
 0x6c0   : > { %v5053_v7 = vadd.f32 %v8819_v42, %v5052_v1  ;;  %v4846_v29 = vmax.f32 %v4765_v61, 0.0  ;;  %v4776_v37 = vpop.f32.mrf.mxu1 }
 0x6c2   : > { %5162 = vst.msk [vmem:[%s8581_s21 + $0x110] sm:$0xff] %vm5127_vm1, %v5053_v7 }
 0x6c3   : > { %v4597_v44 = vpop.f32.mrf.mxu0 }
 0x6c4   : > { %v4598_v31 = vadd.f32 %v8658_v36, %v4597_v44 }
 0x6c6   : > { %v4767_v43 = vadd.f32 %v4766_v47, %v4598_v31 }
 0x6c7   : > { %v5054_v58 = vpop.f32.mrf.mxu2 }
 0x6c8   : > { %v4847_v4 = vmax.f32 %v4767_v43, 0.0  ;;  %v5055_v20 = vadd.f32 %v8819_v42, %v5054_v58  ;;  %v4779_v3 = vpop.f32.mrf.mxu1 }
 0x6ca   : > { %5163 = vst.msk [vmem:[%s8581_s21 + $0x118] sm:$0xff] %vm5127_vm1, %v5055_v20  ;;  %v4884_v46 = vpack.c.bf16 %v4847_v4, %v4846_v29 }
 0x6cb   : > { %v4600_v6 = vpop.f32.mrf.mxu0 }
 0x6cc   : > { %5096 = vmatmul.bf16.gmra.mxu2 %v4884_v46  ;;  %v4601_v9 = vadd.f32 %v8658_v36, %v4600_v6 }
 0x6ce   : > { %v4770_v8 = vadd.f32 %v4769_v10, %v4601_v9 }
 0x6cf   : > { %v5057_v35 = vpop.f32.mrf.mxu2 }
 0x6d0   : > { %v5058_v17 = vadd.f32 %v8819_v42, %v5057_v35  ;;  %v4848_v21 = vmax.f32 %v4770_v8, 0.0  ;;  %v4781_v0 = vpop.f32.mrf.mxu1 }
 0x6d2   : > { %5164 = vst.msk [vmem:[%s8581_s21 + $0x120] sm:$0xff] %vm5127_vm1, %v5058_v17 }
 0x6d3   : > { %v4602_v48 = vpop.f32.mrf.mxu0 }
 0x6d4   : > { %v4603_v57 = vadd.f32 %v8658_v36, %v4602_v48 }
 0x6d6   : > { %v4772_v16 = vadd.f32 %v4771_v41, %v4603_v57 }
 0x6d7   : > { %v5059_v45 = vpop.f32.mrf.mxu2 }
 0x6d8   : > { %v4849_v2 = vmax.f32 %v4772_v16, 0.0  ;;  %v5060_v27 = vadd.f32 %v8819_v42, %v5059_v45  ;;  %v4784_v59 = vpop.f32.mrf.mxu1 }
 0x6da   : > { %5165 = vst.msk [vmem:[%s8581_s21 + $0x128] sm:$0xff] %vm5127_vm1, %v5060_v27  ;;  %v4885_v22 = vpack.c.bf16 %v4849_v2, %v4848_v21 }
 0x6db   : > { %v4605_v26 = vpop.f32.mrf.mxu0 }
 0x6dc   : > { %5101 = vmatmul.bf16.gmra.mxu2 %v4885_v22  ;;  %v4606_v63 = vadd.f32 %v8658_v36, %v4605_v26 }
 0x6de   : > { %v4775_v18 = vadd.f32 %v4774_v14, %v4606_v63 }
 0x6df   : > { %v5062_v60 = vpop.f32.mrf.mxu2 }
 0x6e0   : > { %v5063_v40 = vadd.f32 %v8819_v42, %v5062_v60  ;;  %v4850_v13 = vmax.f32 %v4775_v18, 0.0  ;;  %v4786_v10 = vpop.f32.mrf.mxu1 }
 0x6e2   : > { %5166 = vst.msk [vmem:[%s8581_s21 + $0x130] sm:$0xff] %vm5127_vm1, %v5063_v40 }
 0x6e3   : > { %v4607_v38 = vpop.f32.mrf.mxu0 }
 0x6e4   : > { %v4608_v25 = vadd.f32 %v8658_v36, %v4607_v38 }
 0x6e6   : > { %v4777_v28 = vadd.f32 %v4776_v37, %v4608_v25 }
 0x6e7   : > { %v5064_v32 = vpop.f32.mrf.mxu2 }
 0x6e8   : > { %v4851_v12 = vmax.f32 %v4777_v28, 0.0  ;;  %v5065_v11 = vadd.f32 %v8819_v42, %v5064_v32  ;;  %v4789_v29 = vpop.f32.mrf.mxu1 }
 0x6ea   : > { %5167 = vst.msk [vmem:[%s8581_s21 + $0x138] sm:$0xff] %vm5127_vm1, %v5065_v11  ;;  %v4886_v34 = vpack.c.bf16 %v4851_v12, %v4850_v13 }
 0x6eb   : > { %v4610_v62 = vpop.f32.mrf.mxu0 }
 0x6ec   : > { %5106 = vmatmul.bf16.gmra.mxu2 %v4886_v34  ;;  %v4611_v5 = vadd.f32 %v8658_v36, %v4610_v62 }
 0x6ee   : > { %v4780_v33 = vadd.f32 %v4779_v3, %v4611_v5 }
 0x6ef   : > { %v5067_v55 = vpop.f32.mrf.mxu2 }
 0x6f0   : > { %v5068_v50 = vadd.f32 %v8819_v42, %v5067_v55  ;;  %v4852_v54 = vmax.f32 %v4780_v33, 0.0  ;;  %v4791_v17 = vpop.f32.mrf.mxu1 }
 0x6f2   : > { %5168 = vst.msk [vmem:[%s8581_s21 + $0x140] sm:$0xff] %vm5127_vm1, %v5068_v50 }
 0x6f3   : > { %v4612_v19 = vpop.f32.mrf.mxu0 }
 0x6f4   : > { %v4613_v56 = vadd.f32 %v8658_v36, %v4612_v19 }
 0x6f6   : > { %v4782_v47 = vadd.f32 %v4781_v0, %v4613_v56 }
 0x6f7   : > { %v5069_v51 = vpop.f32.mrf.mxu2 }
 0x6f8   : > { %v4853_v52 = vmax.f32 %v4782_v47, 0.0  ;;  %v5070_v49 = vadd.f32 %v8819_v42, %v5069_v51 }
 0x6fa   : > { %5169 = vst.msk [vmem:[%s8581_s21 + $0x148] sm:$0xff] %vm5127_vm1, %v5070_v49  ;;  %v4887_v23 = vpack.c.bf16 %v4853_v52, %v4852_v54 }
 0x6fb   : > { %v4615_v53 = vpop.f32.mrf.mxu0 }
 0x6fc   : > { %5111 = vmatmul.bf16.gmra.mxu2 %v4887_v23  ;;  %v4616_v30 = vadd.f32 %v8658_v36, %v4615_v53 }
 0x6fe   : > { %v4785_v24 = vadd.f32 %v4784_v59, %v4616_v30 }
 0x6ff   : > { %v5072_v39 = vpop.f32.mrf.mxu2 }
 0x700   : > { %v5073_v15 = vadd.f32 %v8819_v42, %v5072_v39  ;;  %v4854_v31 = vmax.f32 %v4785_v24, 0.0 }
 0x702   : > { %5170 = vst.msk [vmem:[%s8581_s21 + $0x150] sm:$0xff] %vm5127_vm1, %v5073_v15 }
 0x703   : > { %v4617_v1 = vpop.f32.mrf.mxu0 }
 0x704   : > { %v4618_v7 = vadd.f32 %v8658_v36, %v4617_v1 }
 0x706   : > { %v4787_v44 = vadd.f32 %v4786_v10, %v4618_v7 }
 0x707   : > { %v5074_v61 = vpop.f32.mrf.mxu2 }
 0x708   : > { %v4855_v41 = vmax.f32 %v4787_v44, 0.0  ;;  %v5075_v43 = vadd.f32 %v8819_v42, %v5074_v61 }
 0x70a   : > { %5171 = vst.msk [vmem:[%s8581_s21 + $0x158] sm:$0xff] %vm5127_vm1, %v5075_v43  ;;  %v4888_v58 = vpack.c.bf16 %v4855_v41, %v4854_v31 }
 0x70b   : > { %v4620_v4 = vpop.f32.mrf.mxu0 }
 0x70c   : > { %5116 = vmatmul.bf16.gmra.mxu2 %v4888_v58  ;;  %v4621_v46 = vadd.f32 %v8658_v36, %v4620_v4 }
 0x70e   : > { %v4790_v14 = vadd.f32 %v4789_v29, %v4621_v46 }
 0x70f   : > { %v5077_v20 = vpop.f32.mrf.mxu2 }
 0x710   : > { %v5078_v6 = vadd.f32 %v8819_v42, %v5077_v20  ;;  %v4856_v57 = vmax.f32 %v4790_v14, 0.0 }
 0x712   : > { %5172 = vst.msk [vmem:[%s8581_s21 + $0x160] sm:$0xff] %vm5127_vm1, %v5078_v6 }
 0x713   : > { %v4622_v35 = vpop.f32.mrf.mxu0 }
 0x714   : > { %v4623_v9 = vadd.f32 %v8658_v36, %v4622_v35 }
 0x716   : > { %v4792_v48 = vadd.f32 %v4791_v17, %v4623_v9 }
 0x717   : > { %v5079_v8 = vpop.f32.mrf.mxu2 }
 0x718   : > { %v4857_v16 = vmax.f32 %v4792_v48, 0.0  ;;  %v5080_v45 = vadd.f32 %v8819_v42, %v5079_v8 }
 0x71a   : > { %5173 = vst.msk [vmem:[%s8581_s21 + $0x168] sm:$0xff] %vm5127_vm1, %v5080_v45  ;;  %v4889_v21 = vpack.c.bf16 %v4857_v16, %v4856_v57 }
 0x71c   : > { %5121 = vmatmul.bf16.gmra.mxu2 %v4889_v21 }
 0x71f   : > { %v5082_v2 = vpop.f32.mrf.mxu2 }
 0x720   : > { %v5083_v27 = vadd.f32 %v8819_v42, %v5082_v2 }
 0x722   : > { %5174 = vst.msk [vmem:[%s8581_s21 + $0x170] sm:$0xff] %vm5127_vm1, %v5083_v27 }
 0x727   : > { %v5084_v36 = vpop.f32.mrf.mxu2 }
 0x728   : > { %v5085_v37 = vadd.f32 %v8819_v42, %v5084_v36 }
 0x72a   : > { %5175 = vst.msk [vmem:[%s8581_s21 + $0x178] sm:$0xff] %vm5127_vm1, %v5085_v37 }
 0x72f   : > { %v5087_v22 = vpop.f32.mrf.mxu2 }
 0x730   : > { %v5088_v26 = vadd.f32 %v8819_v42, %v5087_v22 }
 0x732   : > { %5176 = vst.msk [vmem:[%s8581_s21 + $0x180] sm:$0xff] %vm5127_vm1, %v5088_v26 }
 0x737   : > { %v5089_v60 = vpop.f32.mrf.mxu2 }
 0x738   : > { %v5090_v63 = vadd.f32 %v8819_v42, %v5089_v60 }
 0x73a   : > { %5177 = vst.msk [vmem:[%s8581_s21 + $0x188] sm:$0xff] %vm5127_vm1, %v5090_v63 }
 0x73f   : > { %v5092_v40 = vpop.f32.mrf.mxu2 }
 0x740   : > { %v5093_v38 = vadd.f32 %v8819_v42, %v5092_v40 }
 0x742   : > { %5178 = vst.msk [vmem:[%s8581_s21 + $0x190] sm:$0xff] %vm5127_vm1, %v5093_v38 }
 0x747   : > { %v5094_v3 = vpop.f32.mrf.mxu2 }
 0x748   : > { %v5095_v18 = vadd.f32 %v8819_v42, %v5094_v3 }
 0x74a   : > { %5179 = vst.msk [vmem:[%s8581_s21 + $0x198] sm:$0xff] %vm5127_vm1, %v5095_v18 }
 0x74f   : > { %v5097_v25 = vpop.f32.mrf.mxu2 }
 0x750   : > { %v5098_v28 = vadd.f32 %v8819_v42, %v5097_v25 }
 0x752   : > { %5180 = vst.msk [vmem:[%s8581_s21 + $0x1a0] sm:$0xff] %vm5127_vm1, %v5098_v28 }
 0x757   : > { %v5099_v32 = vpop.f32.mrf.mxu2 }
 0x758   : > { %v5100_v13 = vadd.f32 %v8819_v42, %v5099_v32 }
 0x75a   : > { %5181 = vst.msk [vmem:[%s8581_s21 + $0x1a8] sm:$0xff] %vm5127_vm1, %v5100_v13 }
 0x75f   : > { %v5102_v12 = vpop.f32.mrf.mxu2 }
 0x760   : > { %v5103_v11 = vadd.f32 %v8819_v42, %v5102_v12 }
 0x762   : > { %5182 = vst.msk [vmem:[%s8581_s21 + $0x1b0] sm:$0xff] %vm5127_vm1, %v5103_v11 }
 0x767   : > { %v5104_v34 = vpop.f32.mrf.mxu2 }
 0x768   : > { %v5105_v62 = vadd.f32 %v8819_v42, %v5104_v34 }
 0x76a   : > { %5183 = vst.msk [vmem:[%s8581_s21 + $0x1b8] sm:$0xff] %vm5127_vm1, %v5105_v62 }
 0x76f   : > { %v5107_v0 = vpop.f32.mrf.mxu2 }
 0x770   : > { %v5108_v55 = vadd.f32 %v8819_v42, %v5107_v0 }
 0x772   : > { %5184 = vst.msk [vmem:[%s8581_s21 + $0x1c0] sm:$0xff] %vm5127_vm1, %v5108_v55 }
 0x777   : > { %v5109_v5 = vpop.f32.mrf.mxu2 }
 0x778   : > { %v5110_v50 = vadd.f32 %v8819_v42, %v5109_v5 }
 0x77a   : > { %5185 = vst.msk [vmem:[%s8581_s21 + $0x1c8] sm:$0xff] %vm5127_vm1, %v5110_v50 }
 0x77f   : > { %v5112_v19 = vpop.f32.mrf.mxu2 }
 0x780   : > { %v5113_v33 = vadd.f32 %v8819_v42, %v5112_v19 }
 0x782   : > { %5186 = vst.msk [vmem:[%s8581_s21 + $0x1d0] sm:$0xff] %vm5127_vm1, %v5113_v33 }
 0x787   : > { %v5114_v56 = vpop.f32.mrf.mxu2 }
 0x788   : > { %v5115_v47 = vadd.f32 %v8819_v42, %v5114_v56 }
 0x78a   : > { %5187 = vst.msk [vmem:[%s8581_s21 + $0x1d8] sm:$0xff] %vm5127_vm1, %v5115_v47 }
 0x78f   : > { %v5117_v59 = vpop.f32.mrf.mxu2 }
 0x790   : > { %v5118_v51 = vadd.f32 %v8819_v42, %v5117_v59 }
 0x792   : > { %5188 = vst.msk [vmem:[%s8581_s21 + $0x1e0] sm:$0xff] %vm5127_vm1, %v5118_v51 }
 0x797   : > { %v5119_v54 = vpop.f32.mrf.mxu2 }
 0x798   : > { %v5120_v52 = vadd.f32 %v8819_v42, %v5119_v54 }
 0x79a   : > { %5189 = vst.msk [vmem:[%s8581_s21 + $0x1e8] sm:$0xff] %vm5127_vm1, %v5120_v52 }
 0x79f   : > { %v5122_v49 = vpop.f32.mrf.mxu2 }
 0x7a0   : > { %v5123_v23 = vadd.f32 %v8819_v42, %v5122_v49 }
 0x7a2   : > { %5190 = vst.msk [vmem:[%s8581_s21 + $0x1f0] sm:$0xff] %vm5127_vm1, %v5123_v23 }
 0x7a6   : > { %5198 = sbr.rel (!%p7202_p4) target bundleno = 2027 (0x7eb), region = 48 }
 0x7a7   : > { %v5124_v53 = vpop.f32.mrf.mxu2 }
 0x7a8   : > { %v5125_v39 = vadd.f32 %v8819_v42, %v5124_v53 }
 0x7aa   : > { %5191 = vst.msk [vmem:[%s8581_s21 + $0x1f8] sm:$0xff] %vm5127_vm1, %v5125_v39 }
 0x7ab   : > { %s9101_s16 = smov (!%p5201_p8, %s5200_s16), 64 }
 0x7ac   : > { %s6652_s26 = sshll.u32 %s9101_s16, 3 }
 0x7ad   : > { %p6655_p9 = scmp.eq.s32.totalorder %s6652_s26, 0 }
 0x7ae   : > { %s8955_s27 = sshrl.u32 (!%p6655_p9), %s9101_s16, 5 }
 0x7af   : > { %5209 = sbr.rel (%p6655_p9) target bundleno = 2027 (0x7eb), region = 52  ;;  %p6656_p10 = scmp.le.s32.totalorder (!%p6655_p9), %s8955_s27, 0 }
 0x7b4   : > { %5488 = sbr.rel (%p6656_p10) target bundleno = 2010 (0x7da), region = 141  ;;  %s9092_s24 = smov (!%p6656_p10), %s8949_s23 }
 0x7b5   : > { %s9093_s29 = smov (!%p6656_p10), %s8581_s21  ;;  %s8964_s8 = smov (!%p6656_p10), 0  }
 0x7b6   : > { %s8966_s30 = smov (!%p6656_p10), 0  }
 0x7b9 LB: >> { %v5334_v42 = vld [vmem:[%s7115_s29] sm:$0xff]  ;;  %v5336_v30 = vld [vmem:[%s7115_s29 + $0x8] sm:$0xff]  ;;  %v5338_v15 = vld [vmem:[%s7115_s29 + $0x10] sm:$0xff]  ;;  %s5398_s7 = sadd.s32 1, %s7119_s8  ;;  %s5328_s30 = sadd.s32 1, %s7123_s30   ;;  %s7123_s30 = sphi %s8966_s30, %s5328_s30   ;;  %s7119_s8 = sphi %s8964_s8, %s9096_s8   ;;  %s7115_s29 = sphi %s9093_s29, %s9095_s29   ;;  %s7111_s24 = sphi %s9092_s24, %s9094_s24  }
 0x7ba   : >> { %5335 = vst [vmem:[%s7111_s24] sm:$0xff] %v5334_v42  ;;  %v5340_v10 = vld [vmem:[%s7115_s29 + $0x18] sm:$0xff]  ;;  %p5399_p11 = scmp.ge.s32.totalorder %s5398_s7, %s8955_s27  ;;  %v5342_v1 = vld [vmem:[%s7115_s29 + $0x20] sm:$0xff]  ;;  %v5344_v24 = vld [vmem:[%s7115_s29 + $0x28] sm:$0xff]  ;;  %p5327_p12 = scmp.ge.s32.totalorder %s5328_s30, %s8955_s27 }
 0x7bb   : >> { %5337 = vst [vmem:[%s7111_s24 + $0x8] sm:$0xff] %v5336_v30  ;;  %v5346_v7 = vld [vmem:[%s7115_s29 + $0x30] sm:$0xff]  ;;  %v5348_v44 = vld [vmem:[%s7115_s29 + $0x38] sm:$0xff]  ;;  %v5350_v61 = vld [vmem:[%s7115_s29 + $0x40] sm:$0xff] }
 0x7bc   : >> { %5339 = vst [vmem:[%s7111_s24 + $0x10] sm:$0xff] %v5338_v15  ;;  %s9103_s7 = smov (%p5399_p11, %s5398_s7), 0  ;;  %v5352_v31 = vld [vmem:[%s7115_s29 + $0x48] sm:$0xff]  ;;  %v5354_v41 = vld [vmem:[%s7115_s29 + $0x50] sm:$0xff]  ;;  %v5356_v43 = vld [vmem:[%s7115_s29 + $0x58] sm:$0xff] }
 0x7bd   : >> { %5341 = vst [vmem:[%s7111_s24 + $0x18] sm:$0xff] %v5340_v10  ;;  %s6657_s9 = sshll.u32 %s9103_s7, 8  ;;  %v5358_v58 = vld [vmem:[%s7115_s29 + $0x60] sm:$0xff]  ;;  %v5360_v29 = vld [vmem:[%s7115_s29 + $0x68] sm:$0xff]  ;;  %v5362_v4 = vld [vmem:[%s7115_s29 + $0x70] sm:$0xff]  ;;  %s9096_s8 = smov %s9103_s7 }
 0x7be   : >> { %5343 = vst [vmem:[%s7111_s24 + $0x20] sm:$0xff] %v5342_v1  ;;  %s8998_s17 = scalar_lea.vmem %s8581_s21, %s6657_s9 [#allocation3]   ;;  %s9001_s10 = scalar_lea.vmem %s8949_s23, %s6657_s9   ;;  %v5364_v20 = vld [vmem:[%s7115_s29 + $0x78] sm:$0xff]  ;;  %v5366_v46 = vld [vmem:[%s7115_s29 + $0x80] sm:$0xff]  ;;  %v5368_v6 = vld [vmem:[%s7115_s29 + $0x88] sm:$0xff] }
 0x7bf   : >> { %5345 = vst [vmem:[%s7111_s24 + $0x28] sm:$0xff] %v5344_v24  ;;  %v5370_v35 = vld [vmem:[%s7115_s29 + $0x90] sm:$0xff]  ;;  %v5372_v14 = vld [vmem:[%s7115_s29 + $0x98] sm:$0xff]  ;;  %v5374_v9 = vld [vmem:[%s7115_s29 + $0xa0] sm:$0xff] }
 0x7c0   : >> { %5347 = vst [vmem:[%s7111_s24 + $0x30] sm:$0xff] %v5346_v7  ;;  %v5376_v17 = vld [vmem:[%s7115_s29 + $0xa8] sm:$0xff]  ;;  %v5378_v48 = vld [vmem:[%s7115_s29 + $0xb0] sm:$0xff]  ;;  %v5380_v8 = vld [vmem:[%s7115_s29 + $0xb8] sm:$0xff] }
 0x7c1   : >> { %5349 = vst [vmem:[%s7111_s24 + $0x38] sm:$0xff] %v5348_v44  ;;  %v5382_v57 = vld [vmem:[%s7115_s29 + $0xc0] sm:$0xff]  ;;  %v5384_v16 = vld [vmem:[%s7115_s29 + $0xc8] sm:$0xff]  ;;  %v5386_v45 = vld [vmem:[%s7115_s29 + $0xd0] sm:$0xff] }
 0x7c2   : >> { %5351 = vst [vmem:[%s7111_s24 + $0x40] sm:$0xff] %v5350_v61  ;;  %v5388_v21 = vld [vmem:[%s7115_s29 + $0xd8] sm:$0xff]  ;;  %v5390_v2 = vld [vmem:[%s7115_s29 + $0xe0] sm:$0xff]  ;;  %v5392_v27 = vld [vmem:[%s7115_s29 + $0xe8] sm:$0xff] }
 0x7c3   : >> { %5353 = vst [vmem:[%s7111_s24 + $0x48] sm:$0xff] %v5352_v31  ;;  %v5394_v36 = vld [vmem:[%s7115_s29 + $0xf0] sm:$0xff]  ;;  %v5396_v37 = vld [vmem:[%s7115_s29 + $0xf8] sm:$0xff]  ;;  %s9095_s29 = smov %s8998_s17 }
 0x7c4   : >> { %5355 = vst [vmem:[%s7111_s24 + $0x50] sm:$0xff] %v5354_v41 }
 0x7c5   : >> { %5357 = vst [vmem:[%s7111_s24 + $0x58] sm:$0xff] %v5356_v43 }
 0x7c6   : >> { %5359 = vst [vmem:[%s7111_s24 + $0x60] sm:$0xff] %v5358_v58 }
 0x7c7   : >> { %5361 = vst [vmem:[%s7111_s24 + $0x68] sm:$0xff] %v5360_v29 }
 0x7c8   : >> { %5363 = vst [vmem:[%s7111_s24 + $0x70] sm:$0xff] %v5362_v4 }
 0x7c9   : >> { %5365 = vst [vmem:[%s7111_s24 + $0x78] sm:$0xff] %v5364_v20 }
 0x7ca   : >> { %5367 = vst [vmem:[%s7111_s24 + $0x80] sm:$0xff] %v5366_v46 }
 0x7cb   : >> { %5369 = vst [vmem:[%s7111_s24 + $0x88] sm:$0xff] %v5368_v6 }
 0x7cc   : >> { %5371 = vst [vmem:[%s7111_s24 + $0x90] sm:$0xff] %v5370_v35 }
 0x7cd   : >> { %5373 = vst [vmem:[%s7111_s24 + $0x98] sm:$0xff] %v5372_v14 }
 0x7ce   : >> { %5375 = vst [vmem:[%s7111_s24 + $0xa0] sm:$0xff] %v5374_v9 }
 0x7cf   : >> { %5377 = vst [vmem:[%s7111_s24 + $0xa8] sm:$0xff] %v5376_v17 }
 0x7d0   : >> { %5379 = vst [vmem:[%s7111_s24 + $0xb0] sm:$0xff] %v5378_v48 }
 0x7d1   : >> { %5381 = vst [vmem:[%s7111_s24 + $0xb8] sm:$0xff] %v5380_v8 }
 0x7d2   : >> { %5383 = vst [vmem:[%s7111_s24 + $0xc0] sm:$0xff] %v5382_v57 }
 0x7d3   : >> { %5385 = vst [vmem:[%s7111_s24 + $0xc8] sm:$0xff] %v5384_v16 }
 0x7d4   : >> { %5387 = vst [vmem:[%s7111_s24 + $0xd0] sm:$0xff] %v5386_v45 }
 0x7d5   : >> { %5389 = vst [vmem:[%s7111_s24 + $0xd8] sm:$0xff] %v5388_v21  ;;  %5330 = sbr.rel (!%p5327_p12) target bundleno = 1977 (0x7b9), region = 147 }
 0x7d6   : >> { %5391 = vst [vmem:[%s7111_s24 + $0xe0] sm:$0xff] %v5390_v2 }
 0x7d7   : >> { %5393 = vst [vmem:[%s7111_s24 + $0xe8] sm:$0xff] %v5392_v27 }
 0x7d8   : >> { %5395 = vst [vmem:[%s7111_s24 + $0xf0] sm:$0xff] %v5394_v36 }
 0x7d9   : >> { %5397 = vst [vmem:[%s7111_s24 + $0xf8] sm:$0xff] %v5396_v37  ;;  %s9094_s24 = smov %s9001_s10 }
 0x7da PF: > { %s9066_s11 = sand.u32 31, %s9101_s16   ;;  %s6916_s12 = sshll.u32 %s8955_s27, 8 }
 0x7db   : > { %s5409_s13 = scalar_lea.vmem %s8581_s21, %s6916_s12 [#allocation3]   ;;  %s5411_s14 = scalar_lea.vmem %s8949_s23, %s6916_s12  }
 0x7dc   : > { %p6662_p13 = scmp.le.s32.totalorder %s9066_s11, 0 }
 0x7dd   : > { %s7125_s15 = smov (!%p6662_p13), %s5411_s14   ;;  %s7129_s18 = smov (!%p6662_p13), %s5409_s13  }
 0x7de   : > { %5502 = sbr.rel (%p6662_p13) target bundleno = 2027 (0x7eb), region = 152  ;;  %s7133_s19 = smov (!%p6662_p13), 0  }
 0x7df   : > { %s7137_s20 = smov (!%p6662_p13), 0  }
 0x7e3 LB: >> { %v5421_v22 = vld [vmem:[%s7131_s18] sm:$0xff]  ;;  %s5423_s16 = sadd.s32 1, %s7135_s19  ;;  %s5415_s20 = sadd.s32 1, %s7139_s20   ;;  %s7139_s20 = sphi %s7137_s20, %s5415_s20   ;;  %s7135_s19 = sphi %s7133_s19, %s7134_s19   ;;  %s7131_s18 = sphi %s7129_s18, %s5428_s18   ;;  %s7127_s15 = sphi %s7125_s15, %s5429_s15  }
 0x7e4   : >> { %5422 = vst [vmem:[%s7127_s15] sm:$0xff] %v5421_v22  ;;  %p5424_p0 = scmp.ge.s32.totalorder %s5423_s16, %s9066_s11  ;;  %p5414_p1 = scmp.ge.s32.totalorder %s5415_s20, %s9066_s11 }
 0x7e6   : >> { %s9105_s16 = smov (%p5424_p0, %s5423_s16), 0  ;;  %5417 = sbr.rel (!%p5414_p1) target bundleno = 2019 (0x7e3), region = 158 }
 0x7e7   : >> { %s6663_s21 = sshll.u32 %s9105_s16, 3  ;;  %s7134_s19 = smov %s9105_s16  }
 0x7e8   : >> { %s5428_s18 = scalar_lea.vmem %s5409_s13, %s6663_s21 [#allocation3]   ;;  %s5429_s15 = scalar_lea.vmem %s5411_s14, %s6663_s21  }
 0x7eb PF: > { %p13_p2 = scmp.ge.s32.totalorder %s7192_s25, 4   ;;  %s9097_s21 = smov %s7103_s22 }
 0x7ec   : > { %s9098_s22 = smov %s7200_s28  ;;  %s9099_s23 = smov %s7192_s25 }
 0x7ed   :  { %15 = sbr.rel (!%p13_p2) target bundleno = 2 (0x2), region = 169 }

</bundles_post_ra>
